<compile_context>
chip_gen: v7x
topology: tpu7x:2x2x1
jax: 0.10.0
libtpu: 0.0.40
codegen_flags: <defaults>
</compile_context>

<pallas_src>
import functools

import jax
import jax.numpy as jnp
import numpy as np
from jax import lax
from jax.experimental import pallas as pl
from jax.experimental.pallas import tpu as pltpu

BN_EPS = 1e-3  # norm_cfg eps=0.001


# ------------------------------- Pallas kernel --------------------------------
def _second_fpn_kernel(x0_ref, x1_ref, w0_ref, w1_ref, b0_ref, b1_ref, out_ref,
                       *, cout0, cout1, th1, w_out, compute_dtype):
    """One grid step = one batch item x one tile of `th1` coarse rows (= 2*th1 fine rows).

    Spatial dims are flattened into the lane axis.
    x0_ref : (1, C0, 2*th1*W)   fine-resolution input rows, lanes = (row, col)
    x1_ref : (1, C1,   th1*W)   coarse input, NN-repeated 2x along W in the wrapper
    w0_ref : (cout0, C0)        BN-scale-folded 1x1 conv weight
    w1_ref : (4*cout1, C1)      BN-scale-folded deconv weight, rows ordered (ky, kx, co)
    b0_ref : (cout0, 1)         BN-folded bias
    b1_ref : (cout1, 1)         BN-folded bias
    out_ref: (1, cout0+cout1, 2*th1*W)  channels [0:cout0]=branch0, [cout0:]=branch1
    """
    W = w_out
    l1 = th1 * W

    # ---------------- branch 0: 1x1 conv + BN + ReLU (one wide matmul, one dense store) --
    a0 = x0_ref[0].astype(compute_dtype)                                   # [C0, 2*th1*W]
    acc0 = jnp.dot(w0_ref[...], a0, preferred_element_type=jnp.float32)    # [cout0, 2*th1*W]
    out_ref[0, 0:cout0, :] = jnp.maximum(acc0 + b0_ref[...], 0.0).astype(out_ref.dtype)

    # ---------------- branch 1: deconv k=2 s=2 + BN + ReLU --------------------------------
    r = x1_ref[0]                                                           # [C1, th1*W]
    p = jnp.dot(w1_ref[...], r, preferred_element_type=jnp.float32)         # [4*cout1, th1*W]

    # Output column x uses deconv tap kx = x % 2.  W is even, so lane parity of the
    # flattened axis equals the column parity -> zero-relayout select.
    col = lax.broadcasted_iota(jnp.int32, (cout1, l1), 1)
    even = (col % 2) == 0
    b1 = b1_ref[...]

    for ky in range(2):                                   # deconv row tap (static unroll)
        zk = jnp.where(even,
                       p[(2 * ky) * cout1:(2 * ky + 1) * cout1, :],         # kx = 0
                       p[(2 * ky + 1) * cout1:(2 * ky + 2) * cout1, :])     # kx = 1
        zk = jnp.maximum(zk + b1, 0.0).astype(out_ref.dtype)                # [cout1, th1*W]
        # Scatter the th1 coarse-row chunks (W lanes each) to fine rows 2*rr + ky.
        # Static lane offsets -> plain vector stores into the VMEM output tile.
        for rr in range(th1):
            dst = (2 * rr + ky) * W
            out_ref[0, cout0:cout0 + cout1, dst:dst + W] = zk[:, rr * W:(rr + 1) * W]


# ------------------------------- wrapper / glue --------------------------------
def _fold_bn(gamma, beta, mean, var, eps=BN_EPS):
    scale = gamma / jnp.sqrt(var + eps)
    bias = beta - mean * scale
    return scale, bias


def _pick_th1(h1, w, requested):
    """Pick a coarse-row tile so flattened block lane widths are 128-multiples (or full)."""
    th1 = min(requested, h1)
    if th1 >= h1:
        return h1
    while th1 > 1 and (th1 * w) % 128 != 0:
        th1 -= 1
    if (th1 * w) % 128 != 0:
        return h1  # full-extent block is always a legal BlockSpec
    return th1


def second_fpn_forward(xs, params, *, compute_dtype=jnp.bfloat16,
                       out_dtype=jnp.float32, th1=8):
    """xs: [x0 (N,128,H,W), x1 (N,256,H/2,W/2)] NCHW -> [out (N,512,H,W)] NCHW."""
    x0, x1 = xs
    n, c0, h, w = x0.shape
    n1, c1, h1, w1 = x1.shape
    assert n == n1 and h == 2 * h1 and w == 2 * w1, "shape contract of SECONDFPN"

    conv0_w = params["conv0_w"]        # (cout0, c0, 1, 1)
    deconv1_w = params["deconv1_w"]    # (c1, cout1, 2, 2)
    cout0 = conv0_w.shape[0]
    cout1 = deconv1_w.shape[1]
    ct = cout0 + cout1

    # fold BN (eval mode) scale into the weights, keep only a bias for the f32 epilogue
    s0, b0 = _fold_bn(*params["bn0"])
    s1, b1 = _fold_bn(*params["bn1"])
    w0f = (conv0_w[:, :, 0, 0] * s0[:, None]).astype(compute_dtype)               # [cout0, c0]
    w1f = (jnp.transpose(deconv1_w, (2, 3, 1, 0)) * s1[None, None, :, None])
    w1f = w1f.reshape(4 * cout1, c1).astype(compute_dtype)                        # [(ky,kx,co), c1]
    b0f = b0.reshape(cout0, 1).astype(jnp.float32)
    b1f = b1.reshape(cout1, 1).astype(jnp.float32)

    th1 = _pick_th1(h1, w, th1)
    th0 = 2 * th1

    # nearest-neighbour repeat of the SMALL coarse input along W (dtype cast fuses into it);
    # the deconv's column interleave then becomes the in-kernel lane-parity select.
    x1r = jnp.repeat(x1.astype(compute_dtype), 2, axis=3).reshape(n, c1, h1 * w)
    x0f = x0.reshape(n, c0, h * w)     # free reshape; cast to compute_dtype happens in-kernel

    grid = (n, pl.cdiv(h1, th1))
    kernel = functools.partial(_second_fpn_kernel, cout0=cout0, cout1=cout1,
                               th1=th1, w_out=w, compute_dtype=compute_dtype)

    cd_size = jnp.dtype(compute_dtype).itemsize
    flops = 2 * n * (cout0 * c0 * h * w + (4 * cout1) * c1 * (h1 * w))
    bytes_accessed = (x0.size * x0.dtype.itemsize + x1r.size * cd_size
                      + (w0f.size + w1f.size) * cd_size + (b0f.size + b1f.size) * 4
                      + n * ct * h * w * jnp.dtype(out_dtype).itemsize)

    out = pl.pallas_call(
        kernel,
        out_shape=jax.ShapeDtypeStruct((n, ct, h * w), out_dtype),
        grid=grid,
        in_specs=[
            pl.BlockSpec((1, c0, th0 * w), lambda b, r: (b, 0, r)),
            pl.BlockSpec((1, c1, th1 * w), lambda b, r: (b, 0, r)),
            pl.BlockSpec((cout0, c0), lambda b, r: (0, 0)),        # resident weights
            pl.BlockSpec((4 * cout1, c1), lambda b, r: (0, 0)),    # resident weights
            pl.BlockSpec((cout0, 1), lambda b, r: (0, 0)),
            pl.BlockSpec((cout1, 1), lambda b, r: (0, 0)),
        ],
        out_specs=pl.BlockSpec((1, ct, th0 * w), lambda b, r: (b, 0, r)),
        compiler_params=pltpu.CompilerParams(
            dimension_semantics=("parallel", "parallel"),
            vmem_limit_bytes=48 * 1024 * 1024),
        cost_estimate=pl.CostEstimate(flops=flops, transcendentals=0,
                                      bytes_accessed=bytes_accessed),
    )(x0f, x1r, w0f, w1f, b0f, b1f)
    return [out.reshape(n, ct, h, w)]


# ----------------------------- pure-JAX reference ------------------------------
def _ref_forward(xs, params):
    eps = BN_EPS
    x0 = xs[0]
    y0 = jnp.einsum("nchw,oc->nohw", x0, params["conv0_w"][:, :, 0, 0])
    g, b, m, v = params["bn0"]
    y0 = (y0 - m[None, :, None, None]) / jnp.sqrt(v + eps)[None, :, None, None]
    y0 = jnp.maximum(y0 * g[None, :, None, None] + b[None, :, None, None], 0.0)

    x1 = xs[1]
    wt = params["deconv1_w"]                               # (Cin, Cout, 2, 2)
    y1 = jnp.einsum("nchw,cokl->nohkwl", x1, wt)
    n1, co, h1, kh, w1, kw = y1.shape
    y1 = y1.reshape(n1, co, h1 * kh, w1 * kw)
    g, b, m, v = params["bn1"]
    y1 = (y1 - m[None, :, None, None]) / jnp.sqrt(v + eps)[None, :, None, None]
    y1 = jnp.maximum(y1 * g[None, :, None, None] + b[None, :, None, None], 0.0)
    return [jnp.concatenate([y0, y1], axis=1)]


# ------------------------------------ main -------------------------------------
if __name__ == "__main__":
    in_channels = [128, 256]
    out_channels = [256, 256]
    N, H, W = 2, 16, 16

    key = jax.random.PRNGKey(0)
    k_in0, k_in1, k_w0, k_w1, k_bn = jax.random.split(key, 5)

    # inputs (NCHW), x1 at half resolution
    x0 = jax.random.normal(k_in0, (N, in_channels[0], H, W), dtype=jnp.float32)
    x1 = jax.random.normal(k_in1, (N, in_channels[1], H // 2, W // 2), dtype=jnp.float32)

    conv0_w = 0.05 * jax.random.normal(
        k_w0, (out_channels[0], in_channels[0], 1, 1), dtype=jnp.float32)
    deconv1_w = 0.05 * jax.random.normal(
        k_w1, (in_channels[1], out_channels[1], 2, 2), dtype=jnp.float32)

    kb = jax.random.split(k_bn, 8)

    def bn_params(k0, k1, k2, k3, c):
        gamma = 0.5 + jax.random.uniform(k0, (c,), dtype=jnp.float32)
        beta = 0.1 * jax.random.normal(k1, (c,), dtype=jnp.float32)
        mean = 0.1 * jax.random.normal(k2, (c,), dtype=jnp.float32)
        var = 0.5 + jax.random.uniform(k3, (c,), dtype=jnp.float32)
        return (gamma, beta, mean, var)

    params = {
        "conv0_w": conv0_w,
        "deconv1_w": deconv1_w,
        "bn0": bn_params(kb[0], kb[1], kb[2], kb[3], out_channels[0]),
        "bn1": bn_params(kb[4], kb[5], kb[6], kb[7], out_channels[1]),
    }

    ref = _ref_forward([x0, x1], params)
    ref = [jax.block_until_ready(o) for o in ref]

    # f32 operand path (tight tolerance)
    out_f32 = second_fpn_forward([x0, x1], params, compute_dtype=jnp.float32)
    out_f32 = [jax.block_until_ready(o) for o in out_f32]
    assert out_f32[0].shape == (N, sum(out_channels), H, W), out_f32[0].shape
    np.testing.assert_allclose(np.asarray(out_f32[0]), np.asarray(ref[0]),
                               rtol=2e-4, atol=2e-4)

    # default bf16 operand path (MXU fast path), f32 accumulation -> looser tolerance
    out_bf16 = second_fpn_forward([x0, x1], params)
    out_bf16 = jax.block_until_ready(out_bf16[0])
    assert out_bf16.shape == (N, sum(out_channels), H, W), out_bf16.shape
    np.testing.assert_allclose(np.asarray(out_bf16), np.asarray(ref[0]),
                               rtol=1e-1, atol=1e-1)

    print("KERNEL_OK")
</pallas_src>

<mosaic_0001>
module attributes {stable_mosaic.version = 11 : i64} {
  func.func @_second_fpn_kernel(%arg0: i32, %arg1: i32, %arg2: memref<1x128x256xf32, #tpu.memory_space<vmem>>, %arg3: memref<1x256x128xf32, #tpu.memory_space<vmem>>, %arg4: memref<256x128xf32, #tpu.memory_space<vmem>>, %arg5: memref<1024x256xf32, #tpu.memory_space<vmem>>, %arg6: memref<256x1xf32, #tpu.memory_space<vmem>>, %arg7: memref<256x1xf32, #tpu.memory_space<vmem>>, %arg8: memref<1x512x256xf32, #tpu.memory_space<vmem>>) attributes {dimension_semantics = [#tpu.dimension_semantics<parallel>, #tpu.dimension_semantics<parallel>], iteration_bounds = array<i64: 2, 1>, scalar_prefetch = 0 : i64, scratch_operands = 0 : i64, tpu.core_type = #tpu.core_type<tc>, window_params = [{transform_indices = @transform_0, window_bounds = array<i64: 1, 128, 256>}, {transform_indices = @transform_1, window_bounds = array<i64: 1, 256, 128>}, {pipeline_mode = #tpu.pipeline_mode<synchronous>, transform_indices = @transform_2, window_bounds = array<i64: 256, 128>}, {pipeline_mode = #tpu.pipeline_mode<synchronous>, transform_indices = @transform_3, window_bounds = array<i64: 1024, 256>}, {pipeline_mode = #tpu.pipeline_mode<synchronous>, transform_indices = @transform_4, window_bounds = array<i64: 256, 1>}, {pipeline_mode = #tpu.pipeline_mode<synchronous>, transform_indices = @transform_5, window_bounds = array<i64: 256, 1>}, {transform_indices = @transform_6, window_bounds = array<i64: 1, 512, 256>}]} {
    %c0 = arith.constant 0 : index
    %c0_0 = arith.constant 0 : index
    %c0_1 = arith.constant 0 : index
    %0 = vector.load %arg2[%c0, %c0_0, %c0_1] : memref<1x128x256xf32, #tpu.memory_space<vmem>>, vector<1x128x256xf32>
    %1 = vector.shape_cast %0 : vector<1x128x256xf32> to vector<128x256xf32>
    %c0_2 = arith.constant 0 : index
    %c0_3 = arith.constant 0 : index
    %2 = vector.load %arg4[%c0_2, %c0_3] : memref<256x128xf32, #tpu.memory_space<vmem>>, vector<256x128xf32>
    %cst = arith.constant dense<0.000000e+00> : vector<256x256xf32>
    %3 = tpu.matmul %2, %1, %cst {dimension_numbers = #tpu.dot_dimension_numbers<[1], [0], [0], [1], [0, 0, 1, 1], [], []>} : vector<256x128xf32>, vector<128x256xf32>, vector<256x256xf32> -> vector<256x256xf32>
    %c0_4 = arith.constant 0 : index
    %c0_5 = arith.constant 0 : index
    %4 = vector.load %arg6[%c0_4, %c0_5] : memref<256x1xf32, #tpu.memory_space<vmem>>, vector<256x1xf32>
    %5 = vector.broadcast %4 : vector<256x1xf32> to vector<256x256xf32>
    %6 = arith.addf %3, %5 : vector<256x256xf32>
    %cst_6 = arith.constant 0.000000e+00 : f32
    %7 = vector.broadcast %cst_6 : f32 to vector<256x256xf32>
    %8 = arith.maximumf %6, %7 : vector<256x256xf32>
    %c0_7 = arith.constant 0 : index
    %c0_8 = arith.constant 0 : index
    %c0_9 = arith.constant 0 : index
    %9 = vector.load %arg8[%c0_7, %c0_8, %c0_9] : memref<1x512x256xf32, #tpu.memory_space<vmem>>, vector<1x256x256xf32>
    %10 = vector.shape_cast %9 : vector<1x256x256xf32> to vector<256x256xf32>
    %11 = vector.shape_cast %8 : vector<256x256xf32> to vector<1x256x256xf32>
    tpu.vector_store %arg8[%c0_7, %c0_8, %c0_9], %11 {strides = array<i32>} : memref<1x512x256xf32, #tpu.memory_space<vmem>>, vector<1x256x256xf32>,
    %c0_10 = arith.constant 0 : index
    %c0_11 = arith.constant 0 : index
    %c0_12 = arith.constant 0 : index
    %12 = vector.load %arg3[%c0_10, %c0_11, %c0_12] : memref<1x256x128xf32, #tpu.memory_space<vmem>>, vector<1x256x128xf32>
    %13 = vector.shape_cast %12 : vector<1x256x128xf32> to vector<256x128xf32>
    %c0_13 = arith.constant 0 : index
    %c0_14 = arith.constant 0 : index
    %14 = vector.load %arg5[%c0_13, %c0_14] : memref<1024x256xf32, #tpu.memory_space<vmem>>, vector<1024x256xf32>
    %cst_15 = arith.constant dense<0.000000e+00> : vector<1024x128xf32>
    %15 = tpu.matmul %14, %13, %cst_15 {dimension_numbers = #tpu.dot_dimension_numbers<[1], [0], [0], [1], [0, 0, 1, 1], [], []>} : vector<1024x256xf32>, vector<256x128xf32>, vector<1024x128xf32> -> vector<1024x128xf32>
    %16 = tpu.iota {dimensions = array<i32: 1>} : vector<256x128xi32>
    %c2_i32 = arith.constant 2 : i32
    %c0_i32 = arith.constant 0 : i32
    %17 = arith.cmpi eq, %c2_i32, %c0_i32 : i32
    %c1_i32 = arith.constant 1 : i32
    %18 = arith.select %17, %c1_i32, %c2_i32 : i32
    %19 = vector.broadcast %18 : i32 to vector<256x128xi32>
    %20 = arith.remsi %16, %19 : vector<256x128xi32>
    %c0_i32_16 = arith.constant 0 : i32
    %21 = vector.broadcast %c0_i32_16 : i32 to vector<256x128xi32>
    %22 = arith.cmpi ne, %20, %21 : vector<256x128xi32>
    %c0_i32_17 = arith.constant 0 : i32
    %23 = vector.broadcast %c0_i32_17 : i32 to vector<256x128xi32>
    %24 = arith.cmpi slt, %20, %23 : vector<256x128xi32>
    %c0_i32_18 = arith.constant 0 : i32
    %25 = arith.cmpi slt, %18, %c0_i32_18 : i32
    %26 = vector.broadcast %25 : i1 to vector<256x128xi1>
    %27 = vector.broadcast %26 : vector<256x128xi1> to vector<256x128xi1>
    %28 = arith.xori %24, %27 : vector<256x128xi1>
    %29 = arith.andi %28, %22 : vector<256x128xi1>
    %30 = vector.broadcast %18 : i32 to vector<256x128xi32>
    %31 = arith.addi %20, %30 : vector<256x128xi32>
    %32 = arith.select %29, %31, %20 : vector<256x128xi1>, vector<256x128xi32>
    %c0_i32_19 = arith.constant 0 : i32
    %33 = vector.broadcast %c0_i32_19 : i32 to vector<256x128xi32>
    %34 = arith.cmpi eq, %32, %33 : vector<256x128xi32>
    %c0_20 = arith.constant 0 : index
    %c0_21 = arith.constant 0 : index
    %35 = vector.load %arg7[%c0_20, %c0_21] : memref<256x1xf32, #tpu.memory_space<vmem>>, vector<256x1xf32>
    %36 = vector.extract_strided_slice %15 {offsets = [0, 0], sizes = [256, 128], strides = [1, 1]} : vector<1024x128xf32> to vector<256x128xf32>
    %37 = vector.extract_strided_slice %15 {offsets = [256, 0], sizes = [256, 128], strides = [1, 1]} : vector<1024x128xf32> to vector<256x128xf32>
    %38 = arith.select %34, %36, %37 : vector<256x128xi1>, vector<256x128xf32>
    %39 = vector.broadcast %35 : vector<256x1xf32> to vector<256x128xf32>
    %40 = arith.addf %38, %39 : vector<256x128xf32>
    %cst_22 = arith.constant 0.000000e+00 : f32
    %41 = vector.broadcast %cst_22 : f32 to vector<256x128xf32>
    %42 = arith.maximumf %40, %41 : vector<256x128xf32>
    %43 = vector.extract_strided_slice %42 {offsets = [0, 0], sizes = [256, 16], strides = [1, 1]} : vector<256x128xf32> to vector<256x16xf32>
    %c0_23 = arith.constant 0 : index
    %c256 = arith.constant 256 : index
    %c0_24 = arith.constant 0 : index
    %44 = vector.load %arg8[%c0_23, %c256, %c0_24] : memref<1x512x256xf32, #tpu.memory_space<vmem>>, vector<1x256x16xf32>
    %45 = vector.shape_cast %44 : vector<1x256x16xf32> to vector<256x16xf32>
    %46 = vector.shape_cast %43 : vector<256x16xf32> to vector<1x256x16xf32>
    tpu.vector_store %arg8[%c0_23, %c256, %c0_24], %46 {strides = array<i32>} : memref<1x512x256xf32, #tpu.memory_space<vmem>>, vector<1x256x16xf32>,
    %47 = vector.extract_strided_slice %42 {offsets = [0, 16], sizes = [256, 16], strides = [1, 1]} : vector<256x128xf32> to vector<256x16xf32>
    %c0_25 = arith.constant 0 : index
    %c256_26 = arith.constant 256 : index
    %c32 = arith.constant 32 : index
    %48 = vector.load %arg8[%c0_25, %c256_26, %c32] : memref<1x512x256xf32, #tpu.memory_space<vmem>>, vector<1x256x16xf32>
    %49 = vector.shape_cast %48 : vector<1x256x16xf32> to vector<256x16xf32>
    %50 = vector.shape_cast %47 : vector<256x16xf32> to vector<1x256x16xf32>
    tpu.vector_store %arg8[%c0_25, %c256_26, %c32], %50 {strides = array<i32>} : memref<1x512x256xf32, #tpu.memory_space<vmem>>, vector<1x256x16xf32>,
    %51 = vector.extract_strided_slice %42 {offsets = [0, 32], sizes = [256, 16], strides = [1, 1]} : vector<256x128xf32> to vector<256x16xf32>
    %c0_27 = arith.constant 0 : index
    %c256_28 = arith.constant 256 : index
    %c64 = arith.constant 64 : index
    %52 = vector.load %arg8[%c0_27, %c256_28, %c64] : memref<1x512x256xf32, #tpu.memory_space<vmem>>, vector<1x256x16xf32>
    %53 = vector.shape_cast %52 : vector<1x256x16xf32> to vector<256x16xf32>
    %54 = vector.shape_cast %51 : vector<256x16xf32> to vector<1x256x16xf32>
    tpu.vector_store %arg8[%c0_27, %c256_28, %c64], %54 {strides = array<i32>} : memref<1x512x256xf32, #tpu.memory_space<vmem>>, vector<1x256x16xf32>,
    %55 = vector.extract_strided_slice %42 {offsets = [0, 48], sizes = [256, 16], strides = [1, 1]} : vector<256x128xf32> to vector<256x16xf32>
    %c0_29 = arith.constant 0 : index
    %c256_30 = arith.constant 256 : index
    %c96 = arith.constant 96 : index
    %56 = vector.load %arg8[%c0_29, %c256_30, %c96] : memref<1x512x256xf32, #tpu.memory_space<vmem>>, vector<1x256x16xf32>
    %57 = vector.shape_cast %56 : vector<1x256x16xf32> to vector<256x16xf32>
    %58 = vector.shape_cast %55 : vector<256x16xf32> to vector<1x256x16xf32>
    tpu.vector_store %arg8[%c0_29, %c256_30, %c96], %58 {strides = array<i32>} : memref<1x512x256xf32, #tpu.memory_space<vmem>>, vector<1x256x16xf32>,
    %59 = vector.extract_strided_slice %42 {offsets = [0, 64], sizes = [256, 16], strides = [1, 1]} : vector<256x128xf32> to vector<256x16xf32>
    %c0_31 = arith.constant 0 : index
    %c256_32 = arith.constant 256 : index
    %c128 = arith.constant 128 : index
    %60 = vector.load %arg8[%c0_31, %c256_32, %c128] : memref<1x512x256xf32, #tpu.memory_space<vmem>>, vector<1x256x16xf32>
    %61 = vector.shape_cast %60 : vector<1x256x16xf32> to vector<256x16xf32>
    %62 = vector.shape_cast %59 : vector<256x16xf32> to vector<1x256x16xf32>
    tpu.vector_store %arg8[%c0_31, %c256_32, %c128], %62 {strides = array<i32>} : memref<1x512x256xf32, #tpu.memory_space<vmem>>, vector<1x256x16xf32>,
    %63 = vector.extract_strided_slice %42 {offsets = [0, 80], sizes = [256, 16], strides = [1, 1]} : vector<256x128xf32> to vector<256x16xf32>
    %c0_33 = arith.constant 0 : index
    %c256_34 = arith.constant 256 : index
    %c160 = arith.constant 160 : index
    %64 = vector.load %arg8[%c0_33, %c256_34, %c160] : memref<1x512x256xf32, #tpu.memory_space<vmem>>, vector<1x256x16xf32>
    %65 = vector.shape_cast %64 : vector<1x256x16xf32> to vector<256x16xf32>
    %66 = vector.shape_cast %63 : vector<256x16xf32> to vector<1x256x16xf32>
    tpu.vector_store %arg8[%c0_33, %c256_34, %c160], %66 {strides = array<i32>} : memref<1x512x256xf32, #tpu.memory_space<vmem>>, vector<1x256x16xf32>,
    %67 = vector.extract_strided_slice %42 {offsets = [0, 96], sizes = [256, 16], strides = [1, 1]} : vector<256x128xf32> to vector<256x16xf32>
    %c0_35 = arith.constant 0 : index
    %c256_36 = arith.constant 256 : index
    %c192 = arith.constant 192 : index
    %68 = vector.load %arg8[%c0_35, %c256_36, %c192] : memref<1x512x256xf32, #tpu.memory_space<vmem>>, vector<1x256x16xf32>
    %69 = vector.shape_cast %68 : vector<1x256x16xf32> to vector<256x16xf32>
    %70 = vector.shape_cast %67 : vector<256x16xf32> to vector<1x256x16xf32>
    tpu.vector_store %arg8[%c0_35, %c256_36, %c192], %70 {strides = array<i32>} : memref<1x512x256xf32, #tpu.memory_space<vmem>>, vector<1x256x16xf32>,
    %71 = vector.extract_strided_slice %42 {offsets = [0, 112], sizes = [256, 16], strides = [1, 1]} : vector<256x128xf32> to vector<256x16xf32>
    %c0_37 = arith.constant 0 : index
    %c256_38 = arith.constant 256 : index
    %c224 = arith.constant 224 : index
    %72 = vector.load %arg8[%c0_37, %c256_38, %c224] : memref<1x512x256xf32, #tpu.memory_space<vmem>>, vector<1x256x16xf32>
    %73 = vector.shape_cast %72 : vector<1x256x16xf32> to vector<256x16xf32>
    %74 = vector.shape_cast %71 : vector<256x16xf32> to vector<1x256x16xf32>
    tpu.vector_store %arg8[%c0_37, %c256_38, %c224], %74 {strides = array<i32>} : memref<1x512x256xf32, #tpu.memory_space<vmem>>, vector<1x256x16xf32>,
    %75 = vector.extract_strided_slice %15 {offsets = [512, 0], sizes = [256, 128], strides = [1, 1]} : vector<1024x128xf32> to vector<256x128xf32>
    %76 = vector.extract_strided_slice %15 {offsets = [768, 0], sizes = [256, 128], strides = [1, 1]} : vector<1024x128xf32> to vector<256x128xf32>
    %77 = arith.select %34, %75, %76 : vector<256x128xi1>, vector<256x128xf32>
    %78 = vector.broadcast %35 : vector<256x1xf32> to vector<256x128xf32>
    %79 = arith.addf %77, %78 : vector<256x128xf32>
    %cst_39 = arith.constant 0.000000e+00 : f32
    %80 = vector.broadcast %cst_39 : f32 to vector<256x128xf32>
    %81 = arith.maximumf %79, %80 : vector<256x128xf32>
    %82 = vector.extract_strided_slice %81 {offsets = [0, 0], sizes = [256, 16], strides = [1, 1]} : vector<256x128xf32> to vector<256x16xf32>
    %c0_40 = arith.constant 0 : index
    %c256_41 = arith.constant 256 : index
    %c16 = arith.constant 16 : index
    %83 = vector.load %arg8[%c0_40, %c256_41, %c16] : memref<1x512x256xf32, #tpu.memory_space<vmem>>, vector<1x256x16xf32>
    %84 = vector.shape_cast %83 : vector<1x256x16xf32> to vector<256x16xf32>
    %85 = vector.shape_cast %82 : vector<256x16xf32> to vector<1x256x16xf32>
    tpu.vector_store %arg8[%c0_40, %c256_41, %c16], %85 {strides = array<i32>} : memref<1x512x256xf32, #tpu.memory_space<vmem>>, vector<1x256x16xf32>,
    %86 = vector.extract_strided_slice %81 {offsets = [0, 16], sizes = [256, 16], strides = [1, 1]} : vector<256x128xf32> to vector<256x16xf32>
    %c0_42 = arith.constant 0 : index
    %c256_43 = arith.constant 256 : index
    %c48 = arith.constant 48 : index
    %87 = vector.load %arg8[%c0_42, %c256_43, %c48] : memref<1x512x256xf32, #tpu.memory_space<vmem>>, vector<1x256x16xf32>
    %88 = vector.shape_cast %87 : vector<1x256x16xf32> to vector<256x16xf32>
    %89 = vector.shape_cast %86 : vector<256x16xf32> to vector<1x256x16xf32>
    tpu.vector_store %arg8[%c0_42, %c256_43, %c48], %89 {strides = array<i32>} : memref<1x512x256xf32, #tpu.memory_space<vmem>>, vector<1x256x16xf32>,
    %90 = vector.extract_strided_slice %81 {offsets = [0, 32], sizes = [256, 16], strides = [1, 1]} : vector<256x128xf32> to vector<256x16xf32>
    %c0_44 = arith.constant 0 : index
    %c256_45 = arith.constant 256 : index
    %c80 = arith.constant 80 : index
    %91 = vector.load %arg8[%c0_44, %c256_45, %c80] : memref<1x512x256xf32, #tpu.memory_space<vmem>>, vector<1x256x16xf32>
    %92 = vector.shape_cast %91 : vector<1x256x16xf32> to vector<256x16xf32>
    %93 = vector.shape_cast %90 : vector<256x16xf32> to vector<1x256x16xf32>
    tpu.vector_store %arg8[%c0_44, %c256_45, %c80], %93 {strides = array<i32>} : memref<1x512x256xf32, #tpu.memory_space<vmem>>, vector<1x256x16xf32>,
    %94 = vector.extract_strided_slice %81 {offsets = [0, 48], sizes = [256, 16], strides = [1, 1]} : vector<256x128xf32> to vector<256x16xf32>
    %c0_46 = arith.constant 0 : index
    %c256_47 = arith.constant 256 : index
    %c112 = arith.constant 112 : index
    %95 = vector.load %arg8[%c0_46, %c256_47, %c112] : memref<1x512x256xf32, #tpu.memory_space<vmem>>, vector<1x256x16xf32>
    %96 = vector.shape_cast %95 : vector<1x256x16xf32> to vector<256x16xf32>
    %97 = vector.shape_cast %94 : vector<256x16xf32> to vector<1x256x16xf32>
    tpu.vector_store %arg8[%c0_46, %c256_47, %c112], %97 {strides = array<i32>} : memref<1x512x256xf32, #tpu.memory_space<vmem>>, vector<1x256x16xf32>,
    %98 = vector.extract_strided_slice %81 {offsets = [0, 64], sizes = [256, 16], strides = [1, 1]} : vector<256x128xf32> to vector<256x16xf32>
    %c0_48 = arith.constant 0 : index
    %c256_49 = arith.constant 256 : index
    %c144 = arith.constant 144 : index
    %99 = vector.load %arg8[%c0_48, %c256_49, %c144] : memref<1x512x256xf32, #tpu.memory_space<vmem>>, vector<1x256x16xf32>
    %100 = vector.shape_cast %99 : vector<1x256x16xf32> to vector<256x16xf32>
    %101 = vector.shape_cast %98 : vector<256x16xf32> to vector<1x256x16xf32>
    tpu.vector_store %arg8[%c0_48, %c256_49, %c144], %101 {strides = array<i32>} : memref<1x512x256xf32, #tpu.memory_space<vmem>>, vector<1x256x16xf32>,
    %102 = vector.extract_strided_slice %81 {offsets = [0, 80], sizes = [256, 16], strides = [1, 1]} : vector<256x128xf32> to vector<256x16xf32>
    %c0_50 = arith.constant 0 : index
    %c256_51 = arith.constant 256 : index
    %c176 = arith.constant 176 : index
    %103 = vector.load %arg8[%c0_50, %c256_51, %c176] : memref<1x512x256xf32, #tpu.memory_space<vmem>>, vector<1x256x16xf32>
    %104 = vector.shape_cast %103 : vector<1x256x16xf32> to vector<256x16xf32>
    %105 = vector.shape_cast %102 : vector<256x16xf32> to vector<1x256x16xf32>
    tpu.vector_store %arg8[%c0_50, %c256_51, %c176], %105 {strides = array<i32>} : memref<1x512x256xf32, #tpu.memory_space<vmem>>, vector<1x256x16xf32>,
    %106 = vector.extract_strided_slice %81 {offsets = [0, 96], sizes = [256, 16], strides = [1, 1]} : vector<256x128xf32> to vector<256x16xf32>
    %c0_52 = arith.constant 0 : index
    %c256_53 = arith.constant 256 : index
    %c208 = arith.constant 208 : index
    %107 = vector.load %arg8[%c0_52, %c256_53, %c208] : memref<1x512x256xf32, #tpu.memory_space<vmem>>, vector<1x256x16xf32>
    %108 = vector.shape_cast %107 : vector<1x256x16xf32> to vector<256x16xf32>
    %109 = vector.shape_cast %106 : vector<256x16xf32> to vector<1x256x16xf32>
    tpu.vector_store %arg8[%c0_52, %c256_53, %c208], %109 {strides = array<i32>} : memref<1x512x256xf32, #tpu.memory_space<vmem>>, vector<1x256x16xf32>,
    %110 = vector.extract_strided_slice %81 {offsets = [0, 112], sizes = [256, 16], strides = [1, 1]} : vector<256x128xf32> to vector<256x16xf32>
    %c0_54 = arith.constant 0 : index
    %c256_55 = arith.constant 256 : index
    %c240 = arith.constant 240 : index
    %111 = vector.load %arg8[%c0_54, %c256_55, %c240] : memref<1x512x256xf32, #tpu.memory_space<vmem>>, vector<1x256x16xf32>
    %112 = vector.shape_cast %111 : vector<1x256x16xf32> to vector<256x16xf32>
    %113 = vector.shape_cast %110 : vector<256x16xf32> to vector<1x256x16xf32>
    tpu.vector_store %arg8[%c0_54, %c256_55, %c240], %113 {strides = array<i32>} : memref<1x512x256xf32, #tpu.memory_space<vmem>>, vector<1x256x16xf32>,
    return
  }
  func.func @transform_0(%arg0: i32, %arg1: i32) -> (i32, i32, i32) {
    %c0_i32 = arith.constant 0 : i32
    %c0_i32_0 = arith.constant 0 : i32
    return %arg0, %c0_i32, %arg1 : i32, i32, i32
  }
  func.func @transform_1(%arg0: i32, %arg1: i32) -> (i32, i32, i32) {
    %c0_i32 = arith.constant 0 : i32
    %c0_i32_0 = arith.constant 0 : i32
    return %arg0, %c0_i32, %arg1 : i32, i32, i32
  }
  func.func @transform_2(%arg0: i32, %arg1: i32) -> (i32, i32) {
    %c0_i32 = arith.constant 0 : i32
    %c0_i32_0 = arith.constant 0 : i32
    %c0_i32_1 = arith.constant 0 : i32
    return %c0_i32, %c0_i32_0 : i32, i32
  }
  func.func @transform_3(%arg0: i32, %arg1: i32) -> (i32, i32) {
    %c0_i32 = arith.constant 0 : i32
    %c0_i32_0 = arith.constant 0 : i32
    %c0_i32_1 = arith.constant 0 : i32
    return %c0_i32, %c0_i32_0 : i32, i32
  }
  func.func @transform_4(%arg0: i32, %arg1: i32) -> (i32, i32) {
    %c0_i32 = arith.constant 0 : i32
    %c0_i32_0 = arith.constant 0 : i32
    %c0_i32_1 = arith.constant 0 : i32
    return %c0_i32, %c0_i32_0 : i32, i32
  }
  func.func @transform_5(%arg0: i32, %arg1: i32) -> (i32, i32) {
    %c0_i32 = arith.constant 0 : i32
    %c0_i32_0 = arith.constant 0 : i32
    %c0_i32_1 = arith.constant 0 : i32
    return %c0_i32, %c0_i32_0 : i32, i32
  }
  func.func @transform_6(%arg0: i32, %arg1: i32) -> (i32, i32, i32) {
    %c0_i32 = arith.constant 0 : i32
    %c0_i32_0 = arith.constant 0 : i32
    return %arg0, %c0_i32, %arg1 : i32, i32, i32
  }
}

</mosaic_0001>

<bundles_post_ra>
// kernel: tpu_custom_call.1
= control target key start
LH: loop header
LB: loop body
LE: loop exit
PB: predicated region body
PF: predicated region fallthrough
CT: control target
= control target key end

     0   :  { %11 = vsyncpa [#allocation3], 0  ;;  %s8462_s0 = inlined_call_operand.vmem [shape: f32[2,128,256], index: 0, kind: input, shape index: {}]   ;;  %s8463_s1 = inlined_call_operand.hbm [shape: f32[2,256,128], index: 1, kind: input, shape index: {}]   ;;  %s8464_s2 = inlined_call_operand.hbm [shape: f32[256,128], index: 2, kind: input, shape index: {}]   ;;  %s8465_s3 = inlined_call_operand.hbm [shape: f32[1024,256], index: 3, kind: input, shape index: {}]   ;;  %s8466_s4 = inlined_call_operand.vmem [shape: f32[256,1], index: 4, kind: input, shape index: {}]   ;;  %s8467_s5 = inlined_call_operand.vmem [shape: f32[256,1], index: 5, kind: input, shape index: {}]   ;;  %s8468_s6 = inlined_call_operand.hbm [shape: f32[2,512,256], index: 6, kind: output, shape index: {}]  }
   0x1   :  { %13 = vsyncpa [#allocation3 + $0x1], 0 }
   0x2   :  { %14 = vsyncpa [#allocation6], 0 }
   0x3   :  { %15 = vsyncpa [#allocation4], 0 }
   0x4   :  { %17 = vsyncpa [#allocation4 + $0x1], 0  ;;  %s4917_s21 = smov 0   ;;  %s4919_s22 = smov 0  }
   0x5   :  { %s4921_s23 = smov 0   ;;  %s4923_s24 = smov 0  }
   0x6   :  { %s4925_s25 = smov 0   ;;  %s4927_s26 = smov 0  }
   0x7 LB: > { %s4453_s27 = sadd.s32 4294967295, %s4861_s26   ;;  %s4454_s28 = sadd.s32 4294967294, %s4861_s26   ;;  %s4861_s26 = sphi %s4927_s26, %s23_s26   ;;  %s4857_s25 = sphi %s4925_s25, %s8765_s25   ;;  %s4853_s24 = sphi %s4923_s24, %s8764_s24   ;;  %s4849_s23 = sphi %s4921_s23, %s8763_s23   ;;  %s4845_s22 = sphi %s4919_s22, %s8762_s22   ;;  %s4841_s21 = sphi %s4917_s21, %s8761_s21  }
   0x8   : > { %p85_p0 = scmp.ne.s32.totalorder %s4845_s22, %s4841_s21  ;;  %p4951_p1 = scmp.eq.s32.totalorder %s4453_s27, 0 }
   0x9   : > { %p4955_p2 = scmp.eq.s32.totalorder %s4453_s27, 1  ;;  %p201_p3 = scmp.eq.s32.totalorder %s4454_s28, 1 }
   0xa   : > { %s8546_s29 = scalar_select %p4951_p1, 1, 0 }
   0xb   : > { %p4961_p4 = por %p4951_p1, %p85_p0  ;;  %p4455_p5 = scmp.ge.s32.totalorder %s4861_s26, 1 }
   0xc   : > { %p4966_p6 = por %p201_p3, %p85_p0  ;;  %p208_p7 = scmp.lt.s32.totalorder %s4861_s26, 3 }
   0xd   : > { %s8548_s7 = scalar_select %p4961_p4, 1, 0 }
   0xe   : > { %s8549_s8 = scalar_select %p4966_p6, 1, 0 }
   0xf   : > { %p4971_p8 = pnand %p4455_p5, %p208_p7  ;;  %s4863_s10 = smov [#allocation5]  }
  0x10   : > { %8550 = sst [smem:[#allocation12_spill]] %s8549_s8  ;;  %s220_s11 = sshll.u32 %s4863_s10, 4  ;;  %s4975_s11 = int_to_ptr.vmem [resolvable:$true] %s220_s11 }
  0x11   : > { %p4601_p9 = pneg %p4971_p8  ;;  %s4864_s13 = smov [#allocation7]  }
  0x12   : > { %s233_s14 = sshll.u32 %s4864_s13, 4  ;;  %s4689_s17 = scalar_lea.hbm %s8464_s2, 4096  ;;  %s4986_s14 = int_to_ptr.vmem [resolvable:$true] %s233_s14 }
  0x13   : > { %p4982_p11 = pnand %p4601_p9, %p4951_p1  ;;  %p4690_p12 = scmp.ne.s32.totalorder %s8464_s2, %s4689_s17 }
  0x14   : > { %p4696_p5 = scmp.lt.u32.totalorder %s4689_s17, %s8464_s2 }
  0x15   : > { %p4691_p13 = pneg %p4982_p11 }
  0x17   : > { %p4692_p0 = pnand %p4691_p13, %p4690_p12 }
  0x19   : > { %p4693_p3 = pneg %p4692_p0 }
  0x1b   : > { %p4698_p7 = pnand %p4696_p5, %p4693_p3 }
  0x1d   : > { %4701 = shalt.err (!%p4698_p7)
}
  0x1e   : > { %s4702_s28 = scalar_lea.vmem %s4975_s11, 4096  ;;  %p4710_p1 = scmp.lt.s32.totalorder %s4975_s11, %s4975_s11 }
  0x1f   : > { %p4703_p9 = scmp.ne.s32.totalorder %s4975_s11, %s4702_s28  ;;  %p4711_p12 = scmp.lt.s32.totalorder %s4702_s28, %s4702_s28 }
  0x21   : > { %p4705_p10 = pnand %p4703_p9, %p4691_p13  ;;  %p4712_p0 = por %p4711_p12, %p4710_p1 }
  0x23   : > { %p4706_p6 = pneg %p4705_p10 }
  0x25   : > { %p4713_p4 = pnand %p4712_p0, %p4706_p6 }
  0x27   : > { %4716 = shalt.err (!%p4713_p4)
}
  0x28   : > { %s8473_s10 = smov 128   ;;  %s4866_s13 = smov 8  }
  0x29   : > { %4604 = dma.hbm_to_vmem [thread:$0]  (!%p4982_p11), %s8464_s2, 4096, %s4975_s11, [#allocation6], %s8473_s10, %s8473_s10, %s4866_s13  }
  0x2a   : > { %s4717_s19 = scalar_lea.hbm %s8465_s3, 32768 }
  0x2b   : > { %p4718_p1 = scmp.ne.s32.totalorder %s8465_s3, %s4717_s19  ;;  %p4724_p10 = scmp.lt.u32.totalorder %s4717_s19, %s8465_s3 }
  0x2d   : > { %p4720_p4 = pnand %p4718_p1, %p4691_p13 }
  0x2f   : > { %p4721_p6 = pneg %p4720_p4 }
  0x31   : > { %p4726_p3 = pnand %p4724_p10, %p4721_p6 }
  0x33   : > { %4729 = shalt.err (!%p4726_p3)
}
  0x34   : > { %s4730_s11 = scalar_lea.vmem %s4986_s14, 32768  ;;  %p4738_p12 = scmp.lt.s32.totalorder %s4986_s14, %s4986_s14 }
  0x35   : > { %p4731_p5 = scmp.ne.s32.totalorder %s4986_s14, %s4730_s11  ;;  %p4739_p0 = scmp.lt.s32.totalorder %s4730_s11, %s4730_s11 }
  0x37   : > { %p4733_p7 = pnand %p4731_p5, %p4691_p13  ;;  %p4740_p1 = por %p4739_p0, %p4738_p12 }
  0x39   : > { %p4734_p9 = pneg %p4733_p7 }
  0x3b   : > { %p4741_p4 = pnand %p4740_p1, %p4734_p9 }
  0x3d   : > { %4744 = shalt.err (!%p4741_p4)
}
  0x3e   : > { %s4867_s8 = smov 256   ;;  %s4868_s15 = smov 16  }
  0x3f   : > { %4607 = dma.hbm_to_vmem [thread:$0]  (!%p4982_p11), %s8465_s3, 32768, %s4986_s14, [#allocation6], %s4867_s8, %s4867_s8, %s4868_s15  }
  0x40   : > { %s35_s18 = sadd.s32 1, %s4857_s25  ;;  %s72_s19 = sadd.s32 1, %s4849_s23 }
  0x41   : > { %p37_p13 = scmp.ge.s32.totalorder %s35_s18, 2  ;;  %p79_p6 = scmp.ne.s32.totalorder %s4849_s23, %s4845_s22 }
  0x42   : > { %p80_p10 = scmp.eq.s32.totalorder %s4861_s26, 0  ;;  %p4618_p3 = scmp.lt.s32.totalorder %s4861_s26, 2 }
  0x43   : > { %s8767_s18 = smov (%p37_p13, %s35_s18), 0  ;;  %p5053_p7 = por %p4955_p2, %p79_p6 }
  0x44   : > { %p81_p5 = por %p80_p10, %p79_p6  ;;  %s67_s12 = ssub.s32 %s4857_s25, %s8767_s18 }
  0x45   : > { %s8553_s20 = scalar_select %p5053_p7, 1, 0 }
  0x46   : > { %s266_s27 = sand.u32 1, %s4849_s23   ;;  %p70_p9 = scmp.eq.s32.totalorder %s67_s12, 0 }
  0x47   : > { %s4459_s14 = sshll.u32 %s266_s27, 8  ;;  %s4474_s28 = sshll.u32 %s4857_s25, 12 }
  0x48   : > { %s5062_s11 = scalar_select %p70_p9, %s4849_s23, %s72_s19  }
  0x49   : > { %s5067_s16 = scalar_lea.hbm %s8463_s1, %s4474_s28  ;;  %s270_s30 = scalar_lea.vmem [#allocation2], %s4459_s14 }
  0x4a   : > { %s278_s17 = sshll.u32 %s270_s30, 4  ;;  %p5071_p2 = pnand %p4618_p3, %p81_p5  ;;  %s5075_s17 = int_to_ptr.vmem [resolvable:$true] %s278_s17 }
  0x4b   : > { %s5077_s19 = scalar_lea.sflag [#allocation3], %s266_s27  ;;  %s4745_s12 = scalar_lea.hbm %s5067_s16, 4096 }
  0x4c   : > { %p4746_p11 = scmp.ne.s32.totalorder %s5067_s16, %s4745_s12  ;;  %p4747_p12 = pneg %p5071_p2 }
  0x4d   : > { %s4750_s8 = scalar_lea.hbm %s8463_s1, 8192  ;;  %p4751_p4 = scmp.lt.u32.totalorder %s5067_s16, %s8463_s1 }
  0x4e   : > { %p4748_p0 = pnand %p4747_p12, %p4746_p11  ;;  %p4752_p13 = scmp.lt.u32.totalorder %s4750_s8, %s4745_s12 }
  0x4f   : > { %p4754_p10 = scmp.lt.u32.totalorder %s4745_s12, %s5067_s16 }
  0x50   : > { %p4749_p1 = pneg %p4748_p0  ;;  %p4753_p6 = por %p4752_p13, %p4751_p4 }
  0x52   : > { %p4755_p3 = por %p4754_p10, %p4753_p6 }
  0x54   : > { %p4756_p5 = pnand %p4755_p3, %p4749_p1 }
  0x56   : > { %4759 = shalt.err (!%p4756_p5)
}
  0x57   : > { %s4760_s27 = scalar_lea.vmem %s5075_s17, 4096  ;;  %s4869_s14 = smov [#allocation2]  }
  0x58   : > { %p4761_p9 = scmp.ne.s32.totalorder %s5075_s17, %s4760_s27  ;;  %s4765_s28 = sshll.u32 %s4869_s14, 4  ;;  %s4766_s28 = int_to_ptr.vmem [resolvable:$false] %s4765_s28 }
  0x59   : > { %s4767_s15 = scalar_lea.vmem %s4766_s28, 8192  ;;  %p4768_p7 = scmp.lt.s32.totalorder %s5075_s17, %s4766_s28 }
  0x5a   : > { %p4763_p11 = pnand %p4761_p9, %p4747_p12  ;;  %p4769_p4 = scmp.lt.s32.totalorder %s4767_s15, %s4760_s27 }
  0x5c   : > { %p4764_p0 = pneg %p4763_p11  ;;  %p4770_p13 = por %p4769_p4, %p4768_p7 }
  0x5e   : > { %p4771_p6 = pnand %p4770_p13, %p4764_p0 }
  0x60   : > { %4774 = shalt.err (!%p4771_p6)
}
  0x61   : > { %s8555_s12 = smov 128   ;;  %290 = sbr.rel (%p4971_p8) target bundleno = 1600 (0x640), region = 44 }
  0x62   : > { %4611 = dma.hbm_to_vmem [thread:$0]  (!%p5071_p2), %s5067_s16, 4096, %s5075_s17, %s5077_s19, %s8555_s12, %s8555_s12, %s4866_s13  }
  0x68   : > { %s5111_s8 = sand.u32 1, %s4845_s22   ;;  %p8556_p7 = scmp.ne.s32.totalorder %s8548_s7, 0 }
  0x69   : > { %s4463_s30 = sshll.u32 %s5111_s8, 8  ;;  %s293_s27 = scalar_lea.sflag [#allocation3], %s5111_s8 }
  0x6a   : > { %s5115_s14 = scalar_lea.vmem [#allocation2], %s4463_s30 }
  0x6b   : > { %4828 = dma.done.wait (%p8556_p7), %s293_s27, 4096  }
  0x6c   : > { %4830 = vsyncadd (%p8556_p7), %s293_s27, 4294963200  ;;  %p8557_p2 = scmp.ne.s32.totalorder %s8546_s29, 0 }
  0x6e   : > { %4832 = dma.done.wait (%p8557_p2), [#allocation6], 36864  }
  0x6f   : > { %4834 = vsyncadd (%p8557_p2), [#allocation6], 4294930432  ;;  %p343_p8 = scmp.lt.s32.totalorder %s4853_s24, 1  ;;  %v4870_v0 = vmov 0.0|0.0   ;;  %v4871_v1 = vmov 0.0   ;;  %v4872_v2 = vmov 0  }
  0x70   : > { %4557 = vmatprep.subr.bf16.mxu1 %v4870_v0  ;;  %673 = vmatprep.mubr.f32.mxu0 %v4871_v1  ;;  %v994_v5 = vld [vmem:[%s5115_s14] sm:$0xff]  ;;  %v995_v7 = vld [vmem:[%s5115_s14 + $0x8] sm:$0xff]  ;;  %v996_v14 = vld [vmem:[%s5115_s14 + $0x10] sm:$0xff]  ;;  %s4466_s28 = sshll.u32 %s5111_s8, 10  ;;  %vm2290_vm1 = vcmask 130048   ;;  %s4873_s12 = smov 16  }
  0x71   : > { %s344_s9 = scalar_select %p343_p8, %s4853_s24, 1  ;;  %4688 = vset.pattern.permute.xlu1 %v4872_v2  ;;  %4687 = vset.pattern.permute.xlu0 %v4872_v2  ;;  %v5140_v10 = vpack.c.bf16 %v995_v7, %v994_v5  ;;  %v997_v16 = vld [vmem:[%s5115_s14 + $0x18] sm:$0xff]  ;;  %v998_v23 = vld [vmem:[%s5115_s14 + $0x20] sm:$0xff]  ;;  %v999_v25 = vld [vmem:[%s5115_s14 + $0x28] sm:$0xff]  ;;  %vm2451_vm2 = vcmask 392448   ;;  %vm2580_vm3 = vcmask 654848  }
  0x72   : > { %v5149_v19 = vpack.c.bf16 %v997_v16, %v996_v14  ;;  %v5161_v30 = vpack.c.bf16 %v999_v25, %v998_v23  ;;  %v1000_v32 = vld [vmem:[%s5115_s14 + $0x30] sm:$0xff]  ;;  %v1001_v34 = vld [vmem:[%s5115_s14 + $0x38] sm:$0xff]  ;;  %v1002_v41 = vld [vmem:[%s5115_s14 + $0x40] sm:$0xff]  ;;  %s5517_s15 = scalar_lea.vmem [#allocation8], %s4466_s28  ;;  %s4874_s30 = smov 32   ;;  %vm2709_vm4 = vcmask 917248  }
  0x73   : > { %s4475_s7 = sshll.u32 %s344_s9, 8  ;;  %4573 = vmatpush1.bf16.msra.mxu1 %v5140_v10  ;;  %v5171_v39 = vpack.c.bf16 %v1001_v34, %v1000_v32  ;;  %v1003_v43 = vld [vmem:[%s5115_s14 + $0x48] sm:$0xff]  ;;  %v1004_v50 = vld [vmem:[%s5115_s14 + $0x50] sm:$0xff]  ;;  %v1005_v52 = vld [vmem:[%s5115_s14 + $0x58] sm:$0xff]  ;;  %s4875_s27 = smov 48   ;;  %vm3478_vm5 = vcmask 261248  }
  0x74   : > { %s5132_s13 = scalar_lea.vmem %s8462_s0, %s4475_s7  ;;  %4558 = vmatprep.subr.bf16.mxu1 %v4870_v0  ;;  %v5181_v48 = vpack.c.bf16 %v1003_v43, %v1002_v41  ;;  %v5191_v57 = vpack.c.bf16 %v1005_v52, %v1004_v50  ;;  %v1006_v59 = vld [vmem:[%s5115_s14 + $0x60] sm:$0xff]  ;;  %v1007_v61 = vld [vmem:[%s5115_s14 + $0x68] sm:$0xff]  ;;  %v1017_v34 = vld [vmem:[%s5115_s14 + $0xb8] sm:$0xff]  ;;  %s4876_s9 = smov 64   ;;  %vm3607_vm6 = vcmask 523648   ;;  %vm3736_vm7 = vcmask 786048  }
  0x75   : > { %v354_v3 = vld [vmem:[%s5132_s13 + $0x8] sm:$0xff]  ;;  %v356_v4 = vld [vmem:[%s5132_s13 + $0x18] sm:$0xff]  ;;  %v353_v8 = vld [vmem:[%s5132_s13] sm:$0xff]  ;;  %s4877_s7 = smov 80   ;;  %s4878_s10 = smov 96   ;;  %vm3865_vm8 = vcmask 1048448  }
  0x76   : > { %v4477_v6 = vpack.c.bf16 %v356_v4, %v354_v3  ;;  %v355_v9 = vld [vmem:[%s5132_s13 + $0x10] sm:$0xff]  ;;  %v358_v12 = vld [vmem:[%s5132_s13 + $0x28] sm:$0xff]  ;;  %v360_v13 = vld [vmem:[%s5132_s13 + $0x38] sm:$0xff]  ;;  %v5201_v4 = vpack.c.bf16 %v1007_v61, %v1006_v59  ;;  %s4879_s29 = smov 112   ;;  %s4330_s16 = sshll.u32 %s5517_s15, 4  ;;  %s8407_s16 = int_to_ptr.vmem [resolvable:$true] %s4330_s16 }
  0x77   : > { %v4479_v11 = vpack.c.bf16 %v355_v9, %v353_v8  ;;  %v4481_v15 = vpack.c.bf16 %v360_v13, %v358_v12  ;;  %v357_v17 = vld [vmem:[%s5132_s13 + $0x20] sm:$0xff]  ;;  %v359_v18 = vld [vmem:[%s5132_s13 + $0x30] sm:$0xff]  ;;  %v362_v21 = vld [vmem:[%s5132_s13 + $0x48] sm:$0xff]  ;;  %4574 = vmatpush1.bf16.msra.mxu1 %v5149_v19  ;;  %s4775_s28 = scalar_lea.vmem %s8407_s16, 16384  ;;  %p8757_p1 = scmp.ne.s32.totalorder %s8553_s20, 0 }
  0x78   : > { %4478 = vmatprep.subr.bf16.mxu0 %v4477_v6  ;;  %v4483_v20 = vpack.c.bf16 %v359_v18, %v357_v17  ;;  %v364_v22 = vld [vmem:[%s5132_s13 + $0x58] sm:$0xff]  ;;  %v361_v26 = vld [vmem:[%s5132_s13 + $0x40] sm:$0xff]  ;;  %v363_v27 = vld [vmem:[%s5132_s13 + $0x50] sm:$0xff]  ;;  %4559 = vmatprep.subr.bf16.mxu1 %v4870_v0  ;;  %p4776_p12 = scmp.ne.s32.totalorder %s8407_s16, %s4775_s28 }
  0x79   : > { %4480 = vmatpush1.bf16.msra.mxu0 %v4479_v11  ;;  %v4485_v24 = vpack.c.bf16 %v364_v22, %v362_v21  ;;  %v366_v28 = vld [vmem:[%s5132_s13 + $0x68] sm:$0xff]  ;;  %v368_v29 = vld [vmem:[%s5132_s13 + $0x78] sm:$0xff]  ;;  %v4487_v31 = vpack.c.bf16 %v363_v27, %v361_v26  ;;  %v365_v35 = vld [vmem:[%s5132_s13 + $0x60] sm:$0xff] }
  0x7a   : > { %4482 = vmatprep.subr.bf16.mxu0 %v4481_v15  ;;  %v4489_v33 = vpack.c.bf16 %v368_v29, %v366_v28  ;;  %v367_v36 = vld [vmem:[%s5132_s13 + $0x70] sm:$0xff]  ;;  %v370_v37 = vld [vmem:[%s5132_s13 + $0x88] sm:$0xff]  ;;  %v372_v38 = vld [vmem:[%s5132_s13 + $0x98] sm:$0xff]  ;;  %p4777_p10 = pnand %p4776_p12, %p8757_p1 }
  0x7b   : > { %4575 = vmatpush1.bf16.msra.mxu1 %v5161_v30  ;;  %v4491_v40 = vpack.c.bf16 %v367_v36, %v365_v35  ;;  %v4493_v42 = vpack.c.bf16 %v372_v38, %v370_v37  ;;  %v369_v44 = vld [vmem:[%s5132_s13 + $0x80] sm:$0xff]  ;;  %v371_v45 = vld [vmem:[%s5132_s13 + $0x90] sm:$0xff]  ;;  %v374_v46 = vld [vmem:[%s5132_s13 + $0xa8] sm:$0xff] }
  0x7c   : > { %4560 = vmatprep.subr.bf16.mxu1 %v4870_v0  ;;  %v376_v47 = vld [vmem:[%s5132_s13 + $0xb8] sm:$0xff]  ;;  %v4495_v49 = vpack.c.bf16 %v371_v45, %v369_v44  ;;  %v373_v53 = vld [vmem:[%s5132_s13 + $0xa0] sm:$0xff]  ;;  %v375_v54 = vld [vmem:[%s5132_s13 + $0xb0] sm:$0xff]  ;;  %p4778_p3 = pneg %p4777_p10 }
  0x7d   : > { %4484 = vmatpush1.bf16.msra.mxu0 %v4483_v20  ;;  %v4497_v51 = vpack.c.bf16 %v376_v47, %v374_v46  ;;  %v378_v55 = vld [vmem:[%s5132_s13 + $0xc8] sm:$0xff]  ;;  %v380_v56 = vld [vmem:[%s5132_s13 + $0xd8] sm:$0xff]  ;;  %v4499_v58 = vpack.c.bf16 %v375_v54, %v373_v53  ;;  %v377_v62 = vld [vmem:[%s5132_s13 + $0xc0] sm:$0xff] }
  0x7e   : > { %4486 = vmatprep.subr.bf16.mxu0 %v4485_v24  ;;  %v4501_v60 = vpack.c.bf16 %v380_v56, %v378_v55  ;;  %v379_v63 = vld [vmem:[%s5132_s13 + $0xd0] sm:$0xff]  ;;  %v382_v2 = vld [vmem:[%s5132_s13 + $0xe8] sm:$0xff]  ;;  %v384_v3 = vld [vmem:[%s5132_s13 + $0xf8] sm:$0xff] }
  0x7f   : > { %4576 = vmatpush1.bf16.msra.mxu1 %v5171_v39  ;;  %v4503_v5 = vpack.c.bf16 %v379_v63, %v377_v62  ;;  %v1008_v6 = vld [vmem:[%s5115_s14 + $0x70] sm:$0xff]  ;;  %v1131_v7 = vld [vmem:[#allocation7 + $0x348] sm:$0xff]  ;;  %v4505_v8 = vpack.c.bf16 %v384_v3, %v382_v2  ;;  %v1009_v9 = vld [vmem:[%s5115_s14 + $0x78] sm:$0xff] }
  0x80   : > { %4561 = vmatprep.subr.bf16.mxu1 %v4870_v0  ;;  %v381_v11 = vld [vmem:[%s5132_s13 + $0xe0] sm:$0xff]  ;;  %v383_v12 = vld [vmem:[%s5132_s13 + $0xf0] sm:$0xff]  ;;  %1606 = vmatprep.mubr.f32.mxu1 %v1131_v7  ;;  %v5209_v13 = vpack.c.bf16 %v1009_v9, %v1008_v6  ;;  %v1011_v16 = vld [vmem:[%s5115_s14 + $0x88] sm:$0xff]  ;;  %s4476_s13 = sshll.u32 %s4853_s24, 14  ;;  %s4315_s24 = scalar_lea.sflag [#allocation4], %s5111_s8 }
  0x81   : > { %4488 = vmatpush1.bf16.msra.mxu0 %v4487_v31  ;;  %v4507_v14 = vpack.c.bf16 %v383_v12, %v381_v11  ;;  %v1010_v15 = vld [vmem:[%s5115_s14 + $0x80] sm:$0xff]  ;;  %v1012_v20 = vld [vmem:[%s5115_s14 + $0x90] sm:$0xff]  ;;  %v1013_v21 = vld [vmem:[%s5115_s14 + $0x98] sm:$0xff] }
  0x82   : > { %4490 = vmatprep.subr.bf16.mxu0 %v4489_v33  ;;  %v385_v17 = vld [vmem:[#allocation5] sm:$0xff]  ;;  %v5215_v18 = vpack.c.bf16 %v1011_v16, %v1010_v15  ;;  %v419_v22 = vld [vmem:[%s8466_s4 + $0x10] sm:$0xff]  ;;  %v386_v24 = vld [vmem:[#allocation5 + $0x8] sm:$0xff]  ;;  %v5229_v25 = vpack.c.bf16 %v1013_v21, %v1012_v20 }
  0x83   : > { %4577 = vmatpush1.bf16.msra.mxu1 %v5181_v48  ;;  %461 = vperm.xlu1 %4688, %v419_v22   ;;  %v417_v23 = vld [vmem:[%s8466_s4] sm:$0xff]  ;;  %v420_v26 = vld [vmem:[%s8466_s4 + $0x18] sm:$0xff]  ;;  %v1015_v28 = vld [vmem:[%s5115_s14 + $0xa8] sm:$0xff] }
  0x84   : > { %4562 = vmatprep.subr.bf16.mxu1 %v4870_v0  ;;  %v1014_v27 = vld [vmem:[%s5115_s14 + $0xa0] sm:$0xff]  ;;  %451 = vperm.xlu0 %4687, %v417_v23   ;;  %v418_v29 = vld [vmem:[%s8466_s4 + $0x8] sm:$0xff]  ;;  %v1016_v33 = vld [vmem:[%s5115_s14 + $0xb0] sm:$0xff] }
  0x85   : > { %4492 = vmatpush1.bf16.msra.mxu0 %v4491_v40  ;;  %v5244_v31 = vpack.c.bf16 %v1015_v28, %v1014_v27  ;;  %v422_v32 = vld [vmem:[%s8466_s4 + $0x28] sm:$0xff]  ;;  %v421_v35 = vld [vmem:[%s8466_s4 + $0x20] sm:$0xff]  ;;  %v388_v36 = vld [vmem:[#allocation5 + $0x18] sm:$0xff]  ;;  %v5259_v37 = vpack.c.bf16 %v1017_v34, %v1016_v33 }
  0x86   : > { %4494 = vmatprep.subr.bf16.mxu0 %v4493_v42  ;;  %v1018_v38 = vld [vmem:[%s5115_s14 + $0xc0] sm:$0xff]  ;;  %v1019_v40 = vld [vmem:[%s5115_s14 + $0xc8] sm:$0xff]  ;;  %v423_v41 = vld [vmem:[%s8466_s4 + $0x30] sm:$0xff] }
  0x87   : > { %4578 = vmatpush1.bf16.msra.mxu1 %v5191_v57  ;;  %466 = vperm.xlu1 %4688, %v420_v26   ;;  %v389_v42 = vld [vmem:[#allocation5 + $0x20] sm:$0xff]  ;;  %v5274_v43 = vpack.c.bf16 %v1019_v40, %v1018_v38  ;;  %v1020_v44 = vld [vmem:[%s5115_s14 + $0xd0] sm:$0xff]  ;;  %v1021_v45 = vld [vmem:[%s5115_s14 + $0xd8] sm:$0xff] }
  0x88   : > { %4563 = vmatprep.subr.bf16.mxu1 %v4870_v0  ;;  %456 = vperm.xlu0 %4687, %v418_v29   ;;  %v425_v46 = vld [vmem:[%s8466_s4 + $0x40] sm:$0xff]  ;;  %v390_v47 = vld [vmem:[#allocation5 + $0x28] sm:$0xff]  ;;  %v427_v52 = vld [vmem:[%s8466_s4 + $0x50] sm:$0xff] }
  0x89   : > { %4496 = vmatpush1.bf16.msra.mxu0 %v4495_v49  ;;  %v5289_v49 = vpack.c.bf16 %v1021_v45, %v1020_v44  ;;  %v1022_v50 = vld [vmem:[%s5115_s14 + $0xe0] sm:$0xff]  ;;  %v391_v53 = vld [vmem:[#allocation5 + $0x30] sm:$0xff]  ;;  %v1025_v56 = vld [vmem:[%s5115_s14 + $0xf8] sm:$0xff] }
  0x8a   : > { %4498 = vmatprep.subr.bf16.mxu0 %v4497_v51  ;;  %v1023_v51 = vld [vmem:[%s5115_s14 + $0xe8] sm:$0xff]  ;;  %v1024_v55 = vld [vmem:[%s5115_s14 + $0xf0] sm:$0xff]  ;;  %v392_v59 = vld [vmem:[#allocation5 + $0x38] sm:$0xff]  ;;  %s8405_s14 = scalar_lea.hbm %s8468_s6, %s4476_s13 }
  0x8b   : > { %4579 = vmatpush1.bf16.msra.mxu1 %v5201_v4  ;;  %476 = vperm.xlu1 %4688, %v422_v32   ;;  %v5304_v54 = vpack.c.bf16 %v1023_v51, %v1022_v50  ;;  %v431_v61 = vld [vmem:[%s8466_s4 + $0x70] sm:$0xff]  ;;  %v1130_v62 = vld [vmem:[#allocation7 + $0x340] sm:$0xff]  ;;  %v1133_v2 = vld [vmem:[#allocation7 + $0x358] sm:$0xff] }
  0x8c   : > { %4564 = vmatprep.subr.bf16.mxu1 %v4870_v0  ;;  %471 = vperm.xlu0 %4687, %v421_v35   ;;  %v393_v63 = vld [vmem:[#allocation5 + $0x40] sm:$0xff]  ;;  %v434_v3 = vld [vmem:[%s8466_s4 + $0x88] sm:$0xff]  ;;  %v435_v9 = vld [vmem:[%s8466_s4 + $0x90] sm:$0xff] }
  0x8d   : > { %4500 = vmatpush1.bf16.msra.mxu0 %v4499_v58  ;;  %v429_v58 = vld [vmem:[%s8466_s4 + $0x60] sm:$0xff]  ;;  %v394_v6 = vld [vmem:[#allocation5 + $0x48] sm:$0xff]  ;;  %v395_v12 = vld [vmem:[#allocation5 + $0x50] sm:$0xff] }
  0x8e   : > { %4502 = vmatprep.subr.bf16.mxu0 %v4501_v60  ;;  %v5319_v60 = vpack.c.bf16 %v1025_v56, %v1024_v55  ;;  %v1135_v7 = vld [vmem:[#allocation7 + $0x368] sm:$0xff]  ;;  %v1134_v11 = vld [vmem:[#allocation7 + $0x360] sm:$0xff]  ;;  %v1136_v16 = vld [vmem:[#allocation7 + $0x370] sm:$0xff] }
  0x8f   : > { %4580 = vmatpush1.bf16.msra.mxu1 %v5209_v13  ;;  %v437_v15 = vld [vmem:[%s8466_s4 + $0xa0] sm:$0xff]  ;;  %v440_v20 = vld [vmem:[%s8466_s4 + $0xb8] sm:$0xff]  ;;  %v439_v21 = vld [vmem:[%s8466_s4 + $0xb0] sm:$0xff] }
  0x90   : > { %4565 = vmatprep.subr.bf16.mxu1 %v4870_v0  ;;  %481 = vperm.xlu0 %4687, %v423_v41   ;;  %v1138_v22 = vld [vmem:[#allocation7 + $0x380] sm:$0xff]  ;;  %v1140_v27 = vld [vmem:[#allocation7 + $0x390] sm:$0xff]  ;;  %v398_v28 = vld [vmem:[#allocation5 + $0x68] sm:$0xff] }
  0x91   : > { %4504 = vmatpush1.bf16.msra.mxu0 %v4503_v5  ;;  %v1132_v5 = vld [vmem:[#allocation7 + $0x350] sm:$0xff]  ;;  %v397_v23 = vld [vmem:[#allocation5 + $0x60] sm:$0xff]  ;;  %v1143_v29 = vld [vmem:[#allocation7 + $0x3a8] sm:$0xff] }
  0x92   : > { %4506 = vmatprep.subr.bf16.mxu0 %v4505_v8  ;;  %v436_v8 = vld [vmem:[%s8466_s4 + $0x98] sm:$0xff]  ;;  %v441_v26 = vld [vmem:[%s8466_s4 + $0xc0] sm:$0xff]  ;;  %v399_v33 = vld [vmem:[#allocation5 + $0x70] sm:$0xff] }
  0x93   : > { %4581 = vmatpush1.bf16.msra.mxu1 %v5215_v18  ;;  %v1142_v32 = vld [vmem:[#allocation7 + $0x3a0] sm:$0xff]  ;;  %v1145_v34 = vld [vmem:[#allocation7 + $0x3b8] sm:$0xff]  ;;  %v446_v35 = vld [vmem:[%s8466_s4 + $0xe8] sm:$0xff] }
  0x94   : > { %4566 = vmatprep.subr.bf16.mxu1 %v4870_v0  ;;  %491 = vperm.xlu0 %4687, %v425_v46   ;;  %v1147_v38 = vld [vmem:[#allocation7 + $0x3c8] sm:$0xff]  ;;  %v448_v40 = vld [vmem:[%s8466_s4 + $0xf8] sm:$0xff]  ;;  %v447_v41 = vld [vmem:[%s8466_s4 + $0xf0] sm:$0xff] }
  0x95   : > { %4508 = vmatpush1.bf16.msra.mxu0 %v4507_v14  ;;  %v438_v14 = vld [vmem:[%s8466_s4 + $0xa8] sm:$0xff]  ;;  %v2002_v44 = vld [vmem:[%s8467_s5] sm:$0xff]  ;;  %v1148_v45 = vld [vmem:[#allocation7 + $0x3d0] sm:$0xff] }
  0x96   : > { %4509 = vmatprep.subr.bf16.mxu0 %v4870_v0  ;;  %v402_v46 = vld [vmem:[#allocation5 + $0x88] sm:$0xff]  ;;  %v1150_v50 = vld [vmem:[#allocation7 + $0x3e0] sm:$0xff]  ;;  %v403_v51 = vld [vmem:[#allocation5 + $0x90] sm:$0xff] }
  0x97   : > { %4582 = vmatpush1.bf16.msra.mxu1 %v5229_v25  ;;  %v404_v55 = vld [vmem:[#allocation5 + $0x98] sm:$0xff]  ;;  %v1155_v56 = vld [vmem:[#allocation7 + $0x408] sm:$0xff] }
  0x98   : > { %674 = vmatmul.mubr.f32.vlgmr.msra.gmra.mrb[0].mxu0 %v385_v17  ;;  %4567 = vmatprep.subr.bf16.mxu1 %v4870_v0  ;;  %v396_v17 = vld [vmem:[#allocation5 + $0x58] sm:$0xff] }
  0x99   : > { %679 = vmatprep.mubr.f32.mxu0 %v4871_v1  ;;  %4511 = vmatpush1.bf16.msra.mxu0 %v5140_v10  ;;  %v387_v10 = vld [vmem:[#allocation5 + $0x10] sm:$0xff] }
  0x9a   : > { %4512 = vmatprep.subr.bf16.mxu0 %v4870_v0  ;;  %501 = vperm.xlu0 %4687, %v427_v52   ;;  %v1153_v52 = vld [vmem:[#allocation7 + $0x3f8] sm:$0xff] }
  0x9b   : > { %4583 = vmatpush1.bf16.msra.mxu1 %v5244_v31 }
  0x9c   : > { %680 = vmatmul.mubr.f32.gmra.mrb[2].mxu0 %v386_v24  ;;  %4568 = vmatprep.subr.bf16.mxu1 %v4870_v0  ;;  %v1141_v24 = vld [vmem:[#allocation7 + $0x398] sm:$0xff] }
  0x9d   : > { %685 = vmatprep.mubr.f32.mxu0 %v4871_v1  ;;  %4514 = vmatpush1.bf16.msra.mxu0 %v5149_v19  ;;  %v424_v19 = vld [vmem:[%s8466_s4 + $0x38] sm:$0xff] }
  0x9e   : > { %4515 = vmatprep.subr.bf16.mxu0 %v4870_v0  ;;  %486 = vperm.xlu1 %4688, %v424_v19   ;;  %v400_v19 = vld [vmem:[#allocation5 + $0x78] sm:$0xff] }
  0x9f   : > { %4584 = vmatpush1.bf16.msra.mxu1 %v5259_v37  ;;  %511 = vperm.xlu0 %4687, %v429_v58   ;;  %v2009_v58 = vld [vmem:[%s8467_s5 + $0x38] sm:$0xff] }
  0xa0   : > { %686 = vmatmul.mubr.f32.gmra.mrb[4].mxu0 %v387_v10  ;;  %4569 = vmatprep.subr.bf16.mxu1 %v4870_v0  ;;  %v444_v10 = vld [vmem:[%s8466_s4 + $0xd8] sm:$0xff] }
  0xa1   : > { %691 = vmatprep.mubr.f32.mxu0 %v4871_v1  ;;  %4517 = vmatpush1.bf16.msra.mxu0 %v5161_v30  ;;  %v426_v30 = vld [vmem:[%s8466_s4 + $0x48] sm:$0xff] }
  0xa2   : > { %4518 = vmatprep.subr.bf16.mxu0 %v4870_v0  ;;  %496 = vperm.xlu1 %4688, %v426_v30   ;;  %v1149_v30 = vld [vmem:[#allocation7 + $0x3d8] sm:$0xff] }
  0xa3   : > { %4585 = vmatpush1.bf16.msra.mxu1 %v5274_v43  ;;  %521 = vperm.xlu0 %4687, %v431_v61   ;;  %v1157_v61 = vld [vmem:[#allocation7 + $0x418] sm:$0xff] }
  0xa4   : > { %692 = vmatmul.mubr.f32.gmra.mrb[6].mxu0 %v388_v36  ;;  %4570 = vmatprep.subr.bf16.mxu1 %v4870_v0  ;;  %v445_v36 = vld [vmem:[%s8466_s4 + $0xe0] sm:$0xff] }
  0xa5   : > { %697 = vmatprep.mubr.f32.mxu0 %v4871_v1  ;;  %4520 = vmatpush1.bf16.msra.mxu0 %v5171_v39  ;;  %v428_v39 = vld [vmem:[%s8466_s4 + $0x58] sm:$0xff] }
  0xa6   : > { %4521 = vmatprep.subr.bf16.mxu0 %v4870_v0  ;;  %506 = vperm.xlu1 %4688, %v428_v39   ;;  %v2004_v39 = vld [vmem:[%s8467_s5 + $0x10] sm:$0xff] }
  0xa7   : > { %4586 = vmatpush1.bf16.msra.mxu1 %v5289_v49 }
  0xa8   : > { %698 = vmatmul.mubr.f32.gmra.mrb[8].mxu0 %v389_v42  ;;  %4571 = vmatprep.subr.bf16.mxu1 %v4870_v0  ;;  %v1146_v42 = vld [vmem:[#allocation7 + $0x3c0] sm:$0xff] }
  0xa9   : > { %703 = vmatprep.mubr.f32.mxu0 %v4871_v1  ;;  %4523 = vmatpush1.bf16.msra.mxu0 %v5181_v48  ;;  %v430_v48 = vld [vmem:[%s8466_s4 + $0x68] sm:$0xff] }
  0xaa   : > { %4524 = vmatprep.subr.bf16.mxu0 %v4870_v0  ;;  %516 = vperm.xlu1 %4688, %v430_v48   ;;  %v1152_v48 = vld [vmem:[#allocation7 + $0x3f0] sm:$0xff] }
  0xab   : > { %4587 = vmatpush1.bf16.msra.mxu1 %v5304_v54 }
  0xac   : > { %704 = vmatmul.mubr.f32.gmra.mrb[10].mxu0 %v390_v47  ;;  %4572 = vmatprep.subr.bf16.mxu1 %v4870_v0  ;;  %v1151_v47 = vld [vmem:[#allocation7 + $0x3e8] sm:$0xff] }
  0xad   : > { %709 = vmatprep.mubr.f32.mxu0 %v4871_v1  ;;  %4526 = vmatpush1.bf16.msra.mxu0 %v5191_v57  ;;  %v432_v57 = vld [vmem:[%s8466_s4 + $0x78] sm:$0xff] }
  0xae   : > { %4527 = vmatprep.subr.bf16.mxu0 %v4870_v0  ;;  %526 = vperm.xlu1 %4688, %v432_v57   ;;  %v405_v57 = vld [vmem:[#allocation5 + $0xa0] sm:$0xff] }
  0xaf   : > { %4588 = vmatpush1.bf16.msra.mxu1 %v5319_v60 }
  0xb0   : > { %710 = vmatmul.mubr.f32.gmra.mrb[12].mxu0 %v391_v53  ;;  %v2007_v53 = vld [vmem:[%s8467_s5 + $0x28] sm:$0xff] }
  0xb1   : > { %715 = vmatprep.mubr.f32.mxu0 %v4871_v1  ;;  %4529 = vmatpush1.bf16.msra.mxu0 %v5201_v4  ;;  %v433_v4 = vld [vmem:[%s8466_s4 + $0x80] sm:$0xff] }
  0xb2   : > { %4530 = vmatprep.subr.bf16.mxu0 %v4870_v0  ;;  %1607 = vmatmul.mubr.f32.vlgmr.msra.gmra.mrb[0].mxu1 %v1130_v62  ;;  %v2011_v62 = vld [vmem:[%s8467_s5 + $0x48] sm:$0xff] }
  0xb3   : > { %1611 = vmatprep.mubr.f32.mxu1 %v1133_v2  ;;  %536 = vperm.xlu1 %4688, %v434_v3   ;;  %v1156_v2 = vld [vmem:[#allocation7 + $0x410] sm:$0xff]  ;;  %v406_v3 = vld [vmem:[#allocation5 + $0xa8] sm:$0xff] }
  0xb4   : > { %716 = vmatmul.mubr.f32.gmra.mrb[14].mxu0 %v392_v59  ;;  %531 = vperm.xlu0 %4687, %v433_v4   ;;  %v2008_v59 = vld [vmem:[%s8467_s5 + $0x30] sm:$0xff]  ;;  %v1159_v4 = vld [vmem:[#allocation7 + $0x428] sm:$0xff] }
  0xb5   : > { %721 = vmatprep.mubr.f32.mxu0 %v4871_v1  ;;  %4532 = vmatpush1.bf16.msra.mxu0 %v5209_v13  ;;  %v1137_v13 = vld [vmem:[#allocation7 + $0x378] sm:$0xff] }
  0xb6   : > { %4533 = vmatprep.subr.bf16.mxu0 %v4870_v0  ;;  %1612 = vmatmul.mubr.f32.gmra.mrb[2].mxu1 %v1132_v5  ;;  %v2013_v5 = vld [vmem:[%s8467_s5 + $0x58] sm:$0xff] }
  0xb7   : > { %1616 = vmatprep.mubr.f32.mxu1 %v1135_v7  ;;  %546 = vperm.xlu1 %4688, %v436_v8   ;;  %v1158_v7 = vld [vmem:[#allocation7 + $0x420] sm:$0xff]  ;;  %v407_v8 = vld [vmem:[#allocation5 + $0xb0] sm:$0xff] }
  0xb8   : > { %722 = vmatmul.mubr.f32.gmra.mrb[16].mxu0 %v393_v63  ;;  %541 = vperm.xlu0 %4687, %v435_v9   ;;  %v2010_v63 = vld [vmem:[%s8467_s5 + $0x40] sm:$0xff]  ;;  %v1161_v9 = vld [vmem:[#allocation7 + $0x438] sm:$0xff] }
  0xb9   : > { %727 = vmatprep.mubr.f32.mxu0 %v4871_v1  ;;  %4535 = vmatpush1.bf16.msra.mxu0 %v5215_v18  ;;  %v1139_v18 = vld [vmem:[#allocation7 + $0x388] sm:$0xff] }
  0xba   : > { %4536 = vmatprep.subr.bf16.mxu0 %v4870_v0  ;;  %1617 = vmatmul.mubr.f32.gmra.mrb[4].mxu1 %v1134_v11  ;;  %v2015_v11 = vld [vmem:[%s8467_s5 + $0x68] sm:$0xff] }
  0xbb   : > { %1621 = vmatprep.mubr.f32.mxu1 %v1137_v13  ;;  %556 = vperm.xlu1 %4688, %v438_v14   ;;  %v1160_v13 = vld [vmem:[#allocation7 + $0x430] sm:$0xff]  ;;  %v408_v14 = vld [vmem:[#allocation5 + $0xb8] sm:$0xff] }
  0xbc   : > { %728 = vmatmul.mubr.f32.gmra.mrb[18].mxu0 %v394_v6  ;;  %551 = vperm.xlu0 %4687, %v437_v15   ;;  %v2012_v6 = vld [vmem:[%s8467_s5 + $0x50] sm:$0xff]  ;;  %v1163_v15 = vld [vmem:[#allocation7 + $0x448] sm:$0xff] }
  0xbd   : > { %733 = vmatprep.mubr.f32.mxu0 %v4871_v1  ;;  %4538 = vmatpush1.bf16.msra.mxu0 %v5229_v25  ;;  %v442_v25 = vld [vmem:[%s8466_s4 + $0xc8] sm:$0xff] }
  0xbe   : > { %4539 = vmatprep.subr.bf16.mxu0 %v4870_v0  ;;  %1622 = vmatmul.mubr.f32.gmra.mrb[6].mxu1 %v1136_v16  ;;  %v2017_v16 = vld [vmem:[%s8467_s5 + $0x78] sm:$0xff] }
  0xbf   : > { %1626 = vmatprep.mubr.f32.mxu1 %v1139_v18  ;;  %566 = vperm.xlu1 %4688, %v440_v20   ;;  %v1162_v18 = vld [vmem:[#allocation7 + $0x440] sm:$0xff] }
  0xc0   : > { %734 = vmatmul.mubr.f32.gmra.mrb[20].mxu0 %v395_v12  ;;  %561 = vperm.xlu0 %4687, %v439_v21   ;;  %v2014_v12 = vld [vmem:[%s8467_s5 + $0x60] sm:$0xff]  ;;  %v1165_v21 = vld [vmem:[#allocation7 + $0x458] sm:$0xff] }
  0xc1   : > { %739 = vmatprep.mubr.f32.mxu0 %v4871_v1  ;;  %4541 = vmatpush1.bf16.msra.mxu0 %v5244_v31  ;;  %v443_v31 = vld [vmem:[%s8466_s4 + $0xd0] sm:$0xff]  ;;  %v409_v20 = vld [vmem:[#allocation5 + $0xc0] sm:$0xff] }
  0xc2   : > { %4542 = vmatprep.subr.bf16.mxu0 %v4870_v0  ;;  %1627 = vmatmul.mubr.f32.gmra.mrb[8].mxu1 %v1138_v22  ;;  %v2019_v22 = vld [vmem:[%s8467_s5 + $0x88] sm:$0xff] }
  0xc3   : > { %1631 = vmatprep.mubr.f32.mxu1 %v1141_v24  ;;  %576 = vperm.xlu1 %4688, %v442_v25   ;;  %v1164_v24 = vld [vmem:[#allocation7 + $0x450] sm:$0xff]  ;;  %v410_v25 = vld [vmem:[#allocation5 + $0xc8] sm:$0xff] }
  0xc4   : > { %740 = vmatmul.mubr.f32.gmra.mrb[22].mxu0 %v396_v17  ;;  %571 = vperm.xlu0 %4687, %v441_v26   ;;  %v2016_v17 = vld [vmem:[%s8467_s5 + $0x70] sm:$0xff]  ;;  %v1167_v26 = vld [vmem:[#allocation7 + $0x468] sm:$0xff] }
  0xc5   : > { %745 = vmatprep.mubr.f32.mxu0 %v4871_v1  ;;  %4544 = vmatpush1.bf16.msra.mxu0 %v5259_v37  ;;  %v1144_v37 = vld [vmem:[#allocation7 + $0x3b0] sm:$0xff] }
  0xc6   : > { %4545 = vmatprep.subr.bf16.mxu0 %v4870_v0  ;;  %1632 = vmatmul.mubr.f32.gmra.mrb[10].mxu1 %v1140_v27  ;;  %v2021_v27 = vld [vmem:[%s8467_s5 + $0x98] sm:$0xff] }
  0xc7   : > { %1636 = vmatprep.mubr.f32.mxu1 %v1143_v29  ;;  %586 = vperm.xlu1 %4688, %v444_v10   ;;  %v1166_v29 = vld [vmem:[#allocation7 + $0x460] sm:$0xff]  ;;  %v411_v10 = vld [vmem:[#allocation5 + $0xd0] sm:$0xff] }
  0xc8   : > { %746 = vmatmul.mubr.f32.gmra.mrb[24].mxu0 %v397_v23  ;;  %581 = vperm.xlu0 %4687, %v443_v31   ;;  %v2018_v23 = vld [vmem:[%s8467_s5 + $0x80] sm:$0xff]  ;;  %v1169_v31 = vld [vmem:[#allocation7 + $0x478] sm:$0xff] }
  0xc9   : > { %751 = vmatprep.mubr.f32.mxu0 %v4871_v1  ;;  %4547 = vmatpush1.bf16.msra.mxu0 %v5274_v43  ;;  %v401_v43 = vld [vmem:[#allocation5 + $0x80] sm:$0xff] }
  0xca   : > { %4548 = vmatprep.subr.bf16.mxu0 %v4870_v0  ;;  %1637 = vmatmul.mubr.f32.gmra.mrb[12].mxu1 %v1142_v32  ;;  %v2023_v32 = vld [vmem:[%s8467_s5 + $0xa8] sm:$0xff] }
  0xcb   : > { %1641 = vmatprep.mubr.f32.mxu1 %v1145_v34  ;;  %596 = vperm.xlu1 %4688, %v446_v35   ;;  %v1168_v34 = vld [vmem:[#allocation7 + $0x470] sm:$0xff]  ;;  %v412_v35 = vld [vmem:[#allocation5 + $0xd8] sm:$0xff] }
  0xcc   : > { %752 = vmatmul.mubr.f32.gmra.mrb[26].mxu0 %v398_v28  ;;  %591 = vperm.xlu0 %4687, %v445_v36   ;;  %v2020_v28 = vld [vmem:[%s8467_s5 + $0x90] sm:$0xff]  ;;  %v1171_v36 = vld [vmem:[#allocation7 + $0x488] sm:$0xff] }
  0xcd   : > { %757 = vmatprep.mubr.f32.mxu0 %v4871_v1  ;;  %4550 = vmatpush1.bf16.msra.mxu0 %v5289_v49  ;;  %v2005_v49 = vld [vmem:[%s8467_s5 + $0x18] sm:$0xff] }
  0xce   : > { %4551 = vmatprep.subr.bf16.mxu0 %v4870_v0  ;;  %1642 = vmatmul.mubr.f32.gmra.mrb[14].mxu1 %v1144_v37  ;;  %v2025_v37 = vld [vmem:[%s8467_s5 + $0xb8] sm:$0xff] }
  0xcf   : > { %1646 = vmatprep.mubr.f32.mxu1 %v1147_v38  ;;  %606 = vperm.xlu1 %4688, %v448_v40   ;;  %v1170_v38 = vld [vmem:[#allocation7 + $0x480] sm:$0xff] }
  0xd0   : > { %758 = vmatmul.mubr.f32.gmra.mrb[28].mxu0 %v399_v33  ;;  %601 = vperm.xlu0 %4687, %v447_v41   ;;  %v2022_v33 = vld [vmem:[%s8467_s5 + $0xa0] sm:$0xff]  ;;  %v1173_v41 = vld [vmem:[#allocation7 + $0x498] sm:$0xff] }
  0xd1   : > { %763 = vmatprep.mubr.f32.mxu0 %v4871_v1  ;;  %4553 = vmatpush1.bf16.msra.mxu0 %v5304_v54  ;;  %v2006_v54 = vld [vmem:[%s8467_s5 + $0x20] sm:$0xff] }
  0xd2   : > { %4554 = vmatprep.subr.bf16.mxu0 %v4870_v0  ;;  %v2003_v0 = vld [vmem:[%s8467_s5 + $0x8] sm:$0xff]  ;;  %1647 = vmatmul.mubr.f32.gmra.mrb[16].mxu1 %v1146_v42  ;;  %v413_v40 = vld [vmem:[#allocation5 + $0xe0] sm:$0xff] }
  0xd3   : > { %1651 = vmatprep.mubr.f32.mxu1 %v1149_v30  ;;  %2073 = vperm.xlu1 %4688, %v2003_v0   ;;  %v2027_v42 = vld [vmem:[%s8467_s5 + $0xc8] sm:$0xff]  ;;  %v1172_v30 = vld [vmem:[#allocation7 + $0x490] sm:$0xff] }
  0xd4   : > { %764 = vmatmul.mubr.f32.gmra.mrb[30].mxu0 %v400_v19  ;;  %2068 = vperm.xlu0 %4687, %v2002_v44   ;;  %v2024_v19 = vld [vmem:[%s8467_s5 + $0xb0] sm:$0xff]  ;;  %v414_v0 = vld [vmem:[#allocation5 + $0xe8] sm:$0xff] }
  0xd5   : > { %769 = vmatprep.mubr.f32.mxu0 %v4871_v1  ;;  %4556 = vmatpush1.bf16.msra.mxu0 %v5319_v60  ;;  %v1154_v60 = vld [vmem:[#allocation7 + $0x400] sm:$0xff]  ;;  %v1175_v44 = vld [vmem:[#allocation7 + $0x4a8] sm:$0xff] }
  0xd6   : > { %1652 = vmatmul.mubr.f32.gmra.mrb[18].mxu1 %v1148_v45  ;;  %v2029_v45 = vld [vmem:[%s8467_s5 + $0xd8] sm:$0xff] }
  0xd7   : > { %1656 = vmatprep.mubr.f32.mxu1 %v1151_v47  ;;  %2083 = vperm.xlu1 %4688, %v2005_v49   ;;  %v1174_v47 = vld [vmem:[#allocation7 + $0x4a0] sm:$0xff]  ;;  %v415_v49 = vld [vmem:[#allocation5 + $0xf0] sm:$0xff] }
  0xd8   : > { %770 = vmatmul.mubr.f32.gmra.mrb[32].mxu0 %v401_v43  ;;  %2078 = vperm.xlu0 %4687, %v2004_v39   ;;  %v2026_v43 = vld [vmem:[%s8467_s5 + $0xc0] sm:$0xff]  ;;  %v1177_v39 = vld [vmem:[#allocation7 + $0x4b8] sm:$0xff] }
  0xd9   : > { %775 = vmatprep.mubr.f32.mxu0 %v4871_v1 }
  0xda   : > { %1657 = vmatmul.mubr.f32.gmra.mrb[20].mxu1 %v1150_v50  ;;  %v2031_v50 = vld [vmem:[%s8467_s5 + $0xe8] sm:$0xff] }
  0xdb   : > { %1661 = vmatprep.mubr.f32.mxu1 %v1153_v52  ;;  %2093 = vperm.xlu1 %4688, %v2007_v53   ;;  %v1176_v52 = vld [vmem:[#allocation7 + $0x4b0] sm:$0xff]  ;;  %v416_v53 = vld [vmem:[#allocation5 + $0xf8] sm:$0xff] }
  0xdc   : > { %776 = vmatmul.mubr.f32.gmra.mrb[34].mxu0 %v402_v46  ;;  %2088 = vperm.xlu0 %4687, %v2006_v54   ;;  %v2028_v46 = vld [vmem:[%s8467_s5 + $0xd0] sm:$0xff]  ;;  %v1179_v54 = vld [vmem:[#allocation7 + $0x4c8] sm:$0xff] }
  0xdd   : > { %781 = vmatprep.mubr.f32.mxu0 %v4871_v1 }
  0xde   : > { %1662 = vmatmul.mubr.f32.gmra.mrb[22].mxu1 %v1152_v48  ;;  %v1027_v48 = vld [vmem:[#allocation7 + $0x8] sm:$0xff] }
  0xdf   : > { %1666 = vmatprep.mubr.f32.mxu1 %v1155_v56  ;;  %2103 = vperm.xlu1 %4688, %v2009_v58   ;;  %v2032_v56 = vld [vmem:[%s8467_s5 + $0xf0] sm:$0xff]  ;;  %v1178_v58 = vld [vmem:[#allocation7 + $0x4c0] sm:$0xff] }
  0xe0   : > { %782 = vmatmul.mubr.f32.gmra.mrb[36].mxu0 %v403_v51  ;;  %2098 = vperm.xlu0 %4687, %v2008_v59   ;;  %v2030_v51 = vld [vmem:[%s8467_s5 + $0xe0] sm:$0xff]  ;;  %v1181_v59 = vld [vmem:[#allocation7 + $0x4d8] sm:$0xff] }
  0xe1   : > { %787 = vmatprep.mubr.f32.mxu0 %v4871_v1 }
  0xe2   : > { %1667 = vmatmul.mubr.f32.gmra.mrb[24].mxu1 %v1154_v60  ;;  %v1029_v60 = vld [vmem:[#allocation7 + $0x18] sm:$0xff] }
  0xe3   : > { %1671 = vmatprep.mubr.f32.mxu1 %v1157_v61  ;;  %2113 = vperm.xlu1 %4688, %v2011_v62   ;;  %v1028_v61 = vld [vmem:[#allocation7 + $0x10] sm:$0xff]  ;;  %v1183_v62 = vld [vmem:[#allocation7 + $0x4e8] sm:$0xff] }
  0xe4   : > { %788 = vmatmul.mubr.f32.gmra.mrb[38].mxu0 %v404_v55  ;;  %2108 = vperm.xlu0 %4687, %v2010_v63   ;;  %v2033_v55 = vld [vmem:[%s8467_s5 + $0xf8] sm:$0xff]  ;;  %v1031_v63 = vld [vmem:[#allocation7 + $0x28] sm:$0xff] }
  0xe5   : > { %793 = vmatprep.mubr.f32.mxu0 %v4871_v1 }
  0xe6   : > { %1672 = vmatmul.mubr.f32.gmra.mrb[26].mxu1 %v1156_v2  ;;  %v1182_v2 = vld [vmem:[#allocation7 + $0x4e0] sm:$0xff] }
  0xe7   : > { %1676 = vmatprep.mubr.f32.mxu1 %v1159_v4  ;;  %2123 = vperm.xlu1 %4688, %v2013_v5   ;;  %v1185_v4 = vld [vmem:[#allocation7 + $0x4f8] sm:$0xff] }
  0xe8   : > { %794 = vmatmul.mubr.f32.gmra.mrb[40].mxu0 %v405_v57  ;;  %2118 = vperm.xlu0 %4687, %v2012_v6   ;;  %v1180_v57 = vld [vmem:[#allocation7 + $0x4d0] sm:$0xff]  ;;  %v1033_v5 = vld [vmem:[#allocation7 + $0x38] sm:$0xff] }
  0xe9   : > { %799 = vmatprep.mubr.f32.mxu0 %v4871_v1  ;;  %v1184_v6 = vld [vmem:[#allocation7 + $0x4f0] sm:$0xff] }
  0xea   : > { %1677 = vmatmul.mubr.f32.gmra.mrb[28].mxu1 %v1158_v7  ;;  %v1032_v7 = vld [vmem:[#allocation7 + $0x30] sm:$0xff] }
  0xeb   : > { %1681 = vmatprep.mubr.f32.mxu1 %v1161_v9  ;;  %2133 = vperm.xlu1 %4688, %v2015_v11   ;;  %v1035_v9 = vld [vmem:[#allocation7 + $0x48] sm:$0xff]  ;;  %v1186_v11 = vld [vmem:[#allocation7 + $0x500] sm:$0xff] }
  0xec   : > { %800 = vmatmul.mubr.f32.gmra.mrb[42].mxu0 %v406_v3  ;;  %2128 = vperm.xlu0 %4687, %v2014_v12   ;;  %v1030_v3 = vld [vmem:[#allocation7 + $0x20] sm:$0xff] }
  0xed   : > { %805 = vmatprep.mubr.f32.mxu0 %v4871_v1  ;;  %v1034_v12 = vld [vmem:[#allocation7 + $0x40] sm:$0xff] }
  0xee   : > { %1682 = vmatmul.mubr.f32.gmra.mrb[30].mxu1 %v1160_v13  ;;  %v1189_v13 = vld [vmem:[#allocation7 + $0x518] sm:$0xff] }
  0xef   : > { %1686 = vmatprep.mubr.f32.mxu1 %v1163_v15  ;;  %2143 = vperm.xlu1 %4688, %v2017_v16   ;;  %v1188_v15 = vld [vmem:[#allocation7 + $0x510] sm:$0xff] }
  0xf0   : > { %806 = vmatmul.mubr.f32.gmra.mrb[44].mxu0 %v407_v8  ;;  %2138 = vperm.xlu0 %4687, %v2016_v17   ;;  %v1187_v8 = vld [vmem:[#allocation7 + $0x508] sm:$0xff]  ;;  %v1036_v16 = vld [vmem:[#allocation7 + $0x50] sm:$0xff] }
  0xf1   : > { %811 = vmatprep.mubr.f32.mxu0 %v4871_v1  ;;  %v1191_v17 = vld [vmem:[#allocation7 + $0x528] sm:$0xff] }
  0xf2   : > { %1687 = vmatmul.mubr.f32.gmra.mrb[32].mxu1 %v1162_v18  ;;  %v1039_v18 = vld [vmem:[#allocation7 + $0x68] sm:$0xff] }
  0xf3   : > { %1691 = vmatprep.mubr.f32.mxu1 %v1165_v21  ;;  %2153 = vperm.xlu1 %4688, %v2019_v22   ;;  %v1038_v21 = vld [vmem:[#allocation7 + $0x60] sm:$0xff]  ;;  %v1193_v22 = vld [vmem:[#allocation7 + $0x538] sm:$0xff] }
  0xf4   : > { %812 = vmatmul.mubr.f32.gmra.mrb[46].mxu0 %v408_v14  ;;  %2148 = vperm.xlu0 %4687, %v2018_v23   ;;  %v1037_v14 = vld [vmem:[#allocation7 + $0x58] sm:$0xff] }
  0xf5   : > { %817 = vmatprep.mubr.f32.mxu0 %v4871_v1  ;;  %v1041_v23 = vld [vmem:[#allocation7 + $0x78] sm:$0xff] }
  0xf6   : > { %1692 = vmatmul.mubr.f32.gmra.mrb[34].mxu1 %v1164_v24  ;;  %v1192_v24 = vld [vmem:[#allocation7 + $0x530] sm:$0xff] }
  0xf7   : > { %1696 = vmatprep.mubr.f32.mxu1 %v1167_v26  ;;  %2163 = vperm.xlu1 %4688, %v2021_v27   ;;  %v1195_v26 = vld [vmem:[#allocation7 + $0x548] sm:$0xff] }
  0xf8   : > { %818 = vmatmul.mubr.f32.gmra.mrb[48].mxu0 %v409_v20  ;;  %2158 = vperm.xlu0 %4687, %v2020_v28   ;;  %v1190_v20 = vld [vmem:[#allocation7 + $0x520] sm:$0xff]  ;;  %v1043_v27 = vld [vmem:[#allocation7 + $0x88] sm:$0xff] }
  0xf9   : > { %823 = vmatprep.mubr.f32.mxu0 %v4871_v1  ;;  %v1194_v28 = vld [vmem:[#allocation7 + $0x540] sm:$0xff] }
  0xfa   : > { %1697 = vmatmul.mubr.f32.gmra.mrb[36].mxu1 %v1166_v29  ;;  %v1042_v29 = vld [vmem:[#allocation7 + $0x80] sm:$0xff] }
  0xfb   : > { %1701 = vmatprep.mubr.f32.mxu1 %v1169_v31  ;;  %2173 = vperm.xlu1 %4688, %v2023_v32   ;;  %v1045_v31 = vld [vmem:[#allocation7 + $0x98] sm:$0xff]  ;;  %v1196_v32 = vld [vmem:[#allocation7 + $0x550] sm:$0xff] }
  0xfc   : > { %824 = vmatmul.mubr.f32.gmra.mrb[50].mxu0 %v410_v25  ;;  %2168 = vperm.xlu0 %4687, %v2022_v33   ;;  %v1040_v25 = vld [vmem:[#allocation7 + $0x70] sm:$0xff] }
  0xfd   : > { %829 = vmatprep.mubr.f32.mxu0 %v4871_v1  ;;  %v1044_v33 = vld [vmem:[#allocation7 + $0x90] sm:$0xff] }
  0xfe   : > { %1702 = vmatmul.mubr.f32.gmra.mrb[38].mxu1 %v1168_v34  ;;  %v1199_v34 = vld [vmem:[#allocation7 + $0x568] sm:$0xff] }
  0xff   : > { %1706 = vmatprep.mubr.f32.mxu1 %v1171_v36  ;;  %2183 = vperm.xlu1 %4688, %v2025_v37   ;;  %v1198_v36 = vld [vmem:[#allocation7 + $0x560] sm:$0xff] }
 0x100   : > { %830 = vmatmul.mubr.f32.gmra.mrb[52].mxu0 %v411_v10  ;;  %2178 = vperm.xlu0 %4687, %v2024_v19   ;;  %v1197_v10 = vld [vmem:[#allocation7 + $0x558] sm:$0xff]  ;;  %v1046_v37 = vld [vmem:[#allocation7 + $0xa0] sm:$0xff] }
 0x101   : > { %835 = vmatprep.mubr.f32.mxu0 %v4871_v1  ;;  %v1201_v19 = vld [vmem:[#allocation7 + $0x578] sm:$0xff] }
 0x102   : > { %1707 = vmatmul.mubr.f32.gmra.mrb[40].mxu1 %v1170_v38  ;;  %v1049_v38 = vld [vmem:[#allocation7 + $0xb8] sm:$0xff] }
 0x103   : > { %1711 = vmatprep.mubr.f32.mxu1 %v1173_v41  ;;  %2193 = vperm.xlu1 %4688, %v2027_v42   ;;  %v1048_v41 = vld [vmem:[#allocation7 + $0xb0] sm:$0xff]  ;;  %v1203_v42 = vld [vmem:[#allocation7 + $0x588] sm:$0xff] }
 0x104   : > { %836 = vmatmul.mubr.f32.gmra.mrb[54].mxu0 %v412_v35  ;;  %2188 = vperm.xlu0 %4687, %v2026_v43   ;;  %v1047_v35 = vld [vmem:[#allocation7 + $0xa8] sm:$0xff] }
 0x105   : > { %841 = vmatprep.mubr.f32.mxu0 %v4871_v1  ;;  %v1051_v43 = vld [vmem:[#allocation7 + $0xc8] sm:$0xff] }
 0x106   : > { %1712 = vmatmul.mubr.f32.gmra.mrb[42].mxu1 %v1172_v30  ;;  %v1202_v30 = vld [vmem:[#allocation7 + $0x580] sm:$0xff] }
 0x107   : > { %1716 = vmatprep.mubr.f32.mxu1 %v1175_v44  ;;  %2203 = vperm.xlu1 %4688, %v2029_v45   ;;  %v1205_v44 = vld [vmem:[#allocation7 + $0x598] sm:$0xff] }
 0x108   : > { %842 = vmatmul.mubr.f32.gmra.mrb[56].mxu0 %v413_v40  ;;  %2198 = vperm.xlu0 %4687, %v2028_v46   ;;  %v1200_v40 = vld [vmem:[#allocation7 + $0x570] sm:$0xff]  ;;  %v1053_v45 = vld [vmem:[#allocation7 + $0xd8] sm:$0xff] }
 0x109   : > { %847 = vmatprep.mubr.f32.mxu0 %v4871_v1  ;;  %v1204_v46 = vld [vmem:[#allocation7 + $0x590] sm:$0xff] }
 0x10a   : > { %1717 = vmatmul.mubr.f32.gmra.mrb[44].mxu1 %v1174_v47  ;;  %v1052_v47 = vld [vmem:[#allocation7 + $0xd0] sm:$0xff] }
 0x10b   : > { %1721 = vmatprep.mubr.f32.mxu1 %v1177_v39  ;;  %2213 = vperm.xlu1 %4688, %v2031_v50   ;;  %v1055_v39 = vld [vmem:[#allocation7 + $0xe8] sm:$0xff]  ;;  %v1206_v50 = vld [vmem:[#allocation7 + $0x5a0] sm:$0xff] }
 0x10c   : > { %848 = vmatmul.mubr.f32.gmra.mrb[58].mxu0 %v414_v0  ;;  %2208 = vperm.xlu0 %4687, %v2030_v51   ;;  %v1050_v0 = vld [vmem:[#allocation7 + $0xc0] sm:$0xff] }
 0x10d   : > { %853 = vmatprep.mubr.f32.mxu0 %v4871_v1  ;;  %v1054_v51 = vld [vmem:[#allocation7 + $0xe0] sm:$0xff] }
 0x10e   : > { %1722 = vmatmul.mubr.f32.gmra.mrb[46].mxu1 %v1176_v52  ;;  %v1209_v52 = vld [vmem:[#allocation7 + $0x5b8] sm:$0xff] }
 0x10f   : > { %1726 = vmatprep.mubr.f32.mxu1 %v1179_v54  ;;  %2223 = vperm.xlu1 %4688, %v2033_v55   ;;  %v1208_v54 = vld [vmem:[#allocation7 + $0x5b0] sm:$0xff]  ;;  %v1211_v55 = vld [vmem:[#allocation7 + $0x5c8] sm:$0xff] }
 0x110   : > { %854 = vmatmul.mubr.f32.gmra.mrb[60].mxu0 %v415_v49  ;;  %2218 = vperm.xlu0 %4687, %v2032_v56   ;;  %v1207_v49 = vld [vmem:[#allocation7 + $0x5a8] sm:$0xff] }
 0x111   : > { %859 = vmatprep.mubr.f32.mxu0 %v4871_v1  ;;  %v1026_v1 = vld [vmem:[#allocation7] sm:$0xff]  ;;  %v1059_v56 = vld [vmem:[#allocation7 + $0x108] sm:$0xff] }
 0x112   : > { %1727 = vmatmul.mubr.f32.gmra.mrb[48].mxu1 %v1178_v58  ;;  %v1210_v58 = vld [vmem:[#allocation7 + $0x5c0] sm:$0xff] }
 0x113   : > { %1731 = vmatprep.mubr.f32.mxu1 %v1181_v59  ;;  %v1213_v59 = vld [vmem:[#allocation7 + $0x5d8] sm:$0xff] }
 0x114   : > { %860 = vmatmul.mubr.f32.gmra.mrb[62].mxu0 %v416_v53  ;;  %v1057_v53 = vld [vmem:[#allocation7 + $0xf8] sm:$0xff] }
 0x115   : > { %1346 = vmatprep.mubr.f32.mxu0 %v1027_v48  ;;  %v1056_v48 = vld [vmem:[#allocation7 + $0xf0] sm:$0xff] }
 0x116   : > { %1732 = vmatmul.mubr.f32.gmra.mrb[50].mxu1 %v1180_v57  ;;  %v1212_v57 = vld [vmem:[#allocation7 + $0x5d0] sm:$0xff] }
 0x117   : > { %1736 = vmatprep.mubr.f32.mxu1 %v1183_v62  ;;  %v1215_v62 = vld [vmem:[#allocation7 + $0x5e8] sm:$0xff] }
 0x118   : > { %1347 = vmatmul.mubr.f32.vlgmr.msra.gmra.mrb[64].mxu0 %v1026_v1  ;;  %v1058_v1 = vld [vmem:[#allocation7 + $0x100] sm:$0xff] }
 0x119   : > { %1351 = vmatprep.mubr.f32.mxu0 %v1029_v60  ;;  %v1061_v60 = vld [vmem:[#allocation7 + $0x118] sm:$0xff] }
 0x11a   : > { %1737 = vmatmul.mubr.f32.gmra.mrb[52].mxu1 %v1182_v2  ;;  %v1214_v2 = vld [vmem:[#allocation7 + $0x5e0] sm:$0xff] }
 0x11b   : > { %1741 = vmatprep.mubr.f32.mxu1 %v1185_v4  ;;  %v1217_v4 = vld [vmem:[#allocation7 + $0x5f8] sm:$0xff] }
 0x11c   : > { %1352 = vmatmul.mubr.f32.gmra.mrb[66].mxu0 %v1028_v61  ;;  %v1060_v61 = vld [vmem:[#allocation7 + $0x110] sm:$0xff] }
 0x11d   : > { %1356 = vmatprep.mubr.f32.mxu0 %v1031_v63  ;;  %v1063_v63 = vld [vmem:[#allocation7 + $0x128] sm:$0xff] }
 0x11e   : > { %1742 = vmatmul.mubr.f32.gmra.mrb[54].mxu1 %v1184_v6  ;;  %v1216_v6 = vld [vmem:[#allocation7 + $0x5f0] sm:$0xff] }
 0x11f   : > { %1746 = vmatprep.mubr.f32.mxu1 %v1187_v8  ;;  %v1219_v8 = vld [vmem:[#allocation7 + $0x608] sm:$0xff] }
 0x120   : > { %1357 = vmatmul.mubr.f32.gmra.mrb[68].mxu0 %v1030_v3  ;;  %v1062_v3 = vld [vmem:[#allocation7 + $0x120] sm:$0xff] }
 0x121   : > { %1361 = vmatprep.mubr.f32.mxu0 %v1033_v5  ;;  %v1065_v5 = vld [vmem:[#allocation7 + $0x138] sm:$0xff] }
 0x122   : > { %1747 = vmatmul.mubr.f32.gmra.mrb[56].mxu1 %v1186_v11  ;;  %v1218_v11 = vld [vmem:[#allocation7 + $0x600] sm:$0xff] }
 0x123   : > { %1751 = vmatprep.mubr.f32.mxu1 %v1189_v13  ;;  %v1221_v13 = vld [vmem:[#allocation7 + $0x618] sm:$0xff] }
 0x124   : > { %1362 = vmatmul.mubr.f32.gmra.mrb[70].mxu0 %v1032_v7  ;;  %v1064_v7 = vld [vmem:[#allocation7 + $0x130] sm:$0xff] }
 0x125   : > { %1366 = vmatprep.mubr.f32.mxu0 %v1035_v9  ;;  %v1067_v9 = vld [vmem:[#allocation7 + $0x148] sm:$0xff] }
 0x126   : > { %1752 = vmatmul.mubr.f32.gmra.mrb[58].mxu1 %v1188_v15  ;;  %v452_v15 = vpop.permute.xlu0 %451 }
 0x127   : > { %1756 = vmatprep.mubr.f32.mxu1 %v1191_v17  ;;  %v1068_v17 = vld [vmem:[#allocation7 + $0x150] sm:$0xff] }
 0x128   : > { %1367 = vmatmul.mubr.f32.gmra.mrb[72].mxu0 %v1034_v12  ;;  %v1066_v12 = vld [vmem:[#allocation7 + $0x140] sm:$0xff] }
 0x129   : > { %1371 = vmatprep.mubr.f32.mxu0 %v1037_v14  ;;  %v1069_v14 = vld [vmem:[#allocation7 + $0x158] sm:$0xff] }
 0x12a   : > { %1757 = vmatmul.mubr.f32.gmra.mrb[60].mxu1 %v1190_v20  ;;  %v1071_v20 = vld [vmem:[#allocation7 + $0x168] sm:$0xff] }
 0x12b   : > { %1761 = vmatprep.mubr.f32.mxu1 %v1193_v22 }
 0x12c   : > { %1372 = vmatmul.mubr.f32.gmra.mrb[74].mxu0 %v1036_v16  ;;  %v1220_v16 = vld [vmem:[#allocation7 + $0x610] sm:$0xff] }
 0x12d   : > { %1376 = vmatprep.mubr.f32.mxu0 %v1039_v18  ;;  %v1223_v18 = vld [vmem:[#allocation7 + $0x628] sm:$0xff] }
 0x12e   : > { %1762 = vmatmul.mubr.f32.gmra.mrb[62].mxu1 %v1192_v24 }
 0x12f   : > { %1766 = vmatprep.mubr.f32.mxu1 %v1195_v26  ;;  %v1070_v26 = vld [vmem:[#allocation7 + $0x160] sm:$0xff] }
 0x130   : > { %1377 = vmatmul.mubr.f32.gmra.mrb[76].mxu0 %v1038_v21 }
 0x131   : > { %1381 = vmatprep.mubr.f32.mxu0 %v1041_v23 }
 0x132   : > { %1767 = vmatmul.mubr.f32.gmra.mrb[64].mxu1 %v1194_v28  ;;  %v1225_v28 = vld [vmem:[#allocation7 + $0x638] sm:$0xff] }
 0x133   : > { %1771 = vmatprep.mubr.f32.mxu1 %v1197_v10  ;;  %v457_v10 = vpop.permute.xlu0 %456 }
 0x134   : > { %1382 = vmatmul.mubr.f32.gmra.mrb[78].mxu0 %v1040_v25  ;;  %v1222_v25 = vld [vmem:[#allocation7 + $0x620] sm:$0xff] }
 0x135   : > { %1386 = vmatprep.mubr.f32.mxu0 %v1043_v27 }
 0x136   : > { %1772 = vmatmul.mubr.f32.gmra.mrb[66].mxu1 %v1196_v32 }
 0x137   : > { %1776 = vmatprep.mubr.f32.mxu1 %v1199_v34 }
 0x138   : > { %1387 = vmatmul.mubr.f32.gmra.mrb[80].mxu0 %v1042_v29  ;;  %v1073_v29 = vld [vmem:[#allocation7 + $0x178] sm:$0xff] }
 0x139   : > { %1391 = vmatprep.mubr.f32.mxu0 %v1045_v31 }
 0x13a   : > { %1777 = vmatmul.mubr.f32.gmra.mrb[68].mxu1 %v1198_v36 }
 0x13b   : > { %1781 = vmatprep.mubr.f32.mxu1 %v1201_v19  ;;  %v1072_v19 = vld [vmem:[#allocation7 + $0x170] sm:$0xff] }
 0x13c   : > { %1392 = vmatmul.mubr.f32.gmra.mrb[82].mxu0 %v1044_v33 }
 0x13d   : > { %1396 = vmatprep.mubr.f32.mxu0 %v1047_v35  ;;  %v462_v35 = vpop.permute.xlu1 %461 }
 0x13e   : > { %1782 = vmatmul.mubr.f32.gmra.mrb[70].mxu1 %v1200_v40  ;;  %v1227_v40 = vld [vmem:[#allocation7 + $0x648] sm:$0xff] }
 0x13f   : > { %1786 = vmatprep.mubr.f32.mxu1 %v1203_v42 }
 0x140   : > { %1397 = vmatmul.mubr.f32.gmra.mrb[84].mxu0 %v1046_v37  ;;  %v1224_v37 = vld [vmem:[#allocation7 + $0x630] sm:$0xff] }
 0x141   : > { %1401 = vmatprep.mubr.f32.mxu0 %v1049_v38 }
 0x142   : > { %1787 = vmatmul.mubr.f32.gmra.mrb[72].mxu1 %v1202_v30 }
 0x143   : > { %1791 = vmatprep.mubr.f32.mxu1 %v1205_v44 }
 0x144   : > { %1402 = vmatmul.mubr.f32.gmra.mrb[86].mxu0 %v1048_v41  ;;  %v1075_v41 = vld [vmem:[#allocation7 + $0x188] sm:$0xff] }
 0x145   : > { %1406 = vmatprep.mubr.f32.mxu0 %v1051_v43 }
 0x146   : > { %1792 = vmatmul.mubr.f32.gmra.mrb[74].mxu1 %v1204_v46  ;;  %v1074_v46 = vld [vmem:[#allocation7 + $0x180] sm:$0xff] }
 0x147   : > { %1796 = vmatprep.mubr.f32.mxu1 %v1207_v49  ;;  %v1229_v49 = vld [vmem:[#allocation7 + $0x658] sm:$0xff] }
 0x148   : > { %1407 = vmatmul.mubr.f32.gmra.mrb[88].mxu0 %v1050_v0 }
 0x149   : > { %1411 = vmatprep.mubr.f32.mxu0 %v1053_v45  ;;  %v1226_v45 = vld [vmem:[#allocation7 + $0x640] sm:$0xff] }
 0x14a   : > { %1797 = vmatmul.mubr.f32.gmra.mrb[76].mxu1 %v1206_v50  ;;  %v467_v50 = vpop.permute.xlu1 %466 }
 0x14b   : > { %1801 = vmatprep.mubr.f32.mxu1 %v1209_v52 }
 0x14c   : > { %1412 = vmatmul.mubr.f32.gmra.mrb[90].mxu0 %v1052_v47 }
 0x14d   : > { %1416 = vmatprep.mubr.f32.mxu0 %v1055_v39  ;;  %v1077_v39 = vld [vmem:[#allocation7 + $0x198] sm:$0xff] }
 0x14e   : > { %1802 = vmatmul.mubr.f32.gmra.mrb[78].mxu1 %v1208_v54 }
 0x14f   : > { %1806 = vmatprep.mubr.f32.mxu1 %v1211_v55  ;;  %v1228_v55 = vld [vmem:[#allocation7 + $0x650] sm:$0xff] }
 0x150   : > { %1417 = vmatmul.mubr.f32.gmra.mrb[92].mxu0 %v1054_v51 }
 0x151   : > { %1421 = vmatprep.mubr.f32.mxu0 %v1057_v53 }
 0x152   : > { %1807 = vmatmul.mubr.f32.gmra.mrb[80].mxu1 %v1210_v58 }
 0x153   : > { %1811 = vmatprep.mubr.f32.mxu1 %v1213_v59  ;;  %v1079_v59 = vld [vmem:[#allocation7 + $0x1a8] sm:$0xff] }
 0x154   : > { %1422 = vmatmul.mubr.f32.gmra.mrb[94].mxu0 %v1056_v48 }
 0x155   : > { %1426 = vmatprep.mubr.f32.mxu0 %v1059_v56  ;;  %v1076_v56 = vld [vmem:[#allocation7 + $0x190] sm:$0xff] }
 0x156   : > { %1812 = vmatmul.mubr.f32.gmra.mrb[82].mxu1 %v1212_v57 }
 0x157   : > { %1816 = vmatprep.mubr.f32.mxu1 %v1215_v62 }
 0x158   : > { %1427 = vmatmul.mubr.f32.gmra.mrb[96].mxu0 %v1058_v1  ;;  %v1231_v1 = vld [vmem:[#allocation7 + $0x668] sm:$0xff] }
 0x159   : > { %1431 = vmatprep.mubr.f32.mxu0 %v1061_v60  ;;  %v472_v60 = vpop.permute.xlu0 %471 }
 0x15a   : > { %1817 = vmatmul.mubr.f32.gmra.mrb[84].mxu1 %v1214_v2 }
 0x15b   : > { %1821 = vmatprep.mubr.f32.mxu1 %v1217_v4  ;;  %v1078_v4 = vld [vmem:[#allocation7 + $0x1a0] sm:$0xff] }
 0x15c   : > { %1432 = vmatmul.mubr.f32.gmra.mrb[98].mxu0 %v1060_v61 }
 0x15d   : > { %1436 = vmatprep.mubr.f32.mxu0 %v1063_v63 }
 0x15e   : > { %1822 = vmatmul.mubr.f32.gmra.mrb[86].mxu1 %v1216_v6  ;;  %v1233_v6 = vld [vmem:[#allocation7 + $0x678] sm:$0xff] }
 0x15f   : > { %1826 = vmatprep.mubr.f32.mxu1 %v1219_v8  ;;  %v477_v8 = vpop.permute.xlu1 %476 }
 0x160   : > { %1437 = vmatmul.mubr.f32.gmra.mrb[100].mxu0 %v1062_v3  ;;  %v1230_v3 = vld [vmem:[#allocation7 + $0x660] sm:$0xff] }
 0x161   : > { %1441 = vmatprep.mubr.f32.mxu0 %v1065_v5 }
 0x162   : > { %1827 = vmatmul.mubr.f32.gmra.mrb[88].mxu1 %v1218_v11 }
 0x163   : > { %1831 = vmatprep.mubr.f32.mxu1 %v1221_v13 }
 0x164   : > { %1442 = vmatmul.mubr.f32.gmra.mrb[102].mxu0 %v1064_v7  ;;  %v1081_v7 = vld [vmem:[#allocation7 + $0x1b8] sm:$0xff] }
 0x165   : > { %1446 = vmatprep.mubr.f32.mxu0 %v1067_v9 }
 0x166   : > { %1832 = vmatmul.mubr.f32.gmra.mrb[90].mxu1 %v1220_v16  ;;  %v1080_v16 = vld [vmem:[#allocation7 + $0x1b0] sm:$0xff] }
 0x167   : > { %1836 = vmatprep.mubr.f32.mxu1 %v1223_v18  ;;  %v1235_v18 = vld [vmem:[#allocation7 + $0x688] sm:$0xff] }
 0x168   : > { %1447 = vmatmul.mubr.f32.gmra.mrb[104].mxu0 %v1066_v12 }
 0x169   : > { %1451 = vmatprep.mubr.f32.mxu0 %v1069_v14 }
 0x16a   : > { %1837 = vmatmul.mubr.f32.gmra.mrb[92].mxu1 %v1222_v25 }
 0x16b   : > { %v675_v21 = vpop.f32.mrb[0].mxu0  ;;  %1841 = vmatprep.mubr.f32.mxu1 %v1225_v28  ;;  %v1082_v28 = vld [vmem:[#allocation7 + $0x1c0] sm:$0xff] }
 0x16c   : > { %1452 = vmatmul.mubr.f32.gmra.mrb[106].mxu0 %v1068_v17  ;;  %v676_v22 = vadd.f32 %v675_v21, %v452_v15  ;;  %v677_v23 = vpop.f32.mrb[1].mxu0  ;;  %v482_v21 = vpop.permute.xlu0 %481 }
 0x16d   : > { %v678_v24 = vadd.f32 %v677_v23, %v452_v15  ;;  %1456 = vmatprep.mubr.f32.mxu0 %v1071_v20  ;;  %v1232_v15 = vld [vmem:[#allocation7 + $0x670] sm:$0xff]  ;;  %v1083_v20 = vld [vmem:[#allocation7 + $0x1c8] sm:$0xff] }
 0x16e   : > { %v866_v27 = vmax.f32 %v676_v22, 0.0  ;;  %1842 = vmatmul.mubr.f32.gmra.mrb[94].mxu1 %v1224_v37 }
 0x16f   : > { %v867_v31 = vmax.f32 %v678_v24, 0.0  ;;  %v681_v32 = vpop.f32.mrb[2].mxu0  ;;  %1846 = vmatprep.mubr.f32.mxu1 %v1227_v40 }
 0x170   : > { %930 = vst [vmem:[%s5517_s15] sm:$0xff] %v866_v27  ;;  %1457 = vmatmul.mubr.f32.gmra.mrb[108].mxu0 %v1070_v26  ;;  %v682_v33 = vadd.f32 %v681_v32, %v457_v10  ;;  %v683_v34 = vpop.f32.mrb[3].mxu0  ;;  %v1234_v27 = vld [vmem:[#allocation7 + $0x680] sm:$0xff]  ;;  %v487_v32 = vpop.permute.xlu1 %486 }
 0x171   : > { %931 = vst [vmem:[%s5517_s15 + $0x8] sm:$0xff] %v867_v31  ;;  %v684_v36 = vadd.f32 %v683_v34, %v457_v10  ;;  %1461 = vmatprep.mubr.f32.mxu0 %v1073_v29  ;;  %v1237_v10 = vld [vmem:[#allocation7 + $0x698] sm:$0xff]  ;;  %v492_v40 = vpop.permute.xlu0 %491 }
 0x172   : > { %v868_v38 = vmax.f32 %v682_v33, 0.0  ;;  %1847 = vmatmul.mubr.f32.gmra.mrb[96].mxu1 %v1226_v45  ;;  %v1085_v31 = vld [vmem:[#allocation7 + $0x1d8] sm:$0xff] }
 0x173   : > { %v869_v42 = vmax.f32 %v684_v36, 0.0  ;;  %v687_v43 = vpop.f32.mrb[4].mxu0  ;;  %1851 = vmatprep.mubr.f32.mxu1 %v1229_v49 }
 0x174   : > { %932 = vst [vmem:[%s5517_s15 + $0x10] sm:$0xff] %v868_v38  ;;  %1462 = vmatmul.mubr.f32.gmra.mrb[110].mxu0 %v1072_v19  ;;  %v688_v30 = vadd.f32 %v687_v43, %v462_v35  ;;  %v689_v0 = vpop.f32.mrb[5].mxu0  ;;  %v1236_v19 = vld [vmem:[#allocation7 + $0x690] sm:$0xff]  ;;  %v1087_v43 = vld [vmem:[#allocation7 + $0x1e8] sm:$0xff] }
 0x175   : > { %933 = vst [vmem:[%s5517_s15 + $0x18] sm:$0xff] %v869_v42  ;;  %v690_v44 = vadd.f32 %v689_v0, %v462_v35  ;;  %1466 = vmatprep.mubr.f32.mxu0 %v1075_v41  ;;  %v1084_v38 = vld [vmem:[#allocation7 + $0x1d0] sm:$0xff]  ;;  %v1239_v42 = vld [vmem:[#allocation7 + $0x6a8] sm:$0xff] }
 0x176   : > { %v870_v47 = vmax.f32 %v688_v30, 0.0  ;;  %1852 = vmatmul.mubr.f32.gmra.mrb[98].mxu1 %v1228_v55 }
 0x177   : > { %v871_v51 = vmax.f32 %v690_v44, 0.0  ;;  %v693_v52 = vpop.f32.mrb[6].mxu0  ;;  %1856 = vmatprep.mubr.f32.mxu1 %v1231_v1 }
 0x178   : > { %934 = vst [vmem:[%s5517_s15 + $0x20] sm:$0xff] %v870_v47  ;;  %1467 = vmatmul.mubr.f32.gmra.mrb[112].mxu0 %v1074_v46  ;;  %v694_v53 = vadd.f32 %v693_v52, %v467_v50  ;;  %v695_v54 = vpop.f32.mrb[7].mxu0 }
 0x179   : > { %935 = vst [vmem:[%s5517_s15 + $0x28] sm:$0xff] %v871_v51  ;;  %v696_v48 = vadd.f32 %v695_v54, %v467_v50  ;;  %1471 = vmatprep.mubr.f32.mxu0 %v1077_v39  ;;  %v1238_v39 = vld [vmem:[#allocation7 + $0x6a0] sm:$0xff]  ;;  %v497_v51 = vpop.permute.xlu1 %496  ;;  %v1089_v54 = vld [vmem:[#allocation7 + $0x1f8] sm:$0xff] }
 0x17a   : > { %v872_v58 = vmax.f32 %v694_v53, 0.0  ;;  %1857 = vmatmul.mubr.f32.gmra.mrb[100].mxu1 %v1230_v3  ;;  %v1086_v50 = vld [vmem:[#allocation7 + $0x1e0] sm:$0xff]  ;;  %v1241_v53 = vld [vmem:[#allocation7 + $0x6b8] sm:$0xff]  ;;  %v1091_v3 = vld [vmem:[#allocation7 + $0x208] sm:$0xff] }
 0x17b   : > { %v873_v57 = vmax.f32 %v696_v48, 0.0  ;;  %v699_v61 = vpop.f32.mrb[8].mxu0  ;;  %1861 = vmatprep.mubr.f32.mxu1 %v1233_v6 }
 0x17c   : > { %936 = vst [vmem:[%s5517_s15 + $0x30] sm:$0xff] %v872_v58  ;;  %1472 = vmatmul.mubr.f32.gmra.mrb[114].mxu0 %v1076_v56  ;;  %v700_v62 = vadd.f32 %v699_v61, %v472_v60  ;;  %v701_v63 = vpop.f32.mrb[9].mxu0  ;;  %v1088_v61 = vld [vmem:[#allocation7 + $0x1f0] sm:$0xff] }
 0x17d   : > { %937 = vst [vmem:[%s5517_s15 + $0x38] sm:$0xff] %v873_v57  ;;  %v702_v2 = vadd.f32 %v701_v63, %v472_v60  ;;  %1476 = vmatprep.mubr.f32.mxu0 %v1079_v59  ;;  %v1240_v57 = vld [vmem:[#allocation7 + $0x6b0] sm:$0xff] }
 0x17e   : > { %v874_v5 = vmax.f32 %v700_v62, 0.0  ;;  %1862 = vmatmul.mubr.f32.gmra.mrb[102].mxu1 %v1232_v15  ;;  %v502_v62 = vpop.permute.xlu0 %501 }
 0x17f   : > { %v875_v9 = vmax.f32 %v702_v2, 0.0  ;;  %v705_v11 = vpop.f32.mrb[10].mxu0  ;;  %1866 = vmatprep.mubr.f32.mxu1 %v1235_v18  ;;  %v1243_v2 = vld [vmem:[#allocation7 + $0x6c8] sm:$0xff] }
 0x180   : > { %938 = vst [vmem:[%s5517_s15 + $0x40] sm:$0xff] %v874_v5  ;;  %1477 = vmatmul.mubr.f32.gmra.mrb[116].mxu0 %v1078_v4  ;;  %v706_v12 = vadd.f32 %v705_v11, %v477_v8  ;;  %v707_v13 = vpop.f32.mrb[11].mxu0 }
 0x181   : > { %939 = vst [vmem:[%s5517_s15 + $0x48] sm:$0xff] %v875_v9  ;;  %v708_v14 = vadd.f32 %v707_v13, %v477_v8  ;;  %1481 = vmatprep.mubr.f32.mxu0 %v1081_v7  ;;  %v1090_v13 = vld [vmem:[#allocation7 + $0x200] sm:$0xff] }
 0x182   : > { %v876_v17 = vmax.f32 %v706_v12, 0.0  ;;  %1867 = vmatmul.mubr.f32.gmra.mrb[104].mxu1 %v1234_v27  ;;  %v1242_v12 = vld [vmem:[#allocation7 + $0x6c0] sm:$0xff]  ;;  %v1092_v27 = vld [vmem:[#allocation7 + $0x210] sm:$0xff] }
 0x183   : > { %v877_v22 = vmax.f32 %v708_v14, 0.0  ;;  %v711_v23 = vpop.f32.mrb[12].mxu0  ;;  %1871 = vmatprep.mubr.f32.mxu1 %v1237_v10  ;;  %v507_v14 = vpop.permute.xlu1 %506  ;;  %v1247_v10 = vld [vmem:[#allocation7 + $0x6e8] sm:$0xff] }
 0x184   : > { %940 = vst [vmem:[%s5517_s15 + $0x50] sm:$0xff] %v876_v17  ;;  %1482 = vmatmul.mubr.f32.gmra.mrb[118].mxu0 %v1080_v16  ;;  %v712_v24 = vadd.f32 %v711_v23, %v482_v21  ;;  %v713_v25 = vpop.f32.mrb[13].mxu0  ;;  %v1245_v16 = vld [vmem:[#allocation7 + $0x6d8] sm:$0xff] }
 0x185   : > { %941 = vst [vmem:[%s5517_s15 + $0x58] sm:$0xff] %v877_v22  ;;  %v714_v26 = vadd.f32 %v713_v25, %v482_v21  ;;  %1486 = vmatprep.mubr.f32.mxu0 %v1083_v20  ;;  %v5533_v0 = vpop.f32.mrb[0].mxu1  ;;  %v1093_v17 = vld [vmem:[#allocation7 + $0x218] sm:$0xff] }
 0x186   : > { %v878_v29 = vmax.f32 %v712_v24, 0.0  ;;  %v1610_v45 = vpop.f32.mrb[1].mxu1  ;;  %1872 = vmatmul.mubr.f32.gmra.mrb[106].mxu1 %v1236_v19 }
 0x187   : > { %v879_v33 = vmax.f32 %v714_v26, 0.0  ;;  %v717_v34 = vpop.f32.mrb[14].mxu0  ;;  %1876 = vmatprep.mubr.f32.mxu1 %v1239_v42  ;;  %v1244_v26 = vld [vmem:[#allocation7 + $0x6d0] sm:$0xff] }
 0x188   : > { %942 = vst [vmem:[%s5517_s15 + $0x60] sm:$0xff] %v878_v29  ;;  %1487 = vmatmul.mubr.f32.gmra.mrb[120].mxu0 %v1082_v28  ;;  %v718_v35 = vadd.f32 %v717_v34, %v487_v32  ;;  %v719_v36 = vpop.f32.mrb[15].mxu0  ;;  %v512_v28 = vpop.permute.xlu0 %511 }
 0x189   : > { %943 = vst [vmem:[%s5517_s15 + $0x68] sm:$0xff] %v879_v33  ;;  %v720_v37 = vadd.f32 %v719_v36, %v487_v32  ;;  %1491 = vmatprep.mubr.f32.mxu0 %v1085_v31  ;;  %v5537_v55 = vpop.f32.mrb[2].mxu1  ;;  %v1095_v31 = vld [vmem:[#allocation7 + $0x228] sm:$0xff] }
 0x18a   : > { %v880_v41 = vmax.f32 %v718_v35, 0.0  ;;  %v1615_v58 = vpop.f32.mrb[3].mxu1  ;;  %1877 = vmatmul.mubr.f32.gmra.mrb[108].mxu1 %v1238_v39 }
 0x18b   : > { %v881_v30 = vmax.f32 %v720_v37, 0.0  ;;  %v723_v44 = vpop.f32.mrb[16].mxu0  ;;  %1881 = vmatprep.mubr.f32.mxu1 %v1241_v53 }
 0x18c   : > { %944 = vst [vmem:[%s5517_s15 + $0x70] sm:$0xff] %v880_v41  ;;  %1492 = vmatmul.mubr.f32.gmra.mrb[122].mxu0 %v1084_v38  ;;  %v724_v46 = vadd.f32 %v723_v44, %v492_v40  ;;  %v725_v47 = vpop.f32.mrb[17].mxu0  ;;  %v1246_v38 = vld [vmem:[#allocation7 + $0x6e0] sm:$0xff]  ;;  %v517_v41 = vpop.permute.xlu1 %516 }
 0x18d   : > { %945 = vst [vmem:[%s5517_s15 + $0x78] sm:$0xff] %v881_v30  ;;  %v726_v49 = vadd.f32 %v725_v47, %v492_v40  ;;  %1496 = vmatprep.mubr.f32.mxu0 %v1087_v43  ;;  %v5541_v5 = vpop.f32.mrb[4].mxu1  ;;  %v1094_v40 = vld [vmem:[#allocation7 + $0x220] sm:$0xff]  ;;  %v1249_v43 = vld [vmem:[#allocation7 + $0x6f8] sm:$0xff]  ;;  %v522_v53 = vpop.permute.xlu0 %521 }
 0x18e   : > { %v882_v52 = vmax.f32 %v724_v46, 0.0  ;;  %v1620_v7 = vpop.f32.mrb[5].mxu1  ;;  %1882 = vmatmul.mubr.f32.gmra.mrb[110].mxu1 %v1240_v57  ;;  %v1097_v30 = vld [vmem:[#allocation7 + $0x238] sm:$0xff] }
 0x18f   : > { %v883_v48 = vmax.f32 %v726_v49, 0.0  ;;  %v729_v56 = vpop.f32.mrb[18].mxu0  ;;  %1886 = vmatprep.mubr.f32.mxu1 %v1243_v2  ;;  %v1098_v2 = vld [vmem:[#allocation7 + $0x240] sm:$0xff]  ;;  %v1101_v7 = vld [vmem:[#allocation7 + $0x258] sm:$0xff] }
 0x190   : > { %946 = vst [vmem:[%s5517_s15 + $0x80] sm:$0xff] %v882_v52  ;;  %1497 = vmatmul.mubr.f32.gmra.mrb[124].mxu0 %v1086_v50  ;;  %v730_v1 = vadd.f32 %v729_v56, %v497_v51  ;;  %v731_v59 = vpop.f32.mrb[19].mxu0  ;;  %v1096_v52 = vld [vmem:[#allocation7 + $0x230] sm:$0xff]  ;;  %v1099_v56 = vld [vmem:[#allocation7 + $0x248] sm:$0xff] }
 0x191   : > { %947 = vst [vmem:[%s5517_s15 + $0x88] sm:$0xff] %v883_v48  ;;  %v732_v60 = vadd.f32 %v731_v59, %v497_v51  ;;  %1501 = vmatprep.mubr.f32.mxu0 %v1089_v54  ;;  %v5545_v20 = vpop.f32.mrb[6].mxu1  ;;  %v1248_v51 = vld [vmem:[#allocation7 + $0x6f0] sm:$0xff]  ;;  %v1251_v48 = vld [vmem:[#allocation7 + $0x708] sm:$0xff] }
 0x192   : > { %v884_v63 = vmax.f32 %v730_v1, 0.0  ;;  %v1625_v22 = vpop.f32.mrb[7].mxu1  ;;  %1887 = vmatmul.mubr.f32.gmra.mrb[112].mxu1 %v1242_v12 }
 0x193   : > { %v885_v4 = vmax.f32 %v732_v60, 0.0  ;;  %v735_v6 = vpop.f32.mrb[20].mxu0  ;;  %1891 = vmatprep.mubr.f32.mxu1 %v1245_v16  ;;  %v1252_v16 = vld [vmem:[#allocation7 + $0x710] sm:$0xff]  ;;  %v1255_v22 = vld [vmem:[#allocation7 + $0x728] sm:$0xff] }
 0x194   : > { %948 = vst [vmem:[%s5517_s15 + $0x90] sm:$0xff] %v884_v63  ;;  %1502 = vmatmul.mubr.f32.gmra.mrb[126].mxu0 %v1088_v61  ;;  %v736_v8 = vadd.f32 %v735_v6, %v502_v62  ;;  %v737_v9 = vpop.f32.mrb[21].mxu0  ;;  %v1250_v63 = vld [vmem:[#allocation7 + $0x700] sm:$0xff]  ;;  %v1253_v6 = vld [vmem:[#allocation7 + $0x718] sm:$0xff] }
 0x195   : > { %949 = vst [vmem:[%s5517_s15 + $0x98] sm:$0xff] %v885_v4  ;;  %v738_v11 = vadd.f32 %v737_v9, %v502_v62  ;;  %1506 = vmatprep.mubr.f32.mxu0 %v1091_v3  ;;  %v5549_v33 = vpop.f32.mrb[8].mxu1  ;;  %v527_v3 = vpop.permute.xlu1 %526 }
 0x196   : > { %v886_v15 = vmax.f32 %v736_v8, 0.0  ;;  %v1630_v35 = vpop.f32.mrb[9].mxu1  ;;  %1892 = vmatmul.mubr.f32.gmra.mrb[114].mxu1 %v1244_v26 }
 0x197   : > { %v887_v18 = vmax.f32 %v738_v11, 0.0  ;;  %v741_v21 = vpop.f32.mrb[22].mxu0  ;;  %1896 = vmatprep.mubr.f32.mxu1 %v1247_v10 }
 0x198   : > { %950 = vst [vmem:[%s5517_s15 + $0xa0] sm:$0xff] %v886_v15  ;;  %1507 = vmatmul.mubr.f32.gmra.mrb[128].mxu0 %v1090_v13  ;;  %v742_v23 = vadd.f32 %v741_v21, %v507_v14  ;;  %v743_v24 = vpop.f32.mrb[23].mxu0 }
 0x199   : > { %951 = vst [vmem:[%s5517_s15 + $0xa8] sm:$0xff] %v887_v18  ;;  %v744_v25 = vadd.f32 %v743_v24, %v507_v14  ;;  %1511 = vmatprep.mubr.f32.mxu0 %v1093_v17  ;;  %v5553_v45 = vpop.f32.mrb[10].mxu1  ;;  %v1100_v17 = vld [vmem:[#allocation7 + $0x250] sm:$0xff]  ;;  %v532_v18 = vpop.permute.xlu0 %531 }
 0x19a   : > { %v888_v29 = vmax.f32 %v742_v23, 0.0  ;;  %v1635_v47 = vpop.f32.mrb[11].mxu1  ;;  %1897 = vmatmul.mubr.f32.gmra.mrb[116].mxu1 %v1246_v38  ;;  %v1103_v23 = vld [vmem:[#allocation7 + $0x268] sm:$0xff] }
 0x19b   : > { %v889_v32 = vmax.f32 %v744_v25, 0.0  ;;  %v747_v34 = vpop.f32.mrb[24].mxu0  ;;  %1901 = vmatprep.mubr.f32.mxu1 %v1249_v43 }
 0x19c   : > { %952 = vst [vmem:[%s5517_s15 + $0xb0] sm:$0xff] %v888_v29  ;;  %1512 = vmatmul.mubr.f32.gmra.mrb[130].mxu0 %v1092_v27  ;;  %v748_v36 = vadd.f32 %v747_v34, %v512_v28  ;;  %v749_v37 = vpop.f32.mrb[25].mxu0  ;;  %v537_v34 = vpop.permute.xlu1 %536 }
 0x19d   : > { %953 = vst [vmem:[%s5517_s15 + $0xb8] sm:$0xff] %v889_v32  ;;  %v750_v19 = vadd.f32 %v749_v37, %v512_v28  ;;  %1516 = vmatprep.mubr.f32.mxu0 %v1095_v31  ;;  %v5557_v1 = vpop.f32.mrb[12].mxu1  ;;  %v1254_v31 = vld [vmem:[#allocation7 + $0x720] sm:$0xff]  ;;  %v1105_v37 = vld [vmem:[#allocation7 + $0x278] sm:$0xff]  ;;  %v542_v47 = vpop.permute.xlu0 %541 }
 0x19e   : > { %v890_v42 = vmax.f32 %v748_v36, 0.0  ;;  %v1640_v60 = vpop.f32.mrb[13].mxu1  ;;  %1902 = vmatmul.mubr.f32.gmra.mrb[118].mxu1 %v1248_v51  ;;  %v1102_v32 = vld [vmem:[#allocation7 + $0x260] sm:$0xff]  ;;  %v1257_v36 = vld [vmem:[#allocation7 + $0x738] sm:$0xff] }
 0x19f   : > { %v891_v44 = vmax.f32 %v750_v19, 0.0  ;;  %v753_v46 = vpop.f32.mrb[26].mxu0  ;;  %1906 = vmatprep.mubr.f32.mxu1 %v1251_v48  ;;  %v1106_v60 = vld [vmem:[#allocation7 + $0x280] sm:$0xff] }
 0x1a0   : > { %954 = vst [vmem:[%s5517_s15 + $0xc0] sm:$0xff] %v890_v42  ;;  %1517 = vmatmul.mubr.f32.gmra.mrb[132].mxu0 %v1094_v40  ;;  %v754_v49 = vadd.f32 %v753_v46, %v517_v41  ;;  %v755_v39 = vpop.f32.mrb[27].mxu0  ;;  %v1104_v46 = vld [vmem:[#allocation7 + $0x270] sm:$0xff] }
 0x1a1   : > { %955 = vst [vmem:[%s5517_s15 + $0xc8] sm:$0xff] %v891_v44  ;;  %v756_v50 = vadd.f32 %v755_v39, %v517_v41  ;;  %1521 = vmatprep.mubr.f32.mxu0 %v1097_v30  ;;  %v5561_v9 = vpop.f32.mrb[14].mxu1  ;;  %v1256_v44 = vld [vmem:[#allocation7 + $0x730] sm:$0xff]  ;;  %v1259_v39 = vld [vmem:[#allocation7 + $0x748] sm:$0xff] }
 0x1a2   : > { %v892_v54 = vmax.f32 %v754_v49, 0.0  ;;  %v1645_v12 = vpop.f32.mrb[15].mxu1  ;;  %1907 = vmatmul.mubr.f32.gmra.mrb[120].mxu1 %v1250_v63  ;;  %v1109_v63 = vld [vmem:[#allocation7 + $0x298] sm:$0xff] }
 0x1a3   : > { %v893_v58 = vmax.f32 %v756_v50, 0.0  ;;  %v759_v59 = vpop.f32.mrb[28].mxu0  ;;  %1911 = vmatprep.mubr.f32.mxu1 %v1253_v6  ;;  %v1107_v50 = vld [vmem:[#allocation7 + $0x288] sm:$0xff]  ;;  %v1260_v12 = vld [vmem:[#allocation7 + $0x750] sm:$0xff] }
 0x1a4   : > { %956 = vst [vmem:[%s5517_s15 + $0xd0] sm:$0xff] %v892_v54  ;;  %1522 = vmatmul.mubr.f32.gmra.mrb[134].mxu0 %v1096_v52  ;;  %v760_v57 = vadd.f32 %v759_v59, %v522_v53  ;;  %v761_v61 = vpop.f32.mrb[29].mxu0  ;;  %v1258_v59 = vld [vmem:[#allocation7 + $0x740] sm:$0xff] }
 0x1a5   : > { %957 = vst [vmem:[%s5517_s15 + $0xd8] sm:$0xff] %v893_v58  ;;  %v762_v62 = vadd.f32 %v761_v61, %v522_v53  ;;  %1526 = vmatprep.mubr.f32.mxu0 %v1099_v56  ;;  %v5565_v25 = vpop.f32.mrb[16].mxu1 }
 0x1a6   : > { %v894_v4 = vmax.f32 %v760_v57, 0.0  ;;  %v1650_v27 = vpop.f32.mrb[17].mxu1  ;;  %1912 = vmatmul.mubr.f32.gmra.mrb[122].mxu1 %v1252_v16  ;;  %v547_v57 = vpop.permute.xlu1 %546  ;;  %v1263_v16 = vld [vmem:[#allocation7 + $0x768] sm:$0xff] }
 0x1a7   : > { %v895_v8 = vmax.f32 %v762_v62, 0.0  ;;  %v765_v11 = vpop.f32.mrb[30].mxu0  ;;  %1916 = vmatprep.mubr.f32.mxu1 %v1255_v22  ;;  %v1261_v62 = vld [vmem:[#allocation7 + $0x758] sm:$0xff] }
 0x1a8   : > { %958 = vst [vmem:[%s5517_s15 + $0xe0] sm:$0xff] %v894_v4  ;;  %1527 = vmatmul.mubr.f32.gmra.mrb[136].mxu0 %v1098_v2  ;;  %v766_v13 = vadd.f32 %v765_v11, %v527_v3  ;;  %v767_v14 = vpop.f32.mrb[31].mxu0 }
 0x1a9   : > { %959 = vst [vmem:[%s5517_s15 + $0xe8] sm:$0xff] %v895_v8  ;;  %v768_v15 = vadd.f32 %v767_v14, %v527_v3  ;;  %1531 = vmatprep.mubr.f32.mxu0 %v1101_v7  ;;  %v5569_v38 = vpop.f32.mrb[18].mxu1  ;;  %v552_v14 = vpop.permute.xlu0 %551 }
 0x1aa   : > { %v896_v21 = vmax.f32 %v766_v13, 0.0  ;;  %v1655_v41 = vpop.f32.mrb[19].mxu1  ;;  %1917 = vmatmul.mubr.f32.gmra.mrb[124].mxu1 %v1254_v31  ;;  %v1108_v13 = vld [vmem:[#allocation7 + $0x290] sm:$0xff] }
 0x1ab   : > { %v897_v24 = vmax.f32 %v768_v15, 0.0  ;;  %v771_v26 = vpop.f32.mrb[32].mxu0  ;;  %1921 = vmatprep.mubr.f32.mxu1 %v1257_v36 }
 0x1ac   : > { %960 = vst [vmem:[%s5517_s15 + $0xf0] sm:$0xff] %v896_v21  ;;  %1532 = vmatmul.mubr.f32.gmra.mrb[138].mxu0 %v1100_v17  ;;  %v772_v28 = vadd.f32 %v771_v26, %v532_v18  ;;  %v773_v29 = vpop.f32.mrb[33].mxu0  ;;  %v1111_v17 = vld [vmem:[#allocation7 + $0x2a8] sm:$0xff] }
 0x1ad   : > { %961 = vst [vmem:[%s5517_s15 + $0xf8] sm:$0xff] %v897_v24  ;;  %v774_v10 = vadd.f32 %v773_v29, %v532_v18  ;;  %1536 = vmatprep.mubr.f32.mxu0 %v1103_v23  ;;  %v5573_v52 = vpop.f32.mrb[20].mxu1  ;;  %v1110_v29 = vld [vmem:[#allocation7 + $0x2a0] sm:$0xff] }
 0x1ae   : > { %v898_v35 = vmax.f32 %v772_v28, 0.0  ;;  %v1660_v54 = vpop.f32.mrb[21].mxu1  ;;  %1922 = vmatmul.mubr.f32.gmra.mrb[126].mxu1 %v1256_v44  ;;  %v1262_v28 = vld [vmem:[#allocation7 + $0x760] sm:$0xff]  ;;  %v562_v44 = vpop.permute.xlu0 %561 }
 0x1af   : > { %v899_v19 = vmax.f32 %v774_v10, 0.0  ;;  %v777_v40 = vpop.f32.mrb[34].mxu0  ;;  %1926 = vmatprep.mubr.f32.mxu1 %v1259_v39  ;;  %v557_v10 = vpop.permute.xlu1 %556 }
 0x1b0   : > { %962 = vst [vmem:[%s5517_s15 + $0x100] sm:$0xff] %v898_v35  ;;  %1537 = vmatmul.mubr.f32.gmra.mrb[140].mxu0 %v1102_v32  ;;  %v778_v42 = vadd.f32 %v777_v40, %v537_v34  ;;  %v779_v43 = vpop.f32.mrb[35].mxu0  ;;  %v1265_v32 = vld [vmem:[#allocation7 + $0x778] sm:$0xff] }
 0x1b1   : > { %963 = vst [vmem:[%s5517_s15 + $0x108] sm:$0xff] %v899_v19  ;;  %v780_v30 = vadd.f32 %v779_v43, %v537_v34  ;;  %1541 = vmatprep.mubr.f32.mxu0 %v1105_v37  ;;  %v5577_v3 = vpop.f32.mrb[22].mxu1  ;;  %v1113_v34 = vld [vmem:[#allocation7 + $0x2b8] sm:$0xff]  ;;  %v1264_v43 = vld [vmem:[#allocation7 + $0x770] sm:$0xff] }
 0x1b2   : > { %v900_v49 = vmax.f32 %v778_v42, 0.0  ;;  %v1665_v6 = vpop.f32.mrb[23].mxu1  ;;  %1927 = vmatmul.mubr.f32.gmra.mrb[128].mxu1 %v1258_v59  ;;  %v1114_v59 = vld [vmem:[#allocation7 + $0x2c0] sm:$0xff] }
 0x1b3   : > { %v901_v51 = vmax.f32 %v780_v30, 0.0  ;;  %v783_v53 = vpop.f32.mrb[36].mxu0  ;;  %1931 = vmatprep.mubr.f32.mxu1 %v1261_v62  ;;  %v1112_v30 = vld [vmem:[#allocation7 + $0x2b0] sm:$0xff]  ;;  %v1117_v62 = vld [vmem:[#allocation7 + $0x2d8] sm:$0xff] }
 0x1b4   : > { %964 = vst [vmem:[%s5517_s15 + $0x110] sm:$0xff] %v900_v49  ;;  %1542 = vmatmul.mubr.f32.gmra.mrb[142].mxu0 %v1104_v46  ;;  %v784_v48 = vadd.f32 %v783_v53, %v542_v47  ;;  %v785_v56 = vpop.f32.mrb[37].mxu0  ;;  %v1115_v49 = vld [vmem:[#allocation7 + $0x2c8] sm:$0xff] }
 0x1b5   : > { %965 = vst [vmem:[%s5517_s15 + $0x118] sm:$0xff] %v901_v51  ;;  %v786_v58 = vadd.f32 %v785_v56, %v542_v47  ;;  %1546 = vmatprep.mubr.f32.mxu0 %v1107_v50  ;;  %v5581_v21 = vpop.f32.mrb[24].mxu1  ;;  %v1267_v47 = vld [vmem:[#allocation7 + $0x788] sm:$0xff] }
 0x1b6   : > { %v902_v61 = vmax.f32 %v784_v48, 0.0  ;;  %v1670_v23 = vpop.f32.mrb[25].mxu1  ;;  %1932 = vmatmul.mubr.f32.gmra.mrb[130].mxu1 %v1260_v12  ;;  %v1268_v12 = vld [vmem:[#allocation7 + $0x790] sm:$0xff] }
 0x1b7   : > { %v903_v2 = vmax.f32 %v786_v58, 0.0  ;;  %v789_v4 = vpop.f32.mrb[38].mxu0  ;;  %1936 = vmatprep.mubr.f32.mxu1 %v1263_v16  ;;  %v1266_v58 = vld [vmem:[#allocation7 + $0x780] sm:$0xff]  ;;  %v1271_v16 = vld [vmem:[#allocation7 + $0x7a8] sm:$0xff] }
 0x1b8   : > { %966 = vst [vmem:[%s5517_s15 + $0x120] sm:$0xff] %v902_v61  ;;  %1547 = vmatmul.mubr.f32.gmra.mrb[144].mxu0 %v1106_v60  ;;  %v790_v7 = vadd.f32 %v789_v4, %v547_v57  ;;  %v791_v8 = vpop.f32.mrb[39].mxu0  ;;  %v567_v60 = vpop.permute.xlu1 %566  ;;  %v1269_v61 = vld [vmem:[#allocation7 + $0x798] sm:$0xff] }
 0x1b9   : > { %967 = vst [vmem:[%s5517_s15 + $0x128] sm:$0xff] %v903_v2  ;;  %v792_v11 = vadd.f32 %v791_v8, %v547_v57  ;;  %1551 = vmatprep.mubr.f32.mxu0 %v1109_v63  ;;  %v5585_v36 = vpop.f32.mrb[26].mxu1 }
 0x1ba   : > { %v904_v15 = vmax.f32 %v790_v7, 0.0  ;;  %v1675_v19 = vpop.f32.mrb[27].mxu1  ;;  %1937 = vmatmul.mubr.f32.gmra.mrb[132].mxu1 %v1262_v28 }
 0x1bb   : > { %v905_v18 = vmax.f32 %v792_v11, 0.0  ;;  %v795_v22 = vpop.f32.mrb[40].mxu0  ;;  %1941 = vmatprep.mubr.f32.mxu1 %v1265_v32 }
 0x1bc   : > { %968 = vst [vmem:[%s5517_s15 + $0x130] sm:$0xff] %v904_v15  ;;  %1552 = vmatmul.mubr.f32.gmra.mrb[146].mxu0 %v1108_v13  ;;  %v796_v24 = vadd.f32 %v795_v22, %v552_v14  ;;  %v797_v26 = vpop.f32.mrb[41].mxu0  ;;  %v1116_v13 = vld [vmem:[#allocation7 + $0x2d0] sm:$0xff] }
 0x1bd   : > { %969 = vst [vmem:[%s5517_s15 + $0x138] sm:$0xff] %v905_v18  ;;  %v798_v27 = vadd.f32 %v797_v26, %v552_v14  ;;  %1556 = vmatprep.mubr.f32.mxu0 %v1111_v17  ;;  %v5589_v50 = vpop.f32.mrb[28].mxu1  ;;  %v572_v14 = vpop.permute.xlu0 %571  ;;  %v1119_v17 = vld [vmem:[#allocation7 + $0x2e8] sm:$0xff] }
 0x1be   : > { %v906_v31 = vmax.f32 %v796_v24, 0.0  ;;  %v1680_v53 = vpop.f32.mrb[29].mxu1  ;;  %1942 = vmatmul.mubr.f32.gmra.mrb[134].mxu1 %v1264_v43 }
 0x1bf   : > { %v907_v35 = vmax.f32 %v798_v27, 0.0  ;;  %v801_v37 = vpop.f32.mrb[42].mxu0  ;;  %1946 = vmatprep.mubr.f32.mxu1 %v1267_v47 }
 0x1c0   : > { %970 = vst [vmem:[%s5517_s15 + $0x140] sm:$0xff] %v906_v31  ;;  %1557 = vmatmul.mubr.f32.gmra.mrb[148].mxu0 %v1110_v29  ;;  %v802_v40 = vadd.f32 %v801_v37, %v557_v10  ;;  %v803_v41 = vpop.f32.mrb[43].mxu0  ;;  %v1270_v29 = vld [vmem:[#allocation7 + $0x7a0] sm:$0xff]  ;;  %v577_v31 = vpop.permute.xlu1 %576 }
 0x1c1   : > { %971 = vst [vmem:[%s5517_s15 + $0x148] sm:$0xff] %v907_v35  ;;  %v804_v42 = vadd.f32 %v803_v41, %v557_v10  ;;  %1561 = vmatprep.mubr.f32.mxu0 %v1113_v34  ;;  %v5593_v2 = vpop.f32.mrb[30].mxu1  ;;  %v1118_v10 = vld [vmem:[#allocation7 + $0x2e0] sm:$0xff]  ;;  %v1273_v34 = vld [vmem:[#allocation7 + $0x7b8] sm:$0xff]  ;;  %v582_v47 = vpop.permute.xlu0 %581 }
 0x1c2   : > { %v908_v46 = vmax.f32 %v802_v40, 0.0  ;;  %v1685_v6 = vpop.f32.mrb[31].mxu1  ;;  %1947 = vmatmul.mubr.f32.gmra.mrb[136].mxu1 %v1266_v58  ;;  %v1121_v35 = vld [vmem:[#allocation7 + $0x2f8] sm:$0xff] }
 0x1c3   : > { %v909_v39 = vmax.f32 %v804_v42, 0.0  ;;  %v807_v51 = vpop.f32.mrb[44].mxu0  ;;  %1951 = vmatprep.mubr.f32.mxu1 %v1269_v61  ;;  %v1122_v61 = vld [vmem:[#allocation7 + $0x300] sm:$0xff]  ;;  %v1125_v6 = vld [vmem:[#allocation7 + $0x318] sm:$0xff] }
 0x1c4   : > { %972 = vst [vmem:[%s5517_s15 + $0x150] sm:$0xff] %v908_v46  ;;  %1562 = vmatmul.mubr.f32.gmra.mrb[150].mxu0 %v1112_v30  ;;  %v808_v54 = vadd.f32 %v807_v51, %v562_v44  ;;  %v809_v48 = vpop.f32.mrb[45].mxu0  ;;  %v1120_v46 = vld [vmem:[#allocation7 + $0x2f0] sm:$0xff]  ;;  %v1123_v51 = vld [vmem:[#allocation7 + $0x308] sm:$0xff] }
 0x1c5   : > { %973 = vst [vmem:[%s5517_s15 + $0x158] sm:$0xff] %v909_v39  ;;  %v810_v56 = vadd.f32 %v809_v48, %v562_v44  ;;  %1566 = vmatprep.mubr.f32.mxu0 %v1115_v49  ;;  %v5597_v22 = vpop.f32.mrb[32].mxu1  ;;  %v1272_v44 = vld [vmem:[#allocation7 + $0x7b0] sm:$0xff]  ;;  %v1275_v39 = vld [vmem:[#allocation7 + $0x7c8] sm:$0xff] }
 0x1c6   : > { %v910_v57 = vmax.f32 %v808_v54, 0.0  ;;  %v1690_v24 = vpop.f32.mrb[33].mxu1  ;;  %1952 = vmatmul.mubr.f32.gmra.mrb[138].mxu1 %v1268_v12 }
 0x1c7   : > { %v911_v63 = vmax.f32 %v810_v56, 0.0  ;;  %v813_v4 = vpop.f32.mrb[46].mxu0  ;;  %1956 = vmatprep.mubr.f32.mxu1 %v1271_v16  ;;  %v1276_v16 = vld [vmem:[#allocation7 + $0x7d0] sm:$0xff]  ;;  %v1279_v24 = vld [vmem:[#allocation7 + $0x7e8] sm:$0xff] }
 0x1c8   : > { %974 = vst [vmem:[%s5517_s15 + $0x160] sm:$0xff] %v910_v57  ;;  %1567 = vmatmul.mubr.f32.gmra.mrb[152].mxu0 %v1114_v59  ;;  %v814_v7 = vadd.f32 %v813_v4, %v567_v60  ;;  %v815_v8 = vpop.f32.mrb[47].mxu0  ;;  %v1274_v57 = vld [vmem:[#allocation7 + $0x7c0] sm:$0xff]  ;;  %v1277_v4 = vld [vmem:[#allocation7 + $0x7d8] sm:$0xff] }
 0x1c9   : > { %975 = vst [vmem:[%s5517_s15 + $0x168] sm:$0xff] %v911_v63  ;;  %v816_v11 = vadd.f32 %v815_v8, %v567_v60  ;;  %1571 = vmatprep.mubr.f32.mxu0 %v1117_v62  ;;  %v5601_v19 = vpop.f32.mrb[34].mxu1  ;;  %v587_v62 = vpop.permute.xlu1 %586 }
 0x1ca   : > { %v912_v15 = vmax.f32 %v814_v7, 0.0  ;;  %v1695_v41 = vpop.f32.mrb[35].mxu1  ;;  %1957 = vmatmul.mubr.f32.gmra.mrb[140].mxu1 %v1270_v29 }
 0x1cb   : > { %v913_v18 = vmax.f32 %v816_v11, 0.0  ;;  %v819_v23 = vpop.f32.mrb[48].mxu0  ;;  %1961 = vmatprep.mubr.f32.mxu1 %v1273_v34 }
 0x1cc   : > { %976 = vst [vmem:[%s5517_s15 + $0x170] sm:$0xff] %v912_v15  ;;  %1572 = vmatmul.mubr.f32.gmra.mrb[154].mxu0 %v1116_v13  ;;  %v820_v26 = vadd.f32 %v819_v23, %v572_v14  ;;  %v821_v27 = vpop.f32.mrb[49].mxu0 }
 0x1cd   : > { %977 = vst [vmem:[%s5517_s15 + $0x178] sm:$0xff] %v913_v18  ;;  %v822_v28 = vadd.f32 %v821_v27, %v572_v14  ;;  %1576 = vmatprep.mubr.f32.mxu0 %v1119_v17  ;;  %v5605_v54 = vpop.f32.mrb[36].mxu1  ;;  %v1124_v17 = vld [vmem:[#allocation7 + $0x310] sm:$0xff]  ;;  %v592_v18 = vpop.permute.xlu0 %591 }
 0x1ce   : > { %v914_v32 = vmax.f32 %v820_v26, 0.0  ;;  %8558 = vst [vmem:[#allocation13_spill] sm:$0xff] %v5605_v54  ;;  %v1700_v56 = vpop.f32.mrb[37].mxu1  ;;  %1962 = vmatmul.mubr.f32.gmra.mrb[142].mxu1 %v1272_v44  ;;  %v1127_v26 = vld [vmem:[#allocation7 + $0x328] sm:$0xff] }
 0x1cf   : > { %v915_v37 = vmax.f32 %v822_v28, 0.0  ;;  %v825_v40 = vpop.f32.mrb[50].mxu0  ;;  %1966 = vmatprep.mubr.f32.mxu1 %v1275_v39 }
 0x1d0   : > { %978 = vst [vmem:[%s5517_s15 + $0x180] sm:$0xff] %v914_v32  ;;  %1577 = vmatmul.mubr.f32.gmra.mrb[156].mxu0 %v1118_v10  ;;  %v826_v42 = vadd.f32 %v825_v40, %v577_v31  ;;  %v827_v43 = vpop.f32.mrb[51].mxu0  ;;  %v597_v40 = vpop.permute.xlu1 %596 }
 0x1d1   : > { %979 = vst [vmem:[%s5517_s15 + $0x188] sm:$0xff] %v915_v37  ;;  %v828_v30 = vadd.f32 %v827_v43, %v577_v31  ;;  %1581 = vmatprep.mubr.f32.mxu0 %v1121_v35  ;;  %v5609_v8 = vpop.f32.mrb[38].mxu1  ;;  %v1278_v35 = vld [vmem:[#allocation7 + $0x7e0] sm:$0xff]  ;;  %v1129_v43 = vld [vmem:[#allocation7 + $0x338] sm:$0xff]  ;;  %v602_v56 = vpop.permute.xlu0 %601 }
 0x1d2   : > { %v916_v49 = vmax.f32 %v826_v42, 0.0  ;;  %v1705_v12 = vpop.f32.mrb[39].mxu1  ;;  %1967 = vmatmul.mubr.f32.gmra.mrb[144].mxu1 %v1274_v57  ;;  %v1126_v37 = vld [vmem:[#allocation7 + $0x320] sm:$0xff]  ;;  %v1281_v42 = vld [vmem:[#allocation7 + $0x7f8] sm:$0xff] }
 0x1d3   : > { %v917_v53 = vmax.f32 %v828_v30, 0.0  ;;  %v831_v48 = vpop.f32.mrb[52].mxu0  ;;  %1971 = vmatprep.mubr.f32.mxu1 %v1277_v4 }
 0x1d4   : > { %980 = vst [vmem:[%s5517_s15 + $0x190] sm:$0xff] %v916_v49  ;;  %1582 = vmatmul.mubr.f32.gmra.mrb[158].mxu0 %v1120_v46  ;;  %v832_v58 = vadd.f32 %v831_v48, %v582_v47  ;;  %v833_v59 = vpop.f32.mrb[53].mxu0  ;;  %v1128_v48 = vld [vmem:[#allocation7 + $0x330] sm:$0xff] }
 0x1d5   : > { %981 = vst [vmem:[%s5517_s15 + $0x198] sm:$0xff] %v917_v53  ;;  %v834_v60 = vadd.f32 %v833_v59, %v582_v47  ;;  %1586 = vmatprep.mubr.f32.mxu0 %v1123_v51  ;;  %v5613_v28 = vpop.f32.mrb[40].mxu1  ;;  %v1280_v53 = vld [vmem:[#allocation7 + $0x7f0] sm:$0xff] }
 0x1d6   : > { %v918_v63 = vmax.f32 %v832_v58, 0.0  ;;  %v1710_v10 = vpop.f32.mrb[41].mxu1  ;;  %1972 = vmatmul.mubr.f32.gmra.mrb[146].mxu1 %v1276_v16 }
 0x1d7   : > { %v919_v7 = vmax.f32 %v834_v60, 0.0  ;;  %v837_v11 = vpop.f32.mrb[54].mxu0  ;;  %1976 = vmatprep.mubr.f32.mxu1 %v1279_v24 }
 0x1d8   : > { %982 = vst [vmem:[%s5517_s15 + $0x1a0] sm:$0xff] %v918_v63  ;;  %1587 = vmatmul.mubr.f32.gmra.mrb[160].mxu0 %v1122_v61  ;;  %v838_v13 = vadd.f32 %v837_v11, %v587_v62  ;;  %v839_v14 = vpop.f32.mrb[55].mxu0 }
 0x1d9   : > { %983 = vst [vmem:[%s5517_s15 + $0x1a8] sm:$0xff] %v919_v7  ;;  %v840_v15 = vadd.f32 %v839_v14, %v587_v62  ;;  %1591 = vmatprep.mubr.f32.mxu0 %v1125_v6  ;;  %v5617_v44 = vpop.f32.mrb[42].mxu1  ;;  %v607_v6 = vpop.permute.xlu1 %606 }
 0x1da   : > { %v920_v23 = vmax.f32 %v838_v13, 0.0  ;;  %v1715_v49 = vpop.f32.mrb[43].mxu1  ;;  %1977 = vmatmul.mubr.f32.gmra.mrb[148].mxu1 %v1278_v35 }
 0x1db   : > { %v921_v27 = vmax.f32 %v840_v15, 0.0  ;;  %v843_v29 = vpop.f32.mrb[56].mxu0  ;;  %1981 = vmatprep.mubr.f32.mxu1 %v1281_v42 }
 0x1dc   : > { %984 = vst [vmem:[%s5517_s15 + $0x1b0] sm:$0xff] %v920_v23  ;;  %v844_v31 = vadd.f32 %v843_v29, %v592_v18  ;;  %v845_v32 = vpop.f32.mrb[57].mxu0  ;;  %1592 = vmatmul.mubr.f32.gmra.mrb[162].mxu0 %v1124_v17 }
 0x1dd   : > { %985 = vst [vmem:[%s5517_s15 + $0x1b8] sm:$0xff] %v921_v27  ;;  %v846_v34 = vadd.f32 %v845_v32, %v592_v18  ;;  %1596 = vmatprep.mubr.f32.mxu0 %v1127_v26  ;;  %v5621_v60 = vpop.f32.mrb[44].mxu1  ;;  %v5629_v18 = vpop.permute.xlu0 %2068 }
 0x1de   : > { %v922_v41 = vmax.f32 %v844_v31, 0.0  ;;  %v1720_v62 = vpop.f32.mrb[45].mxu1  ;;  %1982 = vmatmul.mubr.f32.gmra.mrb[150].mxu1 %v1280_v53  ;;  %v5637_v31 = vpop.permute.xlu1 %2073 }
 0x1df   : > { %v923_v30 = vmax.f32 %v846_v34, 0.0  ;;  %v849_v46 = vpop.f32.mrb[58].mxu0 }
 0x1e0   : > { %986 = vst [vmem:[%s5517_s15 + $0x1c0] sm:$0xff] %v922_v41  ;;  %v850_v47 = vadd.f32 %v849_v46, %v597_v40  ;;  %v851_v39 = vpop.f32.mrb[59].mxu0  ;;  %1597 = vmatmul.mubr.f32.gmra.mrb[164].mxu0 %v1126_v37 }
 0x1e1   : > { %987 = vst [vmem:[%s5517_s15 + $0x1c8] sm:$0xff] %v923_v30  ;;  %v852_v51 = vadd.f32 %v851_v39, %v597_v40  ;;  %1601 = vmatprep.mubr.f32.mxu0 %v1129_v43  ;;  %v5625_v12 = vpop.f32.mrb[46].mxu1  ;;  %v5643_v40 = vpop.permute.xlu0 %2078 }
 0x1e2   : > { %v924_v58 = vmax.f32 %v850_v47, 0.0  ;;  %v1725_v15 = vpop.f32.mrb[47].mxu1  ;;  %v5649_v46 = vpop.permute.xlu1 %2083 }
 0x1e3   : > { %v925_v59 = vmax.f32 %v852_v51, 0.0  ;;  %v855_v57 = vpop.f32.mrb[60].mxu0 }
 0x1e4   : > { %988 = vst [vmem:[%s5517_s15 + $0x1d0] sm:$0xff] %v924_v58  ;;  %v856_v61 = vadd.f32 %v855_v57, %v602_v56  ;;  %v857_v63 = vpop.f32.mrb[61].mxu0  ;;  %1602 = vmatmul.mubr.f32.gmra.mrb[166].mxu0 %v1128_v48 }
 0x1e5   : > { %989 = vst [vmem:[%s5517_s15 + $0x1d8] sm:$0xff] %v925_v59  ;;  %v858_v4 = vadd.f32 %v857_v63, %v602_v56  ;;  %v5631_v26 = vpop.f32.mrb[48].mxu1  ;;  %v5655_v53 = vpop.permute.xlu0 %2088 }
 0x1e6   : > { %v926_v7 = vmax.f32 %v856_v61, 0.0  ;;  %v1730_v29 = vpop.f32.mrb[49].mxu1  ;;  %v5661_v57 = vpop.permute.xlu1 %2093 }
 0x1e7   : > { %v927_v11 = vmax.f32 %v858_v4, 0.0  ;;  %v861_v13 = vpop.f32.mrb[62].mxu0 }
 0x1e8   : > { %990 = vst [vmem:[%s5517_s15 + $0x1e0] sm:$0xff] %v926_v7  ;;  %v862_v14 = vadd.f32 %v861_v13, %v607_v6  ;;  %v863_v16 = vpop.f32.mrb[63].mxu0 }
 0x1e9   : > { %991 = vst [vmem:[%s5517_s15 + $0x1e8] sm:$0xff] %v927_v11  ;;  %v864_v17 = vadd.f32 %v863_v16, %v607_v6  ;;  %v5639_v32 = vpop.f32.mrb[50].mxu1  ;;  %v5667_v6 = vpop.permute.xlu0 %2098 }
 0x1ea   : > { %v928_v23 = vmax.f32 %v862_v14, 0.0  ;;  %v1735_v35 = vpop.f32.mrb[51].mxu1  ;;  %v5673_v15 = vpop.permute.xlu1 %2103 }
 0x1eb   : > { %v929_v24 = vmax.f32 %v864_v17, 0.0  ;;  %v5633_v27 = vpop.f32.mrb[64].mxu0 }
 0x1ec   : > { %992 = vst [vmem:[%s5517_s15 + $0x1f0] sm:$0xff] %v928_v23  ;;  %v1350_v10 = vpop.f32.mrb[65].mxu0 }
 0x1ed   : > { %993 = vst [vmem:[%s5517_s15 + $0x1f8] sm:$0xff] %v929_v24  ;;  %v5645_v41 = vpop.f32.mrb[52].mxu1  ;;  %v5679_v29 = vpop.permute.xlu0 %2108 }
 0x1ee   : > { %v1740_v43 = vpop.f32.mrb[53].mxu1  ;;  %8563 = vst [vmem:[#allocation18_spill] sm:$0xff] %v5679_v29 }
 0x1ef   : > { %v5641_v34 = vpop.f32.mrb[66].mxu0 }
 0x1f0   : > { %v1355_v37 = vpop.f32.mrb[67].mxu0 }
 0x1f1   : > { %v5651_v47 = vpop.f32.mrb[54].mxu1 }
 0x1f2   : > { %v1745_v39 = vpop.f32.mrb[55].mxu1 }
 0x1f3   : > { %v5647_v42 = vpop.f32.mrb[68].mxu0 }
 0x1f4   : > { %v1360_v30 = vpop.f32.mrb[69].mxu0 }
 0x1f5   : > { %v5657_v48 = vpop.f32.mrb[56].mxu1  ;;  %v5685_v30 = vpop.permute.xlu1 %2113 }
 0x1f6   : > { %8559 = vst [vmem:[#allocation14_spill] sm:$0xff] %v5657_v48  ;;  %v1750_v58 = vpop.f32.mrb[57].mxu1  ;;  %8566 = vst [vmem:[#allocation21_spill] sm:$0xff] %v5685_v30 }
 0x1f7   : > { %v5653_v49 = vpop.f32.mrb[70].mxu0 }
 0x1f8   : > { %v1365_v51 = vpop.f32.mrb[71].mxu0 }
 0x1f9   : > { %v5663_v61 = vpop.f32.mrb[58].mxu1 }
 0x1fa   : > { %8560 = vst [vmem:[#allocation15_spill] sm:$0xff] %v5663_v61  ;;  %v1755_v63 = vpop.f32.mrb[59].mxu1 }
 0x1fb   : > { %v5659_v56 = vpop.f32.mrb[72].mxu0  ;;  %v5691_v63 = vpop.permute.xlu0 %2118 }
 0x1fc   : > { %v1370_v59 = vpop.f32.mrb[73].mxu0  ;;  %8569 = vst [vmem:[#allocation24_spill] sm:$0xff] %v5691_v63 }
 0x1fd   : > { %v5669_v7 = vpop.f32.mrb[60].mxu1 }
 0x1fe   : > { %8561 = vst [vmem:[#allocation16_spill] sm:$0xff] %v5669_v7  ;;  %v1760_v13 = vpop.f32.mrb[61].mxu1 }
 0x1ff   : > { %v5665_v62 = vpop.f32.mrb[74].mxu0  ;;  %v5703_v29 = vpop.permute.xlu0 %2128 }
 0x200   : > { %v1375_v4 = vpop.f32.mrb[75].mxu0  ;;  %8575 = vst [vmem:[#allocation30_spill] sm:$0xff] %v5703_v29 }
 0x201   : > { %v5675_v16 = vpop.f32.mrb[62].mxu1 }
 0x202   : > { %8562 = vst [vmem:[#allocation17_spill] sm:$0xff] %v5675_v16  ;;  %v1765_v23 = vpop.f32.mrb[63].mxu1 }
 0x203   : > { %v5671_v11 = vpop.f32.mrb[76].mxu0 }
 0x204   : > { %v1380_v14 = vpop.f32.mrb[77].mxu0 }
 0x205   : > { %v5681_v10 = vpop.f32.mrb[64].mxu1 }
 0x206   : > { %8564 = vst [vmem:[#allocation19_spill] sm:$0xff] %v5681_v10  ;;  %v1770_v37 = vpop.f32.mrb[65].mxu1 }
 0x207   : > { %v5677_v17 = vpop.f32.mrb[78].mxu0  ;;  %v8647_v10 = vld [vmem:[#allocation30_spill] sm:$0xff] }
 0x208   : > { %v1385_v24 = vpop.f32.mrb[79].mxu0 }
 0x209   : > { %v5687_v39 = vpop.f32.mrb[66].mxu1  ;;  %v5697_v24 = vpop.permute.xlu1 %2123 }
 0x20a   : > { %8567 = vst [vmem:[#allocation22_spill] sm:$0xff] %v5687_v39  ;;  %v1775_v58 = vpop.f32.mrb[67].mxu1  ;;  %8572 = vst [vmem:[#allocation27_spill] sm:$0xff] %v5697_v24 }
 0x20b   : > { %v5683_v35 = vpop.f32.mrb[80].mxu0 }
 0x20c   : > { %8565 = vst [vmem:[#allocation20_spill] sm:$0xff] %v5683_v35  ;;  %v1390_v43 = vpop.f32.mrb[81].mxu0 }
 0x20d   : > { %v5693_v4 = vpop.f32.mrb[68].mxu1 }
 0x20e   : > { %8570 = vst [vmem:[#allocation25_spill] sm:$0xff] %v5693_v4  ;;  %v1780_v14 = vpop.f32.mrb[69].mxu1 }
 0x20f   : > { %v5689_v51 = vpop.f32.mrb[82].mxu0 }
 0x210   : > { %8568 = vst [vmem:[#allocation23_spill] sm:$0xff] %v5689_v51  ;;  %v1395_v59 = vpop.f32.mrb[83].mxu0  ;;  %v5709_v51 = vpop.permute.xlu1 %2133 }
 0x211   : > { %v5699_v37 = vpop.f32.mrb[70].mxu1  ;;  %8578 = vst [vmem:[#allocation33_spill] sm:$0xff] %v5709_v51 }
 0x212   : > { %8573 = vst [vmem:[#allocation28_spill] sm:$0xff] %v5699_v37  ;;  %v1785_v30 = vpop.f32.mrb[71].mxu1 }
 0x213   : > { %v5695_v13 = vpop.f32.mrb[84].mxu0 }
 0x214   : > { %8571 = vst [vmem:[#allocation26_spill] sm:$0xff] %v5695_v13  ;;  %v1400_v23 = vpop.f32.mrb[85].mxu0  ;;  %v5715_v13 = vpop.permute.xlu0 %2138 }
 0x215   : > { %v5705_v58 = vpop.f32.mrb[72].mxu1  ;;  %8581 = vst [vmem:[#allocation36_spill] sm:$0xff] %v5715_v13 }
 0x216   : > { %8576 = vst [vmem:[#allocation31_spill] sm:$0xff] %v5705_v58  ;;  %v1790_v63 = vpop.f32.mrb[73].mxu1 }
 0x217   : > { %v5701_v43 = vpop.f32.mrb[86].mxu0 }
 0x218   : > { %8574 = vst [vmem:[#allocation29_spill] sm:$0xff] %v5701_v43  ;;  %v1405_v39 = vpop.f32.mrb[87].mxu0  ;;  %v5721_v43 = vpop.permute.xlu1 %2143 }
 0x219   : > { %v5711_v14 = vpop.f32.mrb[74].mxu1  ;;  %8584 = vst [vmem:[#allocation39_spill] sm:$0xff] %v5721_v43 }
 0x21a   : > { %8579 = vst [vmem:[#allocation34_spill] sm:$0xff] %v5711_v14  ;;  %v1795_v24 = vpop.f32.mrb[75].mxu1 }
 0x21b   : > { %v5707_v59 = vpop.f32.mrb[88].mxu0 }
 0x21c   : > { %8577 = vst [vmem:[#allocation32_spill] sm:$0xff] %v5707_v59  ;;  %v1410_v4 = vpop.f32.mrb[89].mxu0  ;;  %v5727_v59 = vpop.permute.xlu0 %2148 }
 0x21d   : > { %v5717_v30 = vpop.f32.mrb[76].mxu1  ;;  %8587 = vst [vmem:[#allocation42_spill] sm:$0xff] %v5727_v59 }
 0x21e   : > { %8582 = vst [vmem:[#allocation37_spill] sm:$0xff] %v5717_v30  ;;  %v1800_v29 = vpop.f32.mrb[77].mxu1 }
 0x21f   : > { %v5713_v23 = vpop.f32.mrb[90].mxu0 }
 0x220   : > { %8580 = vst [vmem:[#allocation35_spill] sm:$0xff] %v5713_v23  ;;  %v1415_v37 = vpop.f32.mrb[91].mxu0  ;;  %v1987_v23 = vlaneseq  ;;  %v8659_v7 = vld [vmem:[#allocation39_spill] sm:$0xff] }
 0x221   : > { %v5723_v63 = vpop.f32.mrb[78].mxu1 }
 0x222   : > { %8585 = vst [vmem:[#allocation40_spill] sm:$0xff] %v5723_v63  ;;  %v1805_v51 = vpop.f32.mrb[79].mxu1 }
 0x223   : > { %v5719_v39 = vpop.f32.mrb[92].mxu0  ;;  %v5739_v51 = vpop.permute.xlu0 %2158 }
 0x224   : > { %8583 = vst [vmem:[#allocation38_spill] sm:$0xff] %v5719_v39  ;;  %v1420_v58 = vpop.f32.mrb[93].mxu0  ;;  %v5733_v39 = vpop.permute.xlu1 %2153  ;;  %8593 = vst [vmem:[#allocation48_spill] sm:$0xff] %v5739_v51  ;;  %v8663_v61 = vld [vmem:[#allocation42_spill] sm:$0xff] }
 0x225   : > { %v5729_v24 = vpop.f32.mrb[80].mxu1  ;;  %8590 = vst [vmem:[#allocation45_spill] sm:$0xff] %v5733_v39 }
 0x226   : > { %8588 = vst [vmem:[#allocation43_spill] sm:$0xff] %v5729_v24  ;;  %v1810_v13 = vpop.f32.mrb[81].mxu1 }
 0x227   : > { %v5725_v4 = vpop.f32.mrb[94].mxu0 }
 0x228   : > { %8586 = vst [vmem:[#allocation41_spill] sm:$0xff] %v5725_v4  ;;  %v1425_v14 = vpop.f32.mrb[95].mxu0  ;;  %v1988_v4 = vand.u32 127, %v1987_v23  ;;  %v5755_v23 = vpop.permute.xlu0 %2168 }
 0x229   : > { %v5735_v29 = vpop.f32.mrb[82].mxu1  ;;  %8601 = vst [vmem:[#allocation54_spill] sm:$0xff] %v5755_v23 }
 0x22a   : > { %8591 = vst [vmem:[#allocation46_spill] sm:$0xff] %v5735_v29  ;;  %v1815_v43 = vpop.f32.mrb[83].mxu1  ;;  %v1993_v13 = vand.u32 1, %v1988_v4 }
 0x22b   : > { %v5731_v37 = vpop.f32.mrb[96].mxu0 }
 0x22c   : > { %8589 = vst [vmem:[#allocation44_spill] sm:$0xff] %v5731_v37  ;;  %v1430_v30 = vpop.f32.mrb[97].mxu0  ;;  %vm5751_vm0 = vcmp.eq.s32.totalorder %v1993_v13, 0  ;;  %v8667_v48 = vld [vmem:[#allocation45_spill] sm:$0xff] }
 0x22d   : > { %v5741_v14 = vpop.f32.mrb[84].mxu1  ;;  %v5745_v30 = vpop.permute.xlu1 %2163 }
 0x22e   : > { %8594 = vst [vmem:[#allocation49_spill] sm:$0xff] %v5741_v14  ;;  %v1820_v24 = vpop.f32.mrb[85].mxu1  ;;  %8596 = vst [vmem:[#allocation51_spill] sm:$0xff] %v5745_v30 }
 0x22f   : > { %v5737_v58 = vpop.f32.mrb[98].mxu0 }
 0x230   : > { %8592 = vst [vmem:[#allocation47_spill] sm:$0xff] %v5737_v58  ;;  %v1435_v63 = vpop.f32.mrb[99].mxu0 }
 0x231   : > { %v5747_v35 = vpop.f32.mrb[86].mxu1  ;;  %v5765_v13 = vpop.permute.xlu1 %2173 }
 0x232   : > { %8597 = vst [vmem:[#allocation52_spill] sm:$0xff] %v5747_v35  ;;  %v1825_v29 = vpop.f32.mrb[87].mxu1  ;;  %8602 = vst [vmem:[#allocation55_spill] sm:$0xff] %v5765_v13 }
 0x233   : > { %v5743_v59 = vpop.f32.mrb[100].mxu0 }
 0x234   : > { %8595 = vst [vmem:[#allocation50_spill] sm:$0xff] %v5743_v59  ;;  %v1440_v37 = vpop.f32.mrb[101].mxu0 }
 0x235   : > { %v1828_v63 = vpop.f32.mrb[88].mxu1 }
 0x236   : > { %v3254_v4 = vsel %vm5751_vm0, %v5581_v21, %v1828_v63  ;;  %v1830_v37 = vpop.f32.mrb[89].mxu1 }
 0x237   : > { %v5749_v39 = vpop.f32.mrb[102].mxu0  ;;  %v3286_v29 = vadd.f32 %v3254_v4, %v5629_v18  ;;  %v5784_v37 = vpop.permute.xlu0 %2178 }
 0x238   : > { %8598 = vst [vmem:[#allocation53_spill] sm:$0xff] %v5749_v39  ;;  %v1445_v58 = vpop.f32.mrb[103].mxu0  ;;  %8604 = vst [vmem:[#allocation57_spill] sm:$0xff] %v5784_v37 }
 0x239   : > { %v5767_v39 = vmax.f32 %v3286_v29, 0.0  ;;  %v1833_v59 = vpop.f32.mrb[90].mxu1 }
 0x23b   : > { %v1448_v51 = vpop.f32.mrb[104].mxu0  ;;  %8603 = vst [vmem:[#allocation56_spill] sm:$0xff] %v5767_v39  ;;  %3382 = vrot.lane.b32.xlu0 %v5767_v39, %s4873_s12 }
 0x23c   : > { %v2054_v24 = vsel %vm5751_vm0, %v1448_v51, %v5533_v0  ;;  %v1450_v30 = vpop.f32.mrb[105].mxu0  ;;  %v3255_v0 = vsel %vm5751_vm0, %v5585_v36, %v1833_v59 }
 0x23d   : > { %v2246_v58 = vadd.f32 %v5755_v23, %v2054_v24  ;;  %v1835_v30 = vpop.f32.mrb[91].mxu1  ;;  %v3287_v4 = vadd.f32 %v3255_v0, %v5637_v31 }
 0x23f   : > { %v5769_v35 = vmax.f32 %v2246_v58, 0.0  ;;  %v1453_v21 = vpop.f32.mrb[106].mxu0  ;;  %v5786_v36 = vmax.f32 %v3287_v4, 0.0 }
 0x240   : > { %v2055_v51 = vsel %vm5751_vm0, %v1453_v21, %v5537_v55  ;;  %v1455_v63 = vpop.f32.mrb[107].mxu0  ;;  %v5790_v55 = vpop.f32.mrb[92].mxu1 }
 0x241   : > { %v2247_v24 = vadd.f32 %v5765_v13, %v2055_v51  ;;  %2311 = vst.msk [vmem:[%s5517_s15 + $0x340] sm:$0xff] %vm2290_vm1, %v5769_v35  ;;  %8605 = vst [vmem:[#allocation58_spill] sm:$0xff] %v5786_v36  ;;  %v1840_v0 = vpop.f32.mrb[93].mxu1  ;;  %3384 = vrot.lane.b32.xlu1 %v5786_v36, %s4873_s12  ;;  %2395 = vrot.lane.b32.xlu0 %v5769_v35, %s4873_s12  ;;  %v5807_v63 = vpop.permute.xlu1 %2183 }
 0x242   : > { %8606 = vst [vmem:[#allocation59_spill] sm:$0xff] %v5807_v63 }
 0x243   : > { %v5788_v59 = vmax.f32 %v2247_v24, 0.0  ;;  %v1458_v29 = vpop.f32.mrb[108].mxu0  ;;  %v5811_v24 = vpop.f32.mrb[94].mxu1 }
 0x244   : > { %v2056_v21 = vsel %vm5751_vm0, %v1458_v29, %v5541_v5  ;;  %v1460_v51 = vpop.f32.mrb[109].mxu0  ;;  %v1845_v0 = vpop.f32.mrb[95].mxu1 }
 0x245   : > { %v2248_v30 = vadd.f32 %v5784_v37, %v2056_v21  ;;  %2312 = vst.msk [vmem:[%s5517_s15 + $0x350] sm:$0xff] %vm2290_vm1, %v5788_v59  ;;  %2524 = vrot.lane.b32.xlu0 %v5769_v35, %s4874_s30  ;;  %2397 = vrot.lane.b32.xlu1 %v5788_v59, %s4873_s12 }
 0x247   : > { %v5809_v4 = vmax.f32 %v2248_v30, 0.0  ;;  %v1463_v5 = vpop.f32.mrb[110].mxu0  ;;  %v5828_v30 = vpop.permute.xlu0 %2188 }
 0x248   : > { %v2057_v21 = vsel %vm5751_vm0, %v1463_v5, %v5545_v20  ;;  %v1465_v51 = vpop.f32.mrb[111].mxu0  ;;  %8607 = vst [vmem:[#allocation60_spill] sm:$0xff] %v5828_v30  ;;  %v5832_v20 = vpop.f32.mrb[96].mxu1 }
 0x249   : > { %v2249_v58 = vadd.f32 %v5807_v63, %v2057_v21  ;;  %2313 = vst.msk [vmem:[%s5517_s15 + $0x360] sm:$0xff] %vm2290_vm1, %v5809_v4  ;;  %v1850_v51 = vpop.f32.mrb[97].mxu1  ;;  %2653 = vrot.lane.b32.xlu0 %v5769_v35, %s4875_s27  ;;  %2526 = vrot.lane.b32.xlu1 %v5788_v59, %s4874_s30 }
 0x24b   : > { %v5830_v29 = vmax.f32 %v2249_v58, 0.0  ;;  %v1468_v5 = vpop.f32.mrb[112].mxu0  ;;  %v5849_v58 = vpop.permute.xlu1 %2193 }
 0x24c   : > { %v2058_v0 = vsel %vm5751_vm0, %v1468_v5, %v5549_v33  ;;  %v1470_v36 = vpop.f32.mrb[113].mxu0  ;;  %8608 = vst [vmem:[#allocation61_spill] sm:$0xff] %v5849_v58  ;;  %v5853_v33 = vpop.f32.mrb[98].mxu1 }
 0x24d   : > { %v2250_v39 = vadd.f32 %v5828_v30, %v2058_v0  ;;  %2314 = vst.msk [vmem:[%s5517_s15 + $0x370] sm:$0xff] %vm2290_vm1, %v5830_v29  ;;  %v1855_v51 = vpop.f32.mrb[99].mxu1  ;;  %2782 = vrot.lane.b32.xlu0 %v5769_v35, %s4876_s9  ;;  %2655 = vrot.lane.b32.xlu1 %v5788_v59, %s4875_s27 }
 0x24f   : > { %v5851_v21 = vmax.f32 %v2250_v39, 0.0  ;;  %v1473_v36 = vpop.f32.mrb[114].mxu0  ;;  %v5870_v39 = vpop.permute.xlu0 %2198 }
 0x250   : > { %v2059_v0 = vsel %vm5751_vm0, %v1473_v36, %v5553_v45  ;;  %v1475_v30 = vpop.f32.mrb[115].mxu0  ;;  %8609 = vst [vmem:[#allocation62_spill] sm:$0xff] %v5870_v39  ;;  %v5874_v45 = vpop.f32.mrb[100].mxu1 }
 0x251   : > { %v2251_v63 = vadd.f32 %v5849_v58, %v2059_v0  ;;  %2315 = vst.msk [vmem:[%s5517_s15 + $0x380] sm:$0xff] %vm2290_vm1, %v5851_v21  ;;  %8610 = vst [vmem:[#allocation63_spill] sm:$0xff] %v5874_v45  ;;  %v1860_v51 = vpop.f32.mrb[101].mxu1  ;;  %2910 = vrot.lane.b32.xlu0 %v5769_v35, %s4877_s7  ;;  %2784 = vrot.lane.b32.xlu1 %v5788_v59, %s4876_s9 }
 0x253   : > { %v5872_v5 = vmax.f32 %v2251_v63, 0.0  ;;  %v1478_v30 = vpop.f32.mrb[116].mxu0  ;;  %v5891_v63 = vpop.permute.xlu1 %2203 }
 0x254   : > { %v2060_v0 = vsel %vm5751_vm0, %v1478_v30, %v5557_v1  ;;  %v1480_v58 = vpop.f32.mrb[117].mxu0  ;;  %8611 = vst [vmem:[#allocation64_spill] sm:$0xff] %v5891_v63  ;;  %v5895_v1 = vpop.f32.mrb[102].mxu1 }
 0x255   : > { %v2252_v37 = vadd.f32 %v5870_v39, %v2060_v0  ;;  %2316 = vst.msk [vmem:[%s5517_s15 + $0x390] sm:$0xff] %vm2290_vm1, %v5872_v5  ;;  %v1865_v51 = vpop.f32.mrb[103].mxu1  ;;  %3038 = vrot.lane.b32.xlu0 %v5769_v35, %s4878_s10  ;;  %2912 = vrot.lane.b32.xlu1 %v5788_v59, %s4877_s7 }
 0x257   : > { %v5893_v36 = vmax.f32 %v2252_v37, 0.0  ;;  %v1483_v58 = vpop.f32.mrb[118].mxu0  ;;  %v5912_v37 = vpop.permute.xlu0 %2208 }
 0x258   : > { %v2061_v0 = vsel %vm5751_vm0, %v1483_v58, %v5561_v9  ;;  %v1485_v39 = vpop.f32.mrb[119].mxu0  ;;  %8612 = vst [vmem:[#allocation65_spill] sm:$0xff] %v5912_v37  ;;  %v8613_v9 = vsel %vm5751_vm0, %v5589_v50, %v5790_v55  ;;  %v5939_v50 = vpop.permute.xlu1 %2213 }
 0x259   : > { %v2253_v13 = vadd.f32 %v5891_v63, %v2061_v0  ;;  %2317 = vst.msk [vmem:[%s5517_s15 + $0x3a0] sm:$0xff] %vm2290_vm1, %v5893_v36  ;;  %v3288_v39 = vadd.f32 %v8613_v9, %v5643_v40  ;;  %v5922_v0 = vpop.f32.mrb[104].mxu1  ;;  %3166 = vrot.lane.b32.xlu0 %v5769_v35, %s4879_s29  ;;  %3040 = vrot.lane.b32.xlu1 %v5788_v59, %s4878_s10  ;;  %8614 = vst [vmem:[#allocation66_spill] sm:$0xff] %v5939_v50 }
 0x25a   : > { %v1870_v23 = vpop.f32.mrb[105].mxu1 }
 0x25b   : > { %v5920_v58 = vmax.f32 %v2253_v13, 0.0  ;;  %v1488_v51 = vpop.f32.mrb[120].mxu0  ;;  %v5941_v13 = vmax.f32 %v3288_v39, 0.0  ;;  %v5951_v35 = vpop.f32.mrb[106].mxu1 }
 0x25c   : > { %v2062_v63 = vsel %vm5751_vm0, %v1488_v51, %v5565_v25  ;;  %v1490_v45 = vpop.f32.mrb[121].mxu0  ;;  %v8616_v25 = vsel %vm5751_vm0, %v5593_v2, %v5811_v24  ;;  %v1875_v39 = vpop.f32.mrb[107].mxu1 }
 0x25d   : > { %v2254_v54 = vadd.f32 %v5912_v37, %v2062_v63  ;;  %2318 = vst.msk [vmem:[%s5517_s15 + $0x3b0] sm:$0xff] %vm2290_vm1, %v5920_v58  ;;  %8615 = vst [vmem:[#allocation67_spill] sm:$0xff] %v5941_v13  ;;  %v3289_v23 = vadd.f32 %v8616_v25, %v5649_v46  ;;  %3386 = vrot.lane.b32.xlu0 %v5941_v13, %s4873_s12  ;;  %3168 = vrot.lane.b32.xlu1 %v5788_v59, %s4879_s29  ;;  %v5968_v2 = vpop.permute.xlu0 %2218  ;;  %v8639_v37 = vld [vmem:[#allocation24_spill] sm:$0xff] }
 0x25e   : > { %8617 = vst [vmem:[#allocation68_spill] sm:$0xff] %v5968_v2 }
 0x25f   : > { %v5949_v55 = vmax.f32 %v2254_v54, 0.0  ;;  %v1493_v45 = vpop.f32.mrb[122].mxu0  ;;  %v5970_v54 = vmax.f32 %v3289_v23, 0.0 }
 0x260   : > { %v2063_v9 = vsel %vm5751_vm0, %v1493_v45, %v5569_v38  ;;  %v1495_v51 = vpop.f32.mrb[123].mxu0  ;;  %v5974_v38 = vpop.f32.mrb[108].mxu1 }
 0x261   : > { %v2255_v30 = vadd.f32 %v5939_v50, %v2063_v9  ;;  %2319 = vst.msk [vmem:[%s5517_s15 + $0x3c0] sm:$0xff] %vm2290_vm1, %v5949_v55  ;;  %8618 = vst [vmem:[#allocation69_spill] sm:$0xff] %v5970_v54  ;;  %v1880_v9 = vpop.f32.mrb[109].mxu1  ;;  %3388 = vrot.lane.b32.xlu1 %v5970_v54, %s4873_s12  ;;  %2399 = vrot.lane.b32.xlu0 %v5809_v4, %s4873_s12 }
 0x262   : > { %v5995_v45 = vpop.f32.mrb[110].mxu1 }
 0x263   : > { %v5972_v24 = vmax.f32 %v2255_v30, 0.0  ;;  %v1498_v25 = vpop.f32.mrb[124].mxu0  ;;  %v5991_v30 = vpop.permute.xlu1 %2223 }
 0x264   : > { %v2064_v59 = vsel %vm5751_vm0, %v1498_v25, %v5573_v52  ;;  %v1500_v39 = vpop.f32.mrb[125].mxu0  ;;  %8619 = vst [vmem:[#allocation70_spill] sm:$0xff] %v5991_v30  ;;  %v1885_v9 = vpop.f32.mrb[111].mxu1 }
 0x265   : > { %v2256_v23 = vadd.f32 %v5968_v2, %v2064_v59  ;;  %2320 = vst.msk [vmem:[%s5517_s15 + $0x3d0] sm:$0xff] %vm2290_vm1, %v5972_v24  ;;  %2528 = vrot.lane.b32.xlu0 %v5809_v4, %s4874_s30  ;;  %2401 = vrot.lane.b32.xlu1 %v5830_v29, %s4873_s12  ;;  %v6014_v25 = vpop.f32.mrb[112].mxu1 }
 0x267   : > { %v5993_v51 = vmax.f32 %v2256_v23, 0.0  ;;  %v1503_v52 = vpop.f32.mrb[126].mxu0 }
 0x268   : > { %v2065_v59 = vsel %vm5751_vm0, %v1503_v52, %v5577_v3  ;;  %v1505_v39 = vpop.f32.mrb[127].mxu0 }
 0x269   : > { %v2257_v63 = vadd.f32 %v5991_v30, %v2065_v59  ;;  %2321 = vst.msk [vmem:[%s5517_s15 + $0x3e0] sm:$0xff] %vm2290_vm1, %v5993_v51  ;;  %v1890_v59 = vpop.f32.mrb[113].mxu1  ;;  %2657 = vrot.lane.b32.xlu0 %v5809_v4, %s4875_s27  ;;  %2530 = vrot.lane.b32.xlu1 %v5830_v29, %s4874_s30 }
 0x26a   : > { %v6033_v3 = vpop.f32.mrb[114].mxu1 }
 0x26b   : > { %v6012_v23 = vmax.f32 %v2257_v63, 0.0  ;;  %v1508_v54 = vpop.f32.mrb[128].mxu0 }
 0x26c   : > { %v2034_v52 = vsel %vm5751_vm0, %v5633_v27, %v1508_v54  ;;  %v1510_v9 = vpop.f32.mrb[129].mxu0  ;;  %v1895_v54 = vpop.f32.mrb[115].mxu1 }
 0x26d   : > { %v2226_v39 = vadd.f32 %v5629_v18, %v2034_v52  ;;  %2322 = vst.msk [vmem:[%s5517_s15 + $0x3f0] sm:$0xff] %vm2290_vm1, %v6012_v23  ;;  %2786 = vrot.lane.b32.xlu0 %v5809_v4, %s4876_s9  ;;  %2659 = vrot.lane.b32.xlu1 %v5830_v29, %s4875_s27 }
 0x26f   : > { %v6031_v63 = vmax.f32 %v2226_v39, 0.0  ;;  %v1513_v13 = vpop.f32.mrb[130].mxu0  ;;  %v6052_v39 = vpop.f32.mrb[116].mxu1 }
 0x270   : > { %v2035_v18 = vsel %vm5751_vm0, %v5641_v34, %v1513_v13  ;;  %v1515_v52 = vpop.f32.mrb[131].mxu0  ;;  %v1900_v13 = vpop.f32.mrb[117].mxu1 }
 0x271   : > { %v2227_v59 = vadd.f32 %v5637_v31, %v2035_v18  ;;  %2291 = vst.msk [vmem:[%s5517_s15 + $0x200] sm:$0xff] %vm2290_vm1, %v6031_v63  ;;  %2914 = vrot.lane.b32.xlu0 %v5809_v4, %s4877_s7  ;;  %2788 = vrot.lane.b32.xlu1 %v5830_v29, %s4876_s9 }
 0x273   : > { %v6050_v9 = vmax.f32 %v2227_v59, 0.0  ;;  %v1518_v27 = vpop.f32.mrb[132].mxu0  ;;  %v6071_v59 = vpop.f32.mrb[118].mxu1 }
 0x274   : > { %v2036_v31 = vsel %vm5751_vm0, %v5647_v42, %v1518_v27  ;;  %v1520_v18 = vpop.f32.mrb[133].mxu0  ;;  %8620 = vst [vmem:[#allocation71_spill] sm:$0xff] %v6071_v59  ;;  %v1905_v27 = vpop.f32.mrb[119].mxu1 }
 0x275   : > { %v2228_v54 = vadd.f32 %v5643_v40, %v2036_v31  ;;  %2292 = vst.msk [vmem:[%s5517_s15 + $0x210] sm:$0xff] %vm2290_vm1, %v6050_v9  ;;  %3042 = vrot.lane.b32.xlu0 %v5809_v4, %s4878_s10  ;;  %2916 = vrot.lane.b32.xlu1 %v5830_v29, %s4877_s7 }
 0x277   : > { %v6069_v52 = vmax.f32 %v2228_v54, 0.0  ;;  %v1523_v34 = vpop.f32.mrb[134].mxu0  ;;  %v6096_v54 = vpop.f32.mrb[120].mxu1 }
 0x278   : > { %v2037_v40 = vsel %vm5751_vm0, %v5653_v49, %v1523_v34  ;;  %v1525_v31 = vpop.f32.mrb[135].mxu0  ;;  %v8621_v49 = vsel %vm5751_vm0, %v5597_v22, %v5832_v20  ;;  %8622 = vst [vmem:[#allocation72_spill] sm:$0xff] %v6096_v54 }
 0x279   : > { %v2229_v13 = vadd.f32 %v5649_v46, %v2037_v40  ;;  %2293 = vst.msk [vmem:[%s5517_s15 + $0x220] sm:$0xff] %vm2290_vm1, %v6069_v52  ;;  %v3290_v34 = vadd.f32 %v8621_v49, %v5655_v53  ;;  %v1910_v31 = vpop.f32.mrb[121].mxu1  ;;  %3170 = vrot.lane.b32.xlu0 %v5809_v4, %s4879_s29  ;;  %3044 = vrot.lane.b32.xlu1 %v5830_v29, %s4878_s10 }
 0x27b   : > { %v6094_v18 = vmax.f32 %v2229_v13, 0.0  ;;  %v1528_v46 = vpop.f32.mrb[136].mxu0  ;;  %v6113_v22 = vmax.f32 %v3290_v34, 0.0 }
 0x27c   : > { %v2038_v27 = vsel %vm5751_vm0, %v5659_v56, %v1528_v46  ;;  %v1530_v42 = vpop.f32.mrb[137].mxu0  ;;  %v8624_v56 = vsel %vm5751_vm0, %v5601_v19, %v5853_v33 }
 0x27d   : > { %v2230_v30 = vadd.f32 %v5655_v53, %v2038_v27  ;;  %2294 = vst.msk [vmem:[%s5517_s15 + $0x230] sm:$0xff] %vm2290_vm1, %v6094_v18  ;;  %8623 = vst [vmem:[#allocation73_spill] sm:$0xff] %v6113_v22  ;;  %v3291_v20 = vadd.f32 %v8624_v56, %v5661_v57  ;;  %v6123_v42 = vpop.f32.mrb[122].mxu1  ;;  %3390 = vrot.lane.b32.xlu0 %v6113_v22, %s4873_s12  ;;  %3172 = vrot.lane.b32.xlu1 %v5830_v29, %s4879_s29 }
 0x27e   : > { %8625 = vst [vmem:[#allocation74_spill] sm:$0xff] %v6123_v42  ;;  %v1915_v34 = vpop.f32.mrb[123].mxu1 }
 0x27f   : > { %v6121_v53 = vmax.f32 %v2230_v30, 0.0  ;;  %v1533_v4 = vpop.f32.mrb[138].mxu0  ;;  %v6140_v33 = vmax.f32 %v3291_v20, 0.0  ;;  %v6144_v27 = vpop.f32.mrb[124].mxu1 }
 0x280   : > { %v2039_v49 = vsel %vm5751_vm0, %v5665_v62, %v1533_v4  ;;  %v1535_v46 = vpop.f32.mrb[139].mxu0  ;;  %8627 = vst [vmem:[#allocation76_spill] sm:$0xff] %v6144_v27  ;;  %v1920_v29 = vpop.f32.mrb[125].mxu1 }
 0x281   : > { %v2231_v19 = vadd.f32 %v5661_v57, %v2039_v49  ;;  %2295 = vst.msk [vmem:[%s5517_s15 + $0x240] sm:$0xff] %vm2290_vm1, %v6121_v53  ;;  %8626 = vst [vmem:[#allocation75_spill] sm:$0xff] %v6140_v33  ;;  %3392 = vrot.lane.b32.xlu1 %v6140_v33, %s4873_s12  ;;  %2403 = vrot.lane.b32.xlu0 %v5851_v21, %s4873_s12  ;;  %v6163_v49 = vpop.f32.mrb[126].mxu1  ;;  %v8635_v33 = vld [vmem:[#allocation21_spill] sm:$0xff] }
 0x282   : > { %8628 = vst [vmem:[#allocation77_spill] sm:$0xff] %v6163_v49 }
 0x283   : > { %v6142_v30 = vmax.f32 %v2231_v19, 0.0  ;;  %v1538_v62 = vpop.f32.mrb[140].mxu0  ;;  %v1925_v19 = vpop.f32.mrb[127].mxu1 }
 0x284   : > { %v2040_v31 = vsel %vm5751_vm0, %v5671_v11, %v1538_v62  ;;  %v1540_v56 = vpop.f32.mrb[141].mxu0  ;;  %v8631_v11 = vld [vmem:[#allocation18_spill] sm:$0xff] }
 0x285   : > { %v2232_v20 = vadd.f32 %v5667_v6, %v2040_v31  ;;  %2296 = vst.msk [vmem:[%s5517_s15 + $0x250] sm:$0xff] %vm2290_vm1, %v6142_v30  ;;  %2532 = vrot.lane.b32.xlu0 %v5851_v21, %s4874_s30  ;;  %2405 = vrot.lane.b32.xlu1 %v5872_v5, %s4873_s12  ;;  %v6182_v56 = vpop.f32.mrb[128].mxu1 }
 0x286   : > { %8629 = vst [vmem:[#allocation78_spill] sm:$0xff] %v6182_v56  ;;  %v1930_v19 = vpop.f32.mrb[129].mxu1 }
 0x287   : > { %v6161_v4 = vmax.f32 %v2232_v20, 0.0  ;;  %v1543_v34 = vpop.f32.mrb[142].mxu0 }
 0x288   : > { %v2041_v46 = vsel %vm5751_vm0, %v5677_v17, %v1543_v34  ;;  %v1545_v62 = vpop.f32.mrb[143].mxu0  ;;  %v8630_v34 = vld [vmem:[#allocation20_spill] sm:$0xff] }
 0x289   : > { %v2233_v31 = vadd.f32 %v5673_v15, %v2041_v46  ;;  %2297 = vst.msk [vmem:[%s5517_s15 + $0x260] sm:$0xff] %vm2290_vm1, %v6161_v4  ;;  %2661 = vrot.lane.b32.xlu0 %v5851_v21, %s4875_s27  ;;  %2534 = vrot.lane.b32.xlu1 %v5872_v5, %s4874_s30  ;;  %v6201_v17 = vpop.f32.mrb[130].mxu1 }
 0x28a   : > { %8632 = vst [vmem:[#allocation20_spill] sm:$0xff] %v6201_v17 }
 0x28b   : > { %v6180_v29 = vmax.f32 %v2233_v31, 0.0  ;;  %v1548_v20 = vpop.f32.mrb[144].mxu0 }
 0x28c   : > { %v2042_v46 = vsel %vm5751_vm0, %v8630_v34, %v1548_v20  ;;  %v1550_v62 = vpop.f32.mrb[145].mxu0  ;;  %v8643_v20 = vld [vmem:[#allocation27_spill] sm:$0xff] }
 0x28d   : > { %v2234_v57 = vadd.f32 %v8631_v11, %v2042_v46  ;;  %2298 = vst.msk [vmem:[%s5517_s15 + $0x270] sm:$0xff] %vm2290_vm1, %v6180_v29  ;;  %v8634_v46 = vld [vmem:[#allocation23_spill] sm:$0xff]  ;;  %v1935_v62 = vpop.f32.mrb[131].mxu1  ;;  %2790 = vrot.lane.b32.xlu0 %v5851_v21, %s4876_s9  ;;  %2663 = vrot.lane.b32.xlu1 %v5872_v5, %s4875_s27 }
 0x28e   : > { %v6220_v34 = vpop.f32.mrb[132].mxu1 }
 0x28f   : > { %v6199_v31 = vmax.f32 %v2234_v57, 0.0  ;;  %v1553_v13 = vpop.f32.mrb[146].mxu0  ;;  %8636 = vst [vmem:[#allocation18_spill] sm:$0xff] %v6220_v34  ;;  %v1940_v62 = vpop.f32.mrb[133].mxu1 }
 0x290   : > { %v2043_v19 = vsel %vm5751_vm0, %v8634_v46, %v1553_v13  ;;  %v1555_v40 = vpop.f32.mrb[147].mxu0  ;;  %v8638_v46 = vld [vmem:[#allocation26_spill] sm:$0xff] }
 0x291   : > { %v2235_v22 = vadd.f32 %v8635_v33, %v2043_v19  ;;  %2299 = vst.msk [vmem:[%s5517_s15 + $0x280] sm:$0xff] %vm2290_vm1, %v6199_v31  ;;  %2918 = vrot.lane.b32.xlu0 %v5851_v21, %s4877_s7  ;;  %2792 = vrot.lane.b32.xlu1 %v5872_v5, %s4876_s9  ;;  %v6239_v40 = vpop.f32.mrb[134].mxu1 }
 0x292   : > { %8640 = vst [vmem:[#allocation23_spill] sm:$0xff] %v6239_v40  ;;  %v1945_v62 = vpop.f32.mrb[135].mxu1 }
 0x293   : > { %v6218_v57 = vmax.f32 %v2235_v22, 0.0  ;;  %v1558_v2 = vpop.f32.mrb[148].mxu0 }
 0x294   : > { %v2044_v19 = vsel %vm5751_vm0, %v8638_v46, %v1558_v2  ;;  %v1560_v50 = vpop.f32.mrb[149].mxu0  ;;  %v8642_v46 = vld [vmem:[#allocation29_spill] sm:$0xff] }
 0x295   : > { %v2236_v17 = vadd.f32 %v8639_v37, %v2044_v19  ;;  %2300 = vst.msk [vmem:[%s5517_s15 + $0x290] sm:$0xff] %vm2290_vm1, %v6218_v57  ;;  %3046 = vrot.lane.b32.xlu0 %v5851_v21, %s4878_s10  ;;  %2920 = vrot.lane.b32.xlu1 %v5872_v5, %s4877_s7  ;;  %v6258_v50 = vpop.f32.mrb[136].mxu1 }
 0x296   : > { %8644 = vst [vmem:[#allocation21_spill] sm:$0xff] %v6258_v50  ;;  %v1950_v62 = vpop.f32.mrb[137].mxu1 }
 0x297   : > { %v6237_v22 = vmax.f32 %v2236_v17, 0.0  ;;  %v1563_v34 = vpop.f32.mrb[150].mxu0 }
 0x298   : > { %v2045_v19 = vsel %vm5751_vm0, %v8642_v46, %v1563_v34  ;;  %v1565_v13 = vpop.f32.mrb[151].mxu0  ;;  %v8646_v46 = vld [vmem:[#allocation32_spill] sm:$0xff]  ;;  %v8651_v34 = vld [vmem:[#allocation33_spill] sm:$0xff] }
 0x299   : > { %v2237_v56 = vadd.f32 %v8643_v20, %v2045_v19  ;;  %2301 = vst.msk [vmem:[%s5517_s15 + $0x2a0] sm:$0xff] %vm2290_vm1, %v6237_v22  ;;  %3174 = vrot.lane.b32.xlu0 %v5851_v21, %s4879_s29  ;;  %3048 = vrot.lane.b32.xlu1 %v5872_v5, %s4878_s10  ;;  %v6277_v13 = vpop.f32.mrb[138].mxu1 }
 0x29a   : > { %8648 = vst [vmem:[#allocation26_spill] sm:$0xff] %v6277_v13 }
 0x29b   : > { %v6256_v17 = vmax.f32 %v2237_v56, 0.0  ;;  %v1568_v40 = vpop.f32.mrb[152].mxu0 }
 0x29c   : > { %v2046_v19 = vsel %vm5751_vm0, %v8646_v46, %v1568_v40  ;;  %v1570_v2 = vpop.f32.mrb[153].mxu0  ;;  %v8650_v46 = vld [vmem:[#allocation35_spill] sm:$0xff]  ;;  %v8655_v40 = vld [vmem:[#allocation36_spill] sm:$0xff] }
 0x29d   : > { %v2238_v49 = vadd.f32 %v8647_v10, %v2046_v19  ;;  %2302 = vst.msk [vmem:[%s5517_s15 + $0x2b0] sm:$0xff] %vm2290_vm1, %v6256_v17  ;;  %v1955_v19 = vpop.f32.mrb[139].mxu1  ;;  %3176 = vrot.lane.b32.xlu1 %v5872_v5, %s4879_s29  ;;  %2407 = vrot.lane.b32.xlu0 %v5893_v36, %s4873_s12 }
 0x29e   : > { %v6296_v2 = vpop.f32.mrb[140].mxu1 }
 0x29f   : > { %v6275_v56 = vmax.f32 %v2238_v49, 0.0  ;;  %v1573_v50 = vpop.f32.mrb[154].mxu0  ;;  %8652 = vst [vmem:[#allocation24_spill] sm:$0xff] %v6296_v2  ;;  %v1960_v19 = vpop.f32.mrb[141].mxu1 }
 0x2a0   : > { %v2047_v21 = vsel %vm5751_vm0, %v8650_v46, %v1573_v50  ;;  %v1575_v62 = vpop.f32.mrb[155].mxu0 }
 0x2a1   : > { %v2239_v16 = vadd.f32 %v8651_v34, %v2047_v21  ;;  %2303 = vst.msk [vmem:[%s5517_s15 + $0x2c0] sm:$0xff] %vm2290_vm1, %v6275_v56  ;;  %v8654_v21 = vld [vmem:[#allocation38_spill] sm:$0xff]  ;;  %2536 = vrot.lane.b32.xlu0 %v5893_v36, %s4874_s30  ;;  %2409 = vrot.lane.b32.xlu1 %v5920_v58, %s4873_s12  ;;  %v6315_v46 = vpop.f32.mrb[142].mxu1 }
 0x2a2   : > { %8656 = vst [vmem:[#allocation29_spill] sm:$0xff] %v6315_v46 }
 0x2a3   : > { %v6294_v49 = vmax.f32 %v2239_v16, 0.0  ;;  %v1578_v13 = vpop.f32.mrb[156].mxu0 }
 0x2a4   : > { %v2048_v5 = vsel %vm5751_vm0, %v8654_v21, %v1578_v13  ;;  %v1580_v62 = vpop.f32.mrb[157].mxu0 }
 0x2a5   : > { %v2240_v27 = vadd.f32 %v8655_v40, %v2048_v5  ;;  %2304 = vst.msk [vmem:[%s5517_s15 + $0x2d0] sm:$0xff] %vm2290_vm1, %v6294_v49  ;;  %v8658_v5 = vld [vmem:[#allocation41_spill] sm:$0xff]  ;;  %v1965_v62 = vpop.f32.mrb[143].mxu1  ;;  %2665 = vrot.lane.b32.xlu0 %v5893_v36, %s4875_s27  ;;  %2538 = vrot.lane.b32.xlu1 %v5920_v58, %s4874_s30 }
 0x2a6   : > { %v6334_v21 = vpop.f32.mrb[144].mxu1 }
 0x2a7   : > { %v6313_v16 = vmax.f32 %v2240_v27, 0.0  ;;  %v1583_v2 = vpop.f32.mrb[158].mxu0  ;;  %8660 = vst [vmem:[#allocation27_spill] sm:$0xff] %v6334_v21  ;;  %v1970_v62 = vpop.f32.mrb[145].mxu1 }
 0x2a8   : > { %v2049_v19 = vsel %vm5751_vm0, %v8658_v5, %v1583_v2  ;;  %v1585_v50 = vpop.f32.mrb[159].mxu0  ;;  %v8662_v5 = vld [vmem:[#allocation44_spill] sm:$0xff] }
 0x2a9   : > { %v2241_v42 = vadd.f32 %v8659_v7, %v2049_v19  ;;  %2305 = vst.msk [vmem:[%s5517_s15 + $0x2e0] sm:$0xff] %vm2290_vm1, %v6313_v16  ;;  %2794 = vrot.lane.b32.xlu0 %v5893_v36, %s4876_s9  ;;  %2667 = vrot.lane.b32.xlu1 %v5920_v58, %s4875_s27  ;;  %v6353_v50 = vpop.f32.mrb[146].mxu1 }
 0x2aa   : > { %8664 = vst [vmem:[#allocation32_spill] sm:$0xff] %v6353_v50  ;;  %v1975_v62 = vpop.f32.mrb[147].mxu1 }
 0x2ab   : > { %v6332_v27 = vmax.f32 %v2241_v42, 0.0  ;;  %v1588_v46 = vpop.f32.mrb[160].mxu0 }
 0x2ac   : > { %v2050_v19 = vsel %vm5751_vm0, %v8662_v5, %v1588_v46  ;;  %v1590_v13 = vpop.f32.mrb[161].mxu0  ;;  %v8666_v5 = vld [vmem:[#allocation47_spill] sm:$0xff]  ;;  %v8670_v46 = vld [vmem:[#allocation48_spill] sm:$0xff] }
 0x2ad   : > { %v2242_v54 = vadd.f32 %v8663_v61, %v2050_v19  ;;  %2306 = vst.msk [vmem:[%s5517_s15 + $0x2f0] sm:$0xff] %vm2290_vm1, %v6332_v27  ;;  %2922 = vrot.lane.b32.xlu0 %v5893_v36, %s4877_s7  ;;  %2796 = vrot.lane.b32.xlu1 %v5920_v58, %s4876_s9  ;;  %v6372_v13 = vpop.f32.mrb[148].mxu1  ;;  %v6374_v50 = vpop.permute.xlu0 %3382 }
 0x2ae   : > { %8668 = vst [vmem:[#allocation30_spill] sm:$0xff] %v6372_v13 }
 0x2af   : > { %v6351_v42 = vmax.f32 %v2242_v54, 0.0  ;;  %v1593_v21 = vpop.f32.mrb[162].mxu0 }
 0x2b0   : > { %v2051_v19 = vsel %vm5751_vm0, %v8666_v5, %v1593_v21  ;;  %v1595_v2 = vpop.f32.mrb[163].mxu0  ;;  %v1980_v5 = vpop.f32.mrb[149].mxu1 }
 0x2b1   : > { %v2243_v61 = vadd.f32 %v8667_v48, %v2051_v19  ;;  %2307 = vst.msk [vmem:[%s5517_s15 + $0x300] sm:$0xff] %vm2290_vm1, %v6351_v42  ;;  %v8669_v19 = vld [vmem:[#allocation50_spill] sm:$0xff]  ;;  %3050 = vrot.lane.b32.xlu0 %v5893_v36, %s4878_s10  ;;  %2924 = vrot.lane.b32.xlu1 %v5920_v58, %s4877_s7  ;;  %v6391_v13 = vpop.f32.mrb[150].mxu1 }
 0x2b2   : > { %8671 = vst [vmem:[#allocation35_spill] sm:$0xff] %v6391_v13 }
 0x2b3   : > { %v6370_v54 = vmax.f32 %v2243_v61, 0.0  ;;  %v1598_v2 = vpop.f32.mrb[164].mxu0  ;;  %v6393_v5 = vpop.permute.xlu1 %3384 }
 0x2b4   : > { %v2052_v62 = vsel %vm5751_vm0, %v8669_v19, %v1598_v2  ;;  %v1600_v61 = vpop.f32.mrb[165].mxu0  ;;  %v2396_v48 = vpop.permute.xlu0 %2395  ;;  %v8674_v19 = vld [vmem:[#allocation51_spill] sm:$0xff] }
 0x2b5   : > { %2308 = vst.msk [vmem:[%s5517_s15 + $0x310] sm:$0xff] %vm2290_vm1, %v6370_v54  ;;  %v2244_v21 = vadd.f32 %v8670_v46, %v2052_v62  ;;  %v8673_v61 = vld [vmem:[#allocation53_spill] sm:$0xff]  ;;  %3178 = vrot.lane.b32.xlu0 %v5893_v36, %s4879_s29  ;;  %3052 = vrot.lane.b32.xlu1 %v5920_v58, %s4878_s10  ;;  %v1985_v46 = vpop.f32.mrb[151].mxu1 }
 0x2b6   : > { %2472 = vst.msk [vmem:[%s5517_s15 + $0x340] sm:$0xff] %vm2451_vm2, %v2396_v48 }
 0x2b7   : > { %v6395_v14 = vmax.f32 %v2244_v21, 0.0  ;;  %v1603_v59 = vpop.f32.mrb[166].mxu0  ;;  %v2398_v13 = vpop.permute.xlu1 %2397 }
 0x2b8   : > { %v2053_v62 = vsel %vm5751_vm0, %v8673_v61, %v1603_v59  ;;  %v1605_v21 = vpop.f32.mrb[167].mxu0  ;;  %v2525_v59 = vpop.permute.xlu0 %2524  ;;  %2473 = vst.msk [vmem:[%s5517_s15 + $0x350] sm:$0xff] %vm2451_vm2, %v2398_v13 }
 0x2b9   : > { %2309 = vst.msk [vmem:[%s5517_s15 + $0x320] sm:$0xff] %vm2290_vm1, %v6395_v14  ;;  %v2245_v48 = vadd.f32 %v8674_v19, %v2053_v62  ;;  %3180 = vrot.lane.b32.xlu1 %v5920_v58, %s4879_s29  ;;  %2411 = vrot.lane.b32.xlu0 %v5949_v55, %s4873_s12 }
 0x2ba   : > { %2601 = vst.msk [vmem:[%s5517_s15 + $0x340] sm:$0xff] %vm2580_vm3, %v2525_v59 }
 0x2bb   : > { %v6414_v2 = vmax.f32 %v2245_v48, 0.0  ;;  %v2527_v36 = vpop.permute.xlu1 %2526 }
 0x2bc   : > { %v2654_v46 = vpop.permute.xlu0 %2653  ;;  %2602 = vst.msk [vmem:[%s5517_s15 + $0x350] sm:$0xff] %vm2580_vm3, %v2527_v36 }
 0x2bd   : > { %2310 = vst.msk [vmem:[%s5517_s15 + $0x330] sm:$0xff] %vm2290_vm1, %v6414_v2  ;;  %2540 = vrot.lane.b32.xlu0 %v5949_v55, %s4874_s30  ;;  %2413 = vrot.lane.b32.xlu1 %v5972_v24, %s4873_s12 }
 0x2be   : > { %2730 = vst.msk [vmem:[%s5517_s15 + $0x340] sm:$0xff] %vm2709_vm4, %v2654_v46 }
 0x2bf   : > { %v2656_v58 = vpop.permute.xlu1 %2655 }
 0x2c0   : > { %v2783_v13 = vpop.permute.xlu0 %2782  ;;  %2731 = vst.msk [vmem:[%s5517_s15 + $0x350] sm:$0xff] %vm2709_vm4, %v2656_v58 }
 0x2c1   : > { %2858 = vst.msk [vmem:[%s5517_s15 + $0x348] sm:$0xff] %vm2290_vm1, %v2783_v13  ;;  %2669 = vrot.lane.b32.xlu0 %v5949_v55, %s4875_s27  ;;  %2542 = vrot.lane.b32.xlu1 %v5972_v24, %s4874_s30 }
 0x2c3   : > { %v2785_v61 = vpop.permute.xlu1 %2784 }
 0x2c4   : > { %v2911_v62 = vpop.permute.xlu0 %2910  ;;  %2859 = vst.msk [vmem:[%s5517_s15 + $0x358] sm:$0xff] %vm2290_vm1, %v2785_v61 }
 0x2c5   : > { %2986 = vst.msk [vmem:[%s5517_s15 + $0x348] sm:$0xff] %vm2451_vm2, %v2911_v62  ;;  %2798 = vrot.lane.b32.xlu0 %v5949_v55, %s4876_s9  ;;  %2671 = vrot.lane.b32.xlu1 %v5972_v24, %s4875_s27 }
 0x2c7   : > { %v2913_v21 = vpop.permute.xlu1 %2912 }
 0x2c8   : > { %v3039_v48 = vpop.permute.xlu0 %3038  ;;  %2987 = vst.msk [vmem:[%s5517_s15 + $0x358] sm:$0xff] %vm2451_vm2, %v2913_v21 }
 0x2c9   : > { %3114 = vst.msk [vmem:[%s5517_s15 + $0x348] sm:$0xff] %vm2580_vm3, %v3039_v48  ;;  %2926 = vrot.lane.b32.xlu0 %v5949_v55, %s4877_s7  ;;  %2800 = vrot.lane.b32.xlu1 %v5972_v24, %s4876_s9 }
 0x2cb   : > { %v3041_v59 = vpop.permute.xlu1 %3040 }
 0x2cc   : > { %v3167_v36 = vpop.permute.xlu0 %3166  ;;  %3115 = vst.msk [vmem:[%s5517_s15 + $0x358] sm:$0xff] %vm2580_vm3, %v3041_v59 }
 0x2cd   : > { %3242 = vst.msk [vmem:[%s5517_s15 + $0x348] sm:$0xff] %vm2709_vm4, %v3167_v36  ;;  %3054 = vrot.lane.b32.xlu0 %v5949_v55, %s4878_s10  ;;  %2928 = vrot.lane.b32.xlu1 %v5972_v24, %s4877_s7 }
 0x2cf   : > { %v3169_v46 = vpop.permute.xlu1 %3168 }
 0x2d0   : > { %v6467_v58 = vpop.permute.xlu0 %3386  ;;  %3243 = vst.msk [vmem:[%s5517_s15 + $0x358] sm:$0xff] %vm2709_vm4, %v3169_v46 }
 0x2d1   : > { %3182 = vrot.lane.b32.xlu0 %v5949_v55, %s4879_s29  ;;  %3056 = vrot.lane.b32.xlu1 %v5972_v24, %s4878_s10 }
 0x2d3   : > { %v6475_v13 = vpop.permute.xlu1 %3388 }
 0x2d4   : > { %v2400_v61 = vpop.permute.xlu0 %2399 }
 0x2d5   : > { %2474 = vst.msk [vmem:[%s5517_s15 + $0x360] sm:$0xff] %vm2451_vm2, %v2400_v61  ;;  %3184 = vrot.lane.b32.xlu1 %v5972_v24, %s4879_s29  ;;  %2415 = vrot.lane.b32.xlu0 %v5993_v51, %s4873_s12 }
 0x2d7   : > { %v2402_v62 = vpop.permute.xlu1 %2401 }
 0x2d8   : > { %v2529_v21 = vpop.permute.xlu0 %2528  ;;  %2475 = vst.msk [vmem:[%s5517_s15 + $0x370] sm:$0xff] %vm2451_vm2, %v2402_v62 }
 0x2d9   : > { %2603 = vst.msk [vmem:[%s5517_s15 + $0x360] sm:$0xff] %vm2580_vm3, %v2529_v21  ;;  %2544 = vrot.lane.b32.xlu0 %v5993_v51, %s4874_s30  ;;  %2417 = vrot.lane.b32.xlu1 %v6012_v23, %s4873_s12 }
 0x2db   : > { %v2531_v55 = vpop.permute.xlu1 %2530 }
 0x2dc   : > { %v2658_v24 = vpop.permute.xlu0 %2657  ;;  %2604 = vst.msk [vmem:[%s5517_s15 + $0x370] sm:$0xff] %vm2580_vm3, %v2531_v55 }
 0x2dd   : > { %2732 = vst.msk [vmem:[%s5517_s15 + $0x360] sm:$0xff] %vm2709_vm4, %v2658_v24  ;;  %2673 = vrot.lane.b32.xlu0 %v5993_v51, %s4875_s27  ;;  %2546 = vrot.lane.b32.xlu1 %v6012_v23, %s4874_s30 }
 0x2df   : > { %v2660_v48 = vpop.permute.xlu1 %2659 }
 0x2e0   : > { %v2787_v59 = vpop.permute.xlu0 %2786  ;;  %2733 = vst.msk [vmem:[%s5517_s15 + $0x370] sm:$0xff] %vm2709_vm4, %v2660_v48 }
 0x2e1   : > { %2860 = vst.msk [vmem:[%s5517_s15 + $0x368] sm:$0xff] %vm2290_vm1, %v2787_v59  ;;  %2802 = vrot.lane.b32.xlu0 %v5993_v51, %s4876_s9  ;;  %2675 = vrot.lane.b32.xlu1 %v6012_v23, %s4875_s27 }
 0x2e3   : > { %v2789_v36 = vpop.permute.xlu1 %2788 }
 0x2e4   : > { %v2915_v46 = vpop.permute.xlu0 %2914  ;;  %2861 = vst.msk [vmem:[%s5517_s15 + $0x378] sm:$0xff] %vm2290_vm1, %v2789_v36 }
 0x2e5   : > { %2988 = vst.msk [vmem:[%s5517_s15 + $0x368] sm:$0xff] %vm2451_vm2, %v2915_v46  ;;  %2930 = vrot.lane.b32.xlu0 %v5993_v51, %s4877_s7  ;;  %2804 = vrot.lane.b32.xlu1 %v6012_v23, %s4876_s9 }
 0x2e7   : > { %v2917_v61 = vpop.permute.xlu1 %2916 }
 0x2e8   : > { %v3043_v62 = vpop.permute.xlu0 %3042  ;;  %2989 = vst.msk [vmem:[%s5517_s15 + $0x378] sm:$0xff] %vm2451_vm2, %v2917_v61 }
 0x2e9   : > { %3116 = vst.msk [vmem:[%s5517_s15 + $0x368] sm:$0xff] %vm2580_vm3, %v3043_v62  ;;  %3058 = vrot.lane.b32.xlu0 %v5993_v51, %s4878_s10  ;;  %2932 = vrot.lane.b32.xlu1 %v6012_v23, %s4877_s7 }
 0x2eb   : > { %v3045_v21 = vpop.permute.xlu1 %3044 }
 0x2ec   : > { %v3171_v55 = vpop.permute.xlu0 %3170  ;;  %3117 = vst.msk [vmem:[%s5517_s15 + $0x378] sm:$0xff] %vm2580_vm3, %v3045_v21 }
 0x2ed   : > { %3244 = vst.msk [vmem:[%s5517_s15 + $0x368] sm:$0xff] %vm2709_vm4, %v3171_v55  ;;  %3186 = vrot.lane.b32.xlu0 %v5993_v51, %s4879_s29  ;;  %3060 = vrot.lane.b32.xlu1 %v6012_v23, %s4878_s10 }
 0x2ef   : > { %v3173_v24 = vpop.permute.xlu1 %3172 }
 0x2f0   : > { %v6531_v48 = vpop.permute.xlu0 %3390  ;;  %3245 = vst.msk [vmem:[%s5517_s15 + $0x378] sm:$0xff] %vm2709_vm4, %v3173_v24 }
 0x2f1   : > { %3188 = vrot.lane.b32.xlu1 %v6012_v23, %s4879_s29  ;;  %2355 = vrot.lane.b32.xlu0 %v6031_v63, %s4873_s12 }
 0x2f3   : > { %v6539_v59 = vpop.permute.xlu1 %3392 }
 0x2f4   : > { %v2404_v36 = vpop.permute.xlu0 %2403 }
 0x2f5   : > { %2476 = vst.msk [vmem:[%s5517_s15 + $0x380] sm:$0xff] %vm2451_vm2, %v2404_v36  ;;  %2484 = vrot.lane.b32.xlu0 %v6031_v63, %s4874_s30  ;;  %2357 = vrot.lane.b32.xlu1 %v6050_v9, %s4873_s12 }
 0x2f7   : > { %v2406_v51 = vpop.permute.xlu1 %2405 }
 0x2f8   : > { %v2533_v46 = vpop.permute.xlu0 %2532  ;;  %2477 = vst.msk [vmem:[%s5517_s15 + $0x390] sm:$0xff] %vm2451_vm2, %v2406_v51 }
 0x2f9   : > { %2605 = vst.msk [vmem:[%s5517_s15 + $0x380] sm:$0xff] %vm2580_vm3, %v2533_v46  ;;  %2613 = vrot.lane.b32.xlu0 %v6031_v63, %s4875_s27  ;;  %2486 = vrot.lane.b32.xlu1 %v6050_v9, %s4874_s30 }
 0x2fb   : > { %v2535_v23 = vpop.permute.xlu1 %2534 }
 0x2fc   : > { %v2662_v61 = vpop.permute.xlu0 %2661  ;;  %2606 = vst.msk [vmem:[%s5517_s15 + $0x390] sm:$0xff] %vm2580_vm3, %v2535_v23 }
 0x2fd   : > { %2734 = vst.msk [vmem:[%s5517_s15 + $0x380] sm:$0xff] %vm2709_vm4, %v2662_v61  ;;  %2742 = vrot.lane.b32.xlu0 %v6031_v63, %s4876_s9  ;;  %2615 = vrot.lane.b32.xlu1 %v6050_v9, %s4875_s27 }
 0x2ff   : > { %v2664_v62 = vpop.permute.xlu1 %2663 }
 0x300   : > { %v2791_v21 = vpop.permute.xlu0 %2790  ;;  %2735 = vst.msk [vmem:[%s5517_s15 + $0x390] sm:$0xff] %vm2709_vm4, %v2664_v62 }
 0x301   : > { %2862 = vst.msk [vmem:[%s5517_s15 + $0x388] sm:$0xff] %vm2290_vm1, %v2791_v21  ;;  %2870 = vrot.lane.b32.xlu0 %v6031_v63, %s4877_s7  ;;  %2744 = vrot.lane.b32.xlu1 %v6050_v9, %s4876_s9 }
 0x303   : > { %v2793_v55 = vpop.permute.xlu1 %2792 }
 0x304   : > { %v2919_v24 = vpop.permute.xlu0 %2918  ;;  %2863 = vst.msk [vmem:[%s5517_s15 + $0x398] sm:$0xff] %vm2290_vm1, %v2793_v55 }
 0x305   : > { %2990 = vst.msk [vmem:[%s5517_s15 + $0x388] sm:$0xff] %vm2451_vm2, %v2919_v24  ;;  %2998 = vrot.lane.b32.xlu0 %v6031_v63, %s4878_s10  ;;  %2872 = vrot.lane.b32.xlu1 %v6050_v9, %s4877_s7 }
 0x307   : > { %v2921_v36 = vpop.permute.xlu1 %2920 }
 0x308   : > { %v3047_v51 = vpop.permute.xlu0 %3046  ;;  %2991 = vst.msk [vmem:[%s5517_s15 + $0x398] sm:$0xff] %vm2451_vm2, %v2921_v36 }
 0x309   : > { %3118 = vst.msk [vmem:[%s5517_s15 + $0x388] sm:$0xff] %vm2580_vm3, %v3047_v51  ;;  %3126 = vrot.lane.b32.xlu0 %v6031_v63, %s4879_s29  ;;  %3000 = vrot.lane.b32.xlu1 %v6050_v9, %s4878_s10 }
 0x30b   : > { %v3049_v46 = vpop.permute.xlu1 %3048 }
 0x30c   : > { %v3175_v23 = vpop.permute.xlu0 %3174  ;;  %3119 = vst.msk [vmem:[%s5517_s15 + $0x398] sm:$0xff] %vm2580_vm3, %v3049_v46 }
 0x30d   : > { %3246 = vst.msk [vmem:[%s5517_s15 + $0x388] sm:$0xff] %vm2709_vm4, %v3175_v23  ;;  %3128 = vrot.lane.b32.xlu1 %v6050_v9, %s4879_s29  ;;  %2359 = vrot.lane.b32.xlu0 %v6069_v52, %s4873_s12 }
 0x30f   : > { %v3177_v63 = vpop.permute.xlu1 %3176 }
 0x310   : > { %3247 = vst.msk [vmem:[%s5517_s15 + $0x398] sm:$0xff] %vm2709_vm4, %v3177_v63  ;;  %v2408_v61 = vpop.permute.xlu0 %2407 }
 0x311   : > { %2478 = vst.msk [vmem:[%s5517_s15 + $0x3a0] sm:$0xff] %vm2451_vm2, %v2408_v61  ;;  %2488 = vrot.lane.b32.xlu0 %v6069_v52, %s4874_s30  ;;  %2361 = vrot.lane.b32.xlu1 %v6094_v18, %s4873_s12 }
 0x313   : > { %v2410_v9 = vpop.permute.xlu1 %2409 }
 0x314   : > { %v2537_v62 = vpop.permute.xlu0 %2536  ;;  %2479 = vst.msk [vmem:[%s5517_s15 + $0x3b0] sm:$0xff] %vm2451_vm2, %v2410_v9 }
 0x315   : > { %2607 = vst.msk [vmem:[%s5517_s15 + $0x3a0] sm:$0xff] %vm2580_vm3, %v2537_v62  ;;  %2617 = vrot.lane.b32.xlu0 %v6069_v52, %s4875_s27  ;;  %2490 = vrot.lane.b32.xlu1 %v6094_v18, %s4874_s30 }
 0x317   : > { %v2539_v21 = vpop.permute.xlu1 %2538 }
 0x318   : > { %v2666_v55 = vpop.permute.xlu0 %2665  ;;  %2608 = vst.msk [vmem:[%s5517_s15 + $0x3b0] sm:$0xff] %vm2580_vm3, %v2539_v21 }
 0x319   : > { %2736 = vst.msk [vmem:[%s5517_s15 + $0x3a0] sm:$0xff] %vm2709_vm4, %v2666_v55  ;;  %2746 = vrot.lane.b32.xlu0 %v6069_v52, %s4876_s9  ;;  %2619 = vrot.lane.b32.xlu1 %v6094_v18, %s4875_s27 }
 0x31b   : > { %v2668_v24 = vpop.permute.xlu1 %2667 }
 0x31c   : > { %v2795_v36 = vpop.permute.xlu0 %2794  ;;  %2737 = vst.msk [vmem:[%s5517_s15 + $0x3b0] sm:$0xff] %vm2709_vm4, %v2668_v24 }
 0x31d   : > { %2864 = vst.msk [vmem:[%s5517_s15 + $0x3a8] sm:$0xff] %vm2290_vm1, %v2795_v36  ;;  %2874 = vrot.lane.b32.xlu0 %v6069_v52, %s4877_s7  ;;  %2748 = vrot.lane.b32.xlu1 %v6094_v18, %s4876_s9 }
 0x31f   : > { %v2797_v51 = vpop.permute.xlu1 %2796 }
 0x320   : > { %v2923_v46 = vpop.permute.xlu0 %2922  ;;  %2865 = vst.msk [vmem:[%s5517_s15 + $0x3b8] sm:$0xff] %vm2290_vm1, %v2797_v51 }
 0x321   : > { %2992 = vst.msk [vmem:[%s5517_s15 + $0x3a8] sm:$0xff] %vm2451_vm2, %v2923_v46  ;;  %3002 = vrot.lane.b32.xlu0 %v6069_v52, %s4878_s10  ;;  %2876 = vrot.lane.b32.xlu1 %v6094_v18, %s4877_s7 }
 0x323   : > { %v2925_v23 = vpop.permute.xlu1 %2924 }
 0x324   : > { %v3051_v63 = vpop.permute.xlu0 %3050  ;;  %2993 = vst.msk [vmem:[%s5517_s15 + $0x3b8] sm:$0xff] %vm2451_vm2, %v2925_v23 }
 0x325   : > { %3120 = vst.msk [vmem:[%s5517_s15 + $0x3a8] sm:$0xff] %vm2580_vm3, %v3051_v63  ;;  %3130 = vrot.lane.b32.xlu0 %v6069_v52, %s4879_s29  ;;  %3004 = vrot.lane.b32.xlu1 %v6094_v18, %s4878_s10 }
 0x327   : > { %v3053_v61 = vpop.permute.xlu1 %3052 }
 0x328   : > { %v3179_v9 = vpop.permute.xlu0 %3178  ;;  %3121 = vst.msk [vmem:[%s5517_s15 + $0x3b8] sm:$0xff] %vm2580_vm3, %v3053_v61 }
 0x329   : > { %3248 = vst.msk [vmem:[%s5517_s15 + $0x3a8] sm:$0xff] %vm2709_vm4, %v3179_v9  ;;  %3132 = vrot.lane.b32.xlu1 %v6094_v18, %s4879_s29  ;;  %2363 = vrot.lane.b32.xlu0 %v6121_v53, %s4873_s12 }
 0x32b   : > { %v3181_v52 = vpop.permute.xlu1 %3180 }
 0x32c   : > { %3249 = vst.msk [vmem:[%s5517_s15 + $0x3b8] sm:$0xff] %vm2709_vm4, %v3181_v52  ;;  %v2412_v62 = vpop.permute.xlu0 %2411 }
 0x32d   : > { %2480 = vst.msk [vmem:[%s5517_s15 + $0x3c0] sm:$0xff] %vm2451_vm2, %v2412_v62  ;;  %2492 = vrot.lane.b32.xlu0 %v6121_v53, %s4874_s30  ;;  %2365 = vrot.lane.b32.xlu1 %v6142_v30, %s4873_s12 }
 0x32f   : > { %v2414_v18 = vpop.permute.xlu1 %2413 }
 0x330   : > { %v2541_v21 = vpop.permute.xlu0 %2540  ;;  %2481 = vst.msk [vmem:[%s5517_s15 + $0x3d0] sm:$0xff] %vm2451_vm2, %v2414_v18 }
 0x331   : > { %2609 = vst.msk [vmem:[%s5517_s15 + $0x3c0] sm:$0xff] %vm2580_vm3, %v2541_v21  ;;  %2621 = vrot.lane.b32.xlu0 %v6121_v53, %s4875_s27  ;;  %2494 = vrot.lane.b32.xlu1 %v6142_v30, %s4874_s30 }
 0x333   : > { %v2543_v55 = vpop.permute.xlu1 %2542 }
 0x334   : > { %v2670_v24 = vpop.permute.xlu0 %2669  ;;  %2610 = vst.msk [vmem:[%s5517_s15 + $0x3d0] sm:$0xff] %vm2580_vm3, %v2543_v55 }
 0x335   : > { %2738 = vst.msk [vmem:[%s5517_s15 + $0x3c0] sm:$0xff] %vm2709_vm4, %v2670_v24  ;;  %2750 = vrot.lane.b32.xlu0 %v6121_v53, %s4876_s9  ;;  %2623 = vrot.lane.b32.xlu1 %v6142_v30, %s4875_s27 }
 0x337   : > { %v2672_v36 = vpop.permute.xlu1 %2671 }
 0x338   : > { %v2799_v51 = vpop.permute.xlu0 %2798  ;;  %2739 = vst.msk [vmem:[%s5517_s15 + $0x3d0] sm:$0xff] %vm2709_vm4, %v2672_v36 }
 0x339   : > { %2866 = vst.msk [vmem:[%s5517_s15 + $0x3c8] sm:$0xff] %vm2290_vm1, %v2799_v51  ;;  %2878 = vrot.lane.b32.xlu0 %v6121_v53, %s4877_s7  ;;  %2752 = vrot.lane.b32.xlu1 %v6142_v30, %s4876_s9 }
 0x33b   : > { %v2801_v46 = vpop.permute.xlu1 %2800 }
 0x33c   : > { %v2927_v23 = vpop.permute.xlu0 %2926  ;;  %2867 = vst.msk [vmem:[%s5517_s15 + $0x3d8] sm:$0xff] %vm2290_vm1, %v2801_v46 }
 0x33d   : > { %2994 = vst.msk [vmem:[%s5517_s15 + $0x3c8] sm:$0xff] %vm2451_vm2, %v2927_v23  ;;  %3006 = vrot.lane.b32.xlu0 %v6121_v53, %s4878_s10  ;;  %2880 = vrot.lane.b32.xlu1 %v6142_v30, %s4877_s7 }
 0x33f   : > { %v2929_v63 = vpop.permute.xlu1 %2928 }
 0x340   : > { %v3055_v61 = vpop.permute.xlu0 %3054  ;;  %2995 = vst.msk [vmem:[%s5517_s15 + $0x3d8] sm:$0xff] %vm2451_vm2, %v2929_v63 }
 0x341   : > { %3122 = vst.msk [vmem:[%s5517_s15 + $0x3c8] sm:$0xff] %vm2580_vm3, %v3055_v61  ;;  %3134 = vrot.lane.b32.xlu0 %v6121_v53, %s4879_s29  ;;  %3008 = vrot.lane.b32.xlu1 %v6142_v30, %s4878_s10 }
 0x343   : > { %v3057_v9 = vpop.permute.xlu1 %3056 }
 0x344   : > { %v3183_v52 = vpop.permute.xlu0 %3182  ;;  %3123 = vst.msk [vmem:[%s5517_s15 + $0x3d8] sm:$0xff] %vm2580_vm3, %v3057_v9 }
 0x345   : > { %3250 = vst.msk [vmem:[%s5517_s15 + $0x3c8] sm:$0xff] %vm2709_vm4, %v3183_v52  ;;  %3136 = vrot.lane.b32.xlu1 %v6142_v30, %s4879_s29  ;;  %2367 = vrot.lane.b32.xlu0 %v6161_v4, %s4873_s12 }
 0x347   : > { %v3185_v53 = vpop.permute.xlu1 %3184 }
 0x348   : > { %3251 = vst.msk [vmem:[%s5517_s15 + $0x3d8] sm:$0xff] %vm2709_vm4, %v3185_v53  ;;  %v2416_v62 = vpop.permute.xlu0 %2415 }
 0x349   : > { %2482 = vst.msk [vmem:[%s5517_s15 + $0x3e0] sm:$0xff] %vm2451_vm2, %v2416_v62  ;;  %2496 = vrot.lane.b32.xlu0 %v6161_v4, %s4874_s30  ;;  %2369 = vrot.lane.b32.xlu1 %v6180_v29, %s4873_s12 }
 0x34b   : > { %v2418_v30 = vpop.permute.xlu1 %2417 }
 0x34c   : > { %v2545_v18 = vpop.permute.xlu0 %2544  ;;  %2483 = vst.msk [vmem:[%s5517_s15 + $0x3f0] sm:$0xff] %vm2451_vm2, %v2418_v30 }
 0x34d   : > { %2611 = vst.msk [vmem:[%s5517_s15 + $0x3e0] sm:$0xff] %vm2580_vm3, %v2545_v18  ;;  %2625 = vrot.lane.b32.xlu0 %v6161_v4, %s4875_s27  ;;  %2498 = vrot.lane.b32.xlu1 %v6180_v29, %s4874_s30 }
 0x34f   : > { %v2547_v21 = vpop.permute.xlu1 %2546 }
 0x350   : > { %v2674_v55 = vpop.permute.xlu0 %2673  ;;  %2612 = vst.msk [vmem:[%s5517_s15 + $0x3f0] sm:$0xff] %vm2580_vm3, %v2547_v21 }
 0x351   : > { %2740 = vst.msk [vmem:[%s5517_s15 + $0x3e0] sm:$0xff] %vm2709_vm4, %v2674_v55  ;;  %2754 = vrot.lane.b32.xlu0 %v6161_v4, %s4876_s9  ;;  %2627 = vrot.lane.b32.xlu1 %v6180_v29, %s4875_s27 }
 0x353   : > { %v2676_v24 = vpop.permute.xlu1 %2675 }
 0x354   : > { %v2803_v36 = vpop.permute.xlu0 %2802  ;;  %2741 = vst.msk [vmem:[%s5517_s15 + $0x3f0] sm:$0xff] %vm2709_vm4, %v2676_v24 }
 0x355   : > { %2868 = vst.msk [vmem:[%s5517_s15 + $0x3e8] sm:$0xff] %vm2290_vm1, %v2803_v36  ;;  %2882 = vrot.lane.b32.xlu0 %v6161_v4, %s4877_s7  ;;  %2756 = vrot.lane.b32.xlu1 %v6180_v29, %s4876_s9 }
 0x357   : > { %v2805_v51 = vpop.permute.xlu1 %2804 }
 0x358   : > { %v2931_v46 = vpop.permute.xlu0 %2930  ;;  %2869 = vst.msk [vmem:[%s5517_s15 + $0x3f8] sm:$0xff] %vm2290_vm1, %v2805_v51 }
 0x359   : > { %2996 = vst.msk [vmem:[%s5517_s15 + $0x3e8] sm:$0xff] %vm2451_vm2, %v2931_v46  ;;  %3010 = vrot.lane.b32.xlu0 %v6161_v4, %s4878_s10  ;;  %2884 = vrot.lane.b32.xlu1 %v6180_v29, %s4877_s7 }
 0x35b   : > { %v2933_v23 = vpop.permute.xlu1 %2932 }
 0x35c   : > { %v3059_v63 = vpop.permute.xlu0 %3058  ;;  %2997 = vst.msk [vmem:[%s5517_s15 + $0x3f8] sm:$0xff] %vm2451_vm2, %v2933_v23 }
 0x35d   : > { %3124 = vst.msk [vmem:[%s5517_s15 + $0x3e8] sm:$0xff] %vm2580_vm3, %v3059_v63  ;;  %3138 = vrot.lane.b32.xlu0 %v6161_v4, %s4879_s29  ;;  %3012 = vrot.lane.b32.xlu1 %v6180_v29, %s4878_s10 }
 0x35f   : > { %v3061_v61 = vpop.permute.xlu1 %3060 }
 0x360   : > { %v3187_v9 = vpop.permute.xlu0 %3186  ;;  %3125 = vst.msk [vmem:[%s5517_s15 + $0x3f8] sm:$0xff] %vm2580_vm3, %v3061_v61 }
 0x361   : > { %3252 = vst.msk [vmem:[%s5517_s15 + $0x3e8] sm:$0xff] %vm2709_vm4, %v3187_v9  ;;  %3140 = vrot.lane.b32.xlu1 %v6180_v29, %s4879_s29  ;;  %2371 = vrot.lane.b32.xlu0 %v6199_v31, %s4873_s12 }
 0x363   : > { %v3189_v52 = vpop.permute.xlu1 %3188 }
 0x364   : > { %3253 = vst.msk [vmem:[%s5517_s15 + $0x3f8] sm:$0xff] %vm2709_vm4, %v3189_v52  ;;  %v2356_v4 = vpop.permute.xlu0 %2355 }
 0x365   : > { %2452 = vst.msk [vmem:[%s5517_s15 + $0x200] sm:$0xff] %vm2451_vm2, %v2356_v4  ;;  %2500 = vrot.lane.b32.xlu0 %v6199_v31, %s4874_s30  ;;  %2373 = vrot.lane.b32.xlu1 %v6218_v57, %s4873_s12 }
 0x367   : > { %v2358_v53 = vpop.permute.xlu1 %2357 }
 0x368   : > { %v2485_v29 = vpop.permute.xlu0 %2484  ;;  %2453 = vst.msk [vmem:[%s5517_s15 + $0x210] sm:$0xff] %vm2451_vm2, %v2358_v53 }
 0x369   : > { %2581 = vst.msk [vmem:[%s5517_s15 + $0x200] sm:$0xff] %vm2580_vm3, %v2485_v29  ;;  %2629 = vrot.lane.b32.xlu0 %v6199_v31, %s4875_s27  ;;  %2502 = vrot.lane.b32.xlu1 %v6218_v57, %s4874_s30 }
 0x36b   : > { %v2487_v62 = vpop.permute.xlu1 %2486 }
 0x36c   : > { %v2614_v30 = vpop.permute.xlu0 %2613  ;;  %2582 = vst.msk [vmem:[%s5517_s15 + $0x210] sm:$0xff] %vm2580_vm3, %v2487_v62 }
 0x36d   : > { %2710 = vst.msk [vmem:[%s5517_s15 + $0x200] sm:$0xff] %vm2709_vm4, %v2614_v30  ;;  %2758 = vrot.lane.b32.xlu0 %v6199_v31, %s4876_s9  ;;  %2631 = vrot.lane.b32.xlu1 %v6218_v57, %s4875_s27 }
 0x36e   : > { %3479 = vst.msk [vmem:[%s5517_s15 + $0x200] sm:$0xff] %vm3478_vm5, %v6374_v50 }
 0x36f   : > { %v2616_v18 = vpop.permute.xlu1 %2615 }
 0x370   : > { %v2743_v21 = vpop.permute.xlu0 %2742  ;;  %2711 = vst.msk [vmem:[%s5517_s15 + $0x210] sm:$0xff] %vm2709_vm4, %v2616_v18 }
 0x371   : > { %2838 = vst.msk [vmem:[%s5517_s15 + $0x208] sm:$0xff] %vm2290_vm1, %v2743_v21  ;;  %2886 = vrot.lane.b32.xlu0 %v6199_v31, %s4877_s7  ;;  %2760 = vrot.lane.b32.xlu1 %v6218_v57, %s4876_s9 }
 0x372   : > { %3480 = vst.msk [vmem:[%s5517_s15 + $0x210] sm:$0xff] %vm3478_vm5, %v6393_v5 }
 0x373   : > { %v2745_v50 = vpop.permute.xlu1 %2744 }
 0x374   : > { %v2871_v55 = vpop.permute.xlu0 %2870  ;;  %2839 = vst.msk [vmem:[%s5517_s15 + $0x218] sm:$0xff] %vm2290_vm1, %v2745_v50 }
 0x375   : > { %2966 = vst.msk [vmem:[%s5517_s15 + $0x208] sm:$0xff] %vm2451_vm2, %v2871_v55  ;;  %3014 = vrot.lane.b32.xlu0 %v6199_v31, %s4878_s10  ;;  %2888 = vrot.lane.b32.xlu1 %v6218_v57, %s4877_s7 }
 0x377   : > { %v2873_v24 = vpop.permute.xlu1 %2872 }
 0x378   : > { %v2999_v36 = vpop.permute.xlu0 %2998  ;;  %2967 = vst.msk [vmem:[%s5517_s15 + $0x218] sm:$0xff] %vm2451_vm2, %v2873_v24 }
 0x379   : > { %3094 = vst.msk [vmem:[%s5517_s15 + $0x208] sm:$0xff] %vm2580_vm3, %v2999_v36  ;;  %3142 = vrot.lane.b32.xlu0 %v6199_v31, %s4879_s29  ;;  %3016 = vrot.lane.b32.xlu1 %v6218_v57, %s4878_s10 }
 0x37b   : > { %v3001_v5 = vpop.permute.xlu1 %3000 }
 0x37c   : > { %v3127_v51 = vpop.permute.xlu0 %3126  ;;  %3095 = vst.msk [vmem:[%s5517_s15 + $0x218] sm:$0xff] %vm2580_vm3, %v3001_v5 }
 0x37d   : > { %3222 = vst.msk [vmem:[%s5517_s15 + $0x208] sm:$0xff] %vm2709_vm4, %v3127_v51  ;;  %3144 = vrot.lane.b32.xlu1 %v6218_v57, %s4879_s29  ;;  %2375 = vrot.lane.b32.xlu0 %v6237_v22, %s4873_s12 }
 0x37f   : > { %v3129_v31 = vpop.permute.xlu1 %3128 }
 0x380   : > { %3223 = vst.msk [vmem:[%s5517_s15 + $0x218] sm:$0xff] %vm2709_vm4, %v3129_v31  ;;  %v2360_v46 = vpop.permute.xlu0 %2359 }
 0x381   : > { %2454 = vst.msk [vmem:[%s5517_s15 + $0x220] sm:$0xff] %vm2451_vm2, %v2360_v46  ;;  %2504 = vrot.lane.b32.xlu0 %v6237_v22, %s4874_s30  ;;  %2377 = vrot.lane.b32.xlu1 %v6256_v17, %s4873_s12 }
 0x383   : > { %v2362_v57 = vpop.permute.xlu1 %2361 }
 0x384   : > { %v2489_v23 = vpop.permute.xlu0 %2488  ;;  %2455 = vst.msk [vmem:[%s5517_s15 + $0x230] sm:$0xff] %vm2451_vm2, %v2362_v57 }
 0x385   : > { %2583 = vst.msk [vmem:[%s5517_s15 + $0x220] sm:$0xff] %vm2580_vm3, %v2489_v23  ;;  %2633 = vrot.lane.b32.xlu0 %v6237_v22, %s4875_s27  ;;  %2506 = vrot.lane.b32.xlu1 %v6256_v17, %s4874_s30 }
 0x387   : > { %v2491_v63 = vpop.permute.xlu1 %2490 }
 0x388   : > { %v2618_v61 = vpop.permute.xlu0 %2617  ;;  %2584 = vst.msk [vmem:[%s5517_s15 + $0x230] sm:$0xff] %vm2580_vm3, %v2491_v63 }
 0x389   : > { %2712 = vst.msk [vmem:[%s5517_s15 + $0x220] sm:$0xff] %vm2709_vm4, %v2618_v61  ;;  %2762 = vrot.lane.b32.xlu0 %v6237_v22, %s4876_s9  ;;  %2635 = vrot.lane.b32.xlu1 %v6256_v17, %s4875_s27 }
 0x38a   : > { %3481 = vst.msk [vmem:[%s5517_s15 + $0x220] sm:$0xff] %vm3478_vm5, %v6467_v58 }
 0x38b   : > { %v2620_v9 = vpop.permute.xlu1 %2619 }
 0x38c   : > { %v2747_v52 = vpop.permute.xlu0 %2746  ;;  %2713 = vst.msk [vmem:[%s5517_s15 + $0x230] sm:$0xff] %vm2709_vm4, %v2620_v9 }
 0x38d   : > { %2840 = vst.msk [vmem:[%s5517_s15 + $0x228] sm:$0xff] %vm2290_vm1, %v2747_v52  ;;  %2890 = vrot.lane.b32.xlu0 %v6237_v22, %s4877_s7  ;;  %2764 = vrot.lane.b32.xlu1 %v6256_v17, %s4876_s9 }
 0x38e   : > { %3482 = vst.msk [vmem:[%s5517_s15 + $0x230] sm:$0xff] %vm3478_vm5, %v6475_v13 }
 0x38f   : > { %v2749_v58 = vpop.permute.xlu1 %2748 }
 0x390   : > { %v2875_v4 = vpop.permute.xlu0 %2874  ;;  %2841 = vst.msk [vmem:[%s5517_s15 + $0x238] sm:$0xff] %vm2290_vm1, %v2749_v58 }
 0x391   : > { %2968 = vst.msk [vmem:[%s5517_s15 + $0x228] sm:$0xff] %vm2451_vm2, %v2875_v4  ;;  %3018 = vrot.lane.b32.xlu0 %v6237_v22, %s4878_s10  ;;  %2892 = vrot.lane.b32.xlu1 %v6256_v17, %s4877_s7 }
 0x393   : > { %v2877_v53 = vpop.permute.xlu1 %2876 }
 0x394   : > { %v3003_v29 = vpop.permute.xlu0 %3002  ;;  %2969 = vst.msk [vmem:[%s5517_s15 + $0x238] sm:$0xff] %vm2451_vm2, %v2877_v53 }
 0x395   : > { %3096 = vst.msk [vmem:[%s5517_s15 + $0x228] sm:$0xff] %vm2580_vm3, %v3003_v29  ;;  %3146 = vrot.lane.b32.xlu0 %v6237_v22, %s4879_s29  ;;  %3020 = vrot.lane.b32.xlu1 %v6256_v17, %s4878_s10 }
 0x397   : > { %v3005_v13 = vpop.permute.xlu1 %3004 }
 0x398   : > { %v3131_v62 = vpop.permute.xlu0 %3130  ;;  %3097 = vst.msk [vmem:[%s5517_s15 + $0x238] sm:$0xff] %vm2580_vm3, %v3005_v13 }
 0x399   : > { %3224 = vst.msk [vmem:[%s5517_s15 + $0x228] sm:$0xff] %vm2709_vm4, %v3131_v62  ;;  %3148 = vrot.lane.b32.xlu1 %v6256_v17, %s4879_s29  ;;  %2379 = vrot.lane.b32.xlu0 %v6275_v56, %s4873_s12 }
 0x39b   : > { %v3133_v22 = vpop.permute.xlu1 %3132 }
 0x39c   : > { %3225 = vst.msk [vmem:[%s5517_s15 + $0x238] sm:$0xff] %vm2709_vm4, %v3133_v22  ;;  %v2364_v30 = vpop.permute.xlu0 %2363 }
 0x39d   : > { %2456 = vst.msk [vmem:[%s5517_s15 + $0x240] sm:$0xff] %vm2451_vm2, %v2364_v30  ;;  %2508 = vrot.lane.b32.xlu0 %v6275_v56, %s4874_s30  ;;  %2381 = vrot.lane.b32.xlu1 %v6294_v49, %s4873_s12 }
 0x39f   : > { %v2366_v17 = vpop.permute.xlu1 %2365 }
 0x3a0   : > { %v2493_v18 = vpop.permute.xlu0 %2492  ;;  %2457 = vst.msk [vmem:[%s5517_s15 + $0x250] sm:$0xff] %vm2451_vm2, %v2366_v17 }
 0x3a1   : > { %2585 = vst.msk [vmem:[%s5517_s15 + $0x240] sm:$0xff] %vm2580_vm3, %v2493_v18  ;;  %2637 = vrot.lane.b32.xlu0 %v6275_v56, %s4875_s27  ;;  %2510 = vrot.lane.b32.xlu1 %v6294_v49, %s4874_s30 }
 0x3a3   : > { %v2495_v21 = vpop.permute.xlu1 %2494 }
 0x3a4   : > { %v2622_v50 = vpop.permute.xlu0 %2621  ;;  %2586 = vst.msk [vmem:[%s5517_s15 + $0x250] sm:$0xff] %vm2580_vm3, %v2495_v21 }
 0x3a5   : > { %2714 = vst.msk [vmem:[%s5517_s15 + $0x240] sm:$0xff] %vm2709_vm4, %v2622_v50  ;;  %2766 = vrot.lane.b32.xlu0 %v6275_v56, %s4876_s9  ;;  %2639 = vrot.lane.b32.xlu1 %v6294_v49, %s4875_s27 }
 0x3a6   : > { %3483 = vst.msk [vmem:[%s5517_s15 + $0x240] sm:$0xff] %vm3478_vm5, %v6531_v48 }
 0x3a7   : > { %v2624_v55 = vpop.permute.xlu1 %2623 }
 0x3a8   : > { %v2751_v24 = vpop.permute.xlu0 %2750  ;;  %2715 = vst.msk [vmem:[%s5517_s15 + $0x250] sm:$0xff] %vm2709_vm4, %v2624_v55 }
 0x3a9   : > { %2842 = vst.msk [vmem:[%s5517_s15 + $0x248] sm:$0xff] %vm2290_vm1, %v2751_v24  ;;  %2894 = vrot.lane.b32.xlu0 %v6275_v56, %s4877_s7  ;;  %2768 = vrot.lane.b32.xlu1 %v6294_v49, %s4876_s9 }
 0x3aa   : > { %3484 = vst.msk [vmem:[%s5517_s15 + $0x250] sm:$0xff] %vm3478_vm5, %v6539_v59 }
 0x3ab   : > { %v2753_v48 = vpop.permute.xlu1 %2752 }
 0x3ac   : > { %v2879_v36 = vpop.permute.xlu0 %2878  ;;  %2843 = vst.msk [vmem:[%s5517_s15 + $0x258] sm:$0xff] %vm2290_vm1, %v2753_v48 }
 0x3ad   : > { %2970 = vst.msk [vmem:[%s5517_s15 + $0x248] sm:$0xff] %vm2451_vm2, %v2879_v36  ;;  %3022 = vrot.lane.b32.xlu0 %v6275_v56, %s4878_s10  ;;  %2896 = vrot.lane.b32.xlu1 %v6294_v49, %s4877_s7  ;;  %v8675_v36 = vsel %vm5751_vm0, %v5609_v8, %v5895_v1 }
 0x3af   : > { %v2881_v5 = vpop.permute.xlu1 %2880 }
 0x3b0   : > { %v3007_v51 = vpop.permute.xlu0 %3006  ;;  %2971 = vst.msk [vmem:[%s5517_s15 + $0x258] sm:$0xff] %vm2451_vm2, %v2881_v5  ;;  %v3293_v5 = vadd.f32 %v8675_v36, %v5673_v15 }
 0x3b1   : > { %3098 = vst.msk [vmem:[%s5517_s15 + $0x248] sm:$0xff] %vm2580_vm3, %v3007_v51  ;;  %3150 = vrot.lane.b32.xlu0 %v6275_v56, %s4879_s29  ;;  %3024 = vrot.lane.b32.xlu1 %v6294_v49, %s4878_s10 }
 0x3b3   : > { %v3009_v59 = vpop.permute.xlu1 %3008 }
 0x3b4   : > { %v3135_v31 = vpop.permute.xlu0 %3134  ;;  %3099 = vst.msk [vmem:[%s5517_s15 + $0x258] sm:$0xff] %vm2580_vm3, %v3009_v59 }
 0x3b5   : > { %3226 = vst.msk [vmem:[%s5517_s15 + $0x248] sm:$0xff] %vm2709_vm4, %v3135_v31  ;;  %3152 = vrot.lane.b32.xlu1 %v6294_v49, %s4879_s29  ;;  %2383 = vrot.lane.b32.xlu0 %v6313_v16, %s4873_s12 }
 0x3b7   : > { %v3137_v56 = vpop.permute.xlu1 %3136 }
 0x3b8   : > { %3227 = vst.msk [vmem:[%s5517_s15 + $0x258] sm:$0xff] %vm2709_vm4, %v3137_v56  ;;  %v2368_v46 = vpop.permute.xlu0 %2367 }
 0x3b9   : > { %2458 = vst.msk [vmem:[%s5517_s15 + $0x260] sm:$0xff] %vm2451_vm2, %v2368_v46  ;;  %2512 = vrot.lane.b32.xlu0 %v6313_v16, %s4874_s30  ;;  %2385 = vrot.lane.b32.xlu1 %v6332_v27, %s4873_s12 }
 0x3bb   : > { %v2370_v49 = vpop.permute.xlu1 %2369 }
 0x3bc   : > { %v2497_v57 = vpop.permute.xlu0 %2496  ;;  %2459 = vst.msk [vmem:[%s5517_s15 + $0x270] sm:$0xff] %vm2451_vm2, %v2370_v49 }
 0x3bd   : > { %2587 = vst.msk [vmem:[%s5517_s15 + $0x260] sm:$0xff] %vm2580_vm3, %v2497_v57  ;;  %2641 = vrot.lane.b32.xlu0 %v6313_v16, %s4875_s27  ;;  %2514 = vrot.lane.b32.xlu1 %v6332_v27, %s4874_s30 }
 0x3bf   : > { %v2499_v23 = vpop.permute.xlu1 %2498 }
 0x3c0   : > { %v2626_v63 = vpop.permute.xlu0 %2625  ;;  %2588 = vst.msk [vmem:[%s5517_s15 + $0x270] sm:$0xff] %vm2580_vm3, %v2499_v23 }
 0x3c1   : > { %2716 = vst.msk [vmem:[%s5517_s15 + $0x260] sm:$0xff] %vm2709_vm4, %v2626_v63  ;;  %2770 = vrot.lane.b32.xlu0 %v6313_v16, %s4876_s9  ;;  %2643 = vrot.lane.b32.xlu1 %v6332_v27, %s4875_s27  ;;  %v8676_v63 = vld [vmem:[#allocation13_spill] sm:$0xff] }
 0x3c3   : > { %v2628_v61 = vpop.permute.xlu1 %2627 }
 0x3c4   : > { %v2755_v9 = vpop.permute.xlu0 %2754  ;;  %2717 = vst.msk [vmem:[%s5517_s15 + $0x270] sm:$0xff] %vm2709_vm4, %v2628_v61  ;;  %v8677_v61 = vld [vmem:[#allocation63_spill] sm:$0xff] }
 0x3c5   : > { %2844 = vst.msk [vmem:[%s5517_s15 + $0x268] sm:$0xff] %vm2290_vm1, %v2755_v9  ;;  %2898 = vrot.lane.b32.xlu0 %v6313_v16, %s4877_s7  ;;  %2772 = vrot.lane.b32.xlu1 %v6332_v27, %s4876_s9  ;;  %v8678_v9 = vsel %vm5751_vm0, %v8676_v63, %v8677_v61  ;;  %v8700_v61 = vld [vmem:[#allocation17_spill] sm:$0xff] }
 0x3c7   : > { %v2757_v52 = vpop.permute.xlu1 %2756 }
 0x3c8   : > { %v2883_v58 = vpop.permute.xlu0 %2882  ;;  %2845 = vst.msk [vmem:[%s5517_s15 + $0x278] sm:$0xff] %vm2290_vm1, %v2757_v52  ;;  %v3292_v52 = vadd.f32 %v8678_v9, %v5667_v6  ;;  %v8679_v6 = vsel %vm5751_vm0, %v5613_v28, %v5922_v0  ;;  %v8680_v28 = vsel %vm5751_vm0, %v5617_v44, %v5951_v35  ;;  %v8701_v9 = vld [vmem:[#allocation77_spill] sm:$0xff] }
 0x3c9   : > { %2972 = vst.msk [vmem:[%s5517_s15 + $0x268] sm:$0xff] %vm2451_vm2, %v2883_v58  ;;  %3026 = vrot.lane.b32.xlu0 %v6313_v16, %s4878_s10  ;;  %2900 = vrot.lane.b32.xlu1 %v6332_v27, %s4877_s7  ;;  %v3295_v0 = vadd.f32 %v8680_v28, %v8635_v33 }
 0x3cb   : > { %v2885_v4 = vpop.permute.xlu1 %2884  ;;  %v7161_v44 = vmax.f32 %v3295_v0, 0.0 }
 0x3cc   : > { %v3011_v53 = vpop.permute.xlu0 %3010  ;;  %2973 = vst.msk [vmem:[%s5517_s15 + $0x278] sm:$0xff] %vm2451_vm2, %v2885_v4 }
 0x3cd   : > { %3100 = vst.msk [vmem:[%s5517_s15 + $0x268] sm:$0xff] %vm2580_vm3, %v3011_v53  ;;  %3154 = vrot.lane.b32.xlu0 %v6313_v16, %s4879_s29  ;;  %3028 = vrot.lane.b32.xlu1 %v6332_v27, %s4878_s10  ;;  %v7123_v53 = vmax.f32 %v3292_v52, 0.0  ;;  %v8702_v52 = vsel %vm5751_vm0, %v8700_v61, %v8701_v9 }
 0x3cf   : > { %v3013_v29 = vpop.permute.xlu1 %3012 }
 0x3d0   : > { %v3139_v13 = vpop.permute.xlu0 %3138  ;;  %3101 = vst.msk [vmem:[%s5517_s15 + $0x278] sm:$0xff] %vm2580_vm3, %v3013_v29  ;;  %v3294_v29 = vadd.f32 %v8679_v6, %v8631_v11  ;;  %v8681_v11 = vsel %vm5751_vm0, %v5621_v60, %v5974_v38  ;;  %v8682_v60 = vsel %vm5751_vm0, %v5625_v12, %v5995_v45  ;;  %v8683_v38 = vsel %vm5751_vm0, %v5631_v26, %v6014_v25  ;;  %v8704_v6 = vld [vmem:[#allocation19_spill] sm:$0xff] }
 0x3d1   : > { %3228 = vst.msk [vmem:[%s5517_s15 + $0x268] sm:$0xff] %vm2709_vm4, %v3139_v13  ;;  %3156 = vrot.lane.b32.xlu1 %v6332_v27, %s4879_s29  ;;  %2387 = vrot.lane.b32.xlu0 %v6351_v42, %s4873_s12  ;;  %v3298_v33 = vadd.f32 %v8683_v38, %v8647_v10  ;;  %v8684_v26 = vsel %vm5751_vm0, %v5639_v32, %v6033_v3  ;;  %v8711_v38 = vld [vmem:[#allocation57_spill] sm:$0xff] }
 0x3d2   : > { %v3299_v10 = vadd.f32 %v8684_v26, %v8651_v34  ;;  %v8685_v25 = vsel %vm5751_vm0, %v5645_v41, %v6052_v39  ;;  %v8686_v41 = vld [vmem:[#allocation71_spill] sm:$0xff] }
 0x3d3   : > { %v3141_v16 = vpop.permute.xlu1 %3140  ;;  %v7187_v45 = vmax.f32 %v3298_v33, 0.0  ;;  %v8687_v39 = vsel %vm5751_vm0, %v5651_v47, %v8686_v41  ;;  %v8712_v33 = vld [vmem:[#allocation25_spill] sm:$0xff]  ;;  %v8716_v41 = vld [vmem:[#allocation28_spill] sm:$0xff] }
 0x3d4   : > { %3229 = vst.msk [vmem:[%s5517_s15 + $0x278] sm:$0xff] %vm2709_vm4, %v3141_v16  ;;  %v2372_v62 = vpop.permute.xlu0 %2371  ;;  %v7209_v32 = vmax.f32 %v3299_v10, 0.0  ;;  %v3301_v34 = vadd.f32 %v8687_v39, %v8659_v7  ;;  %v8717_v39 = vld [vmem:[#allocation23_spill] sm:$0xff] }
 0x3d5   : > { %2460 = vst.msk [vmem:[%s5517_s15 + $0x280] sm:$0xff] %vm2451_vm2, %v2372_v62  ;;  %2516 = vrot.lane.b32.xlu0 %v6351_v42, %s4874_s30  ;;  %2389 = vrot.lane.b32.xlu1 %v6370_v54, %s4873_s12  ;;  %v3296_v62 = vadd.f32 %v8681_v11, %v8639_v37  ;;  %v3297_v37 = vadd.f32 %v8682_v60, %v8643_v20 }
 0x3d6   : > { %v3300_v20 = vadd.f32 %v8685_v25, %v8655_v40  ;;  %v8688_v40 = vld [vmem:[#allocation42_spill] sm:$0xff]  ;;  %v7233_v47 = vmax.f32 %v3301_v34, 0.0  ;;  %v8718_v34 = vsel %vm5751_vm0, %v8716_v41, %v8717_v39  ;;  %v8743_v41 = vld [vmem:[#allocation68_spill] sm:$0xff]  ;;  %v8744_v39 = vld [vmem:[#allocation49_spill] sm:$0xff] }
 0x3d7   : > { %v2374_v27 = vpop.permute.xlu1 %2373  ;;  %v7163_v35 = vmax.f32 %v3296_v62, 0.0  ;;  %v7185_v12 = vmax.f32 %v3297_v37, 0.0  ;;  %v8707_v62 = vld [vmem:[#allocation55_spill] sm:$0xff] }
 0x3d8   : > { %v2501_v22 = vpop.permute.xlu0 %2500  ;;  %2461 = vst.msk [vmem:[%s5517_s15 + $0x290] sm:$0xff] %vm2451_vm2, %v2374_v27  ;;  %v7211_v3 = vmax.f32 %v3300_v20, 0.0 }
 0x3d9   : > { %2589 = vst.msk [vmem:[%s5517_s15 + $0x280] sm:$0xff] %vm2580_vm3, %v2501_v22  ;;  %2645 = vrot.lane.b32.xlu0 %v6351_v42, %s4875_s27  ;;  %2518 = vrot.lane.b32.xlu1 %v6370_v54, %s4874_s30 }
 0x3db   : > { %v2503_v30 = vpop.permute.xlu1 %2502 }
 0x3dc   : > { %v2630_v17 = vpop.permute.xlu0 %2629  ;;  %2590 = vst.msk [vmem:[%s5517_s15 + $0x290] sm:$0xff] %vm2580_vm3, %v2503_v30 }
 0x3dd   : > { %2718 = vst.msk [vmem:[%s5517_s15 + $0x280] sm:$0xff] %vm2709_vm4, %v2630_v17  ;;  %2774 = vrot.lane.b32.xlu0 %v6351_v42, %s4876_s9  ;;  %2647 = vrot.lane.b32.xlu1 %v6370_v54, %s4875_s27 }
 0x3df   : > { %v2632_v18 = vpop.permute.xlu1 %2631 }
 0x3e0   : > { %v2759_v21 = vpop.permute.xlu0 %2758  ;;  %2719 = vst.msk [vmem:[%s5517_s15 + $0x290] sm:$0xff] %vm2709_vm4, %v2632_v18 }
 0x3e1   : > { %2846 = vst.msk [vmem:[%s5517_s15 + $0x288] sm:$0xff] %vm2290_vm1, %v2759_v21  ;;  %2902 = vrot.lane.b32.xlu0 %v6351_v42, %s4877_s7  ;;  %2776 = vrot.lane.b32.xlu1 %v6370_v54, %s4876_s9  ;;  %v8689_v21 = vld [vmem:[#allocation14_spill] sm:$0xff] }
 0x3e3   : > { %v2761_v50 = vpop.permute.xlu1 %2760 }
 0x3e4   : > { %v2887_v55 = vpop.permute.xlu0 %2886  ;;  %2847 = vst.msk [vmem:[%s5517_s15 + $0x298] sm:$0xff] %vm2290_vm1, %v2761_v50  ;;  %v8690_v50 = vld [vmem:[#allocation72_spill] sm:$0xff] }
 0x3e5   : > { %2974 = vst.msk [vmem:[%s5517_s15 + $0x288] sm:$0xff] %vm2451_vm2, %v2887_v55  ;;  %3030 = vrot.lane.b32.xlu0 %v6351_v42, %s4878_s10  ;;  %2904 = vrot.lane.b32.xlu1 %v6370_v54, %s4877_s7  ;;  %v8691_v55 = vsel %vm5751_vm0, %v8689_v21, %v8690_v50  ;;  %v8719_v21 = vld [vmem:[#allocation60_spill] sm:$0xff]  ;;  %v8720_v50 = vld [vmem:[#allocation31_spill] sm:$0xff] }
 0x3e7   : > { %v2889_v24 = vpop.permute.xlu1 %2888 }
 0x3e8   : > { %v3015_v48 = vpop.permute.xlu0 %3014  ;;  %2975 = vst.msk [vmem:[%s5517_s15 + $0x298] sm:$0xff] %vm2451_vm2, %v2889_v24  ;;  %v3302_v24 = vadd.f32 %v8691_v55, %v8688_v40  ;;  %v8721_v55 = vld [vmem:[#allocation21_spill] sm:$0xff] }
 0x3e9   : > { %3102 = vst.msk [vmem:[%s5517_s15 + $0x288] sm:$0xff] %vm2580_vm3, %v3015_v48  ;;  %3158 = vrot.lane.b32.xlu0 %v6351_v42, %s4879_s29  ;;  %3032 = vrot.lane.b32.xlu1 %v6370_v54, %s4878_s10  ;;  %v7067_v42 = vmax.f32 %v3293_v5, 0.0  ;;  %v8692_v5 = vld [vmem:[#allocation45_spill] sm:$0xff] }
 0x3ea   : > { %v7235_v7 = vmax.f32 %v3302_v24, 0.0  ;;  %v8722_v24 = vsel %vm5751_vm0, %v8720_v50, %v8721_v55 }
 0x3eb   : > { %v3017_v51 = vpop.permute.xlu1 %3016 }
 0x3ec   : > { %v3143_v59 = vpop.permute.xlu0 %3142  ;;  %3103 = vst.msk [vmem:[%s5517_s15 + $0x298] sm:$0xff] %vm2580_vm3, %v3017_v51  ;;  %v8693_v51 = vld [vmem:[#allocation15_spill] sm:$0xff] }
 0x3ed   : > { %3230 = vst.msk [vmem:[%s5517_s15 + $0x288] sm:$0xff] %vm2709_vm4, %v3143_v59  ;;  %3160 = vrot.lane.b32.xlu1 %v6370_v54, %s4879_s29  ;;  %2391 = vrot.lane.b32.xlu0 %v6395_v14, %s4873_s12  ;;  %v8694_v59 = vld [vmem:[#allocation74_spill] sm:$0xff] }
 0x3ef   : > { %v3145_v8 = vpop.permute.xlu1 %3144 }
 0x3f0   : > { %3231 = vst.msk [vmem:[%s5517_s15 + $0x298] sm:$0xff] %vm2709_vm4, %v3145_v8  ;;  %v2376_v15 = vpop.permute.xlu0 %2375  ;;  %v8695_v8 = vsel %vm5751_vm0, %v8693_v51, %v8694_v59 }
 0x3f1   : > { %2462 = vst.msk [vmem:[%s5517_s15 + $0x2a0] sm:$0xff] %vm2451_vm2, %v2376_v15  ;;  %3396 = vrot.lane.b32.xlu1 %v7067_v42, %s4873_s12  ;;  %2520 = vrot.lane.b32.xlu0 %v6395_v14, %s4874_s30  ;;  %v3303_v15 = vadd.f32 %v8695_v8, %v8692_v5  ;;  %v8723_v8 = vld [vmem:[#allocation61_spill] sm:$0xff] }
 0x3f3   : > { %v2378_v1 = vpop.permute.xlu1 %2377 }
 0x3f4   : > { %v2505_v54 = vpop.permute.xlu0 %2504  ;;  %2463 = vst.msk [vmem:[%s5517_s15 + $0x2b0] sm:$0xff] %vm2451_vm2, %v2378_v1  ;;  %v8696_v1 = vld [vmem:[#allocation48_spill] sm:$0xff] }
 0x3f5   : > { %2591 = vst.msk [vmem:[%s5517_s15 + $0x2a0] sm:$0xff] %vm2580_vm3, %v2505_v54  ;;  %2649 = vrot.lane.b32.xlu0 %v6395_v14, %s4875_s27  ;;  %2393 = vrot.lane.b32.xlu1 %v6414_v2, %s4873_s12  ;;  %v8697_v54 = vld [vmem:[#allocation16_spill] sm:$0xff] }
 0x3f7   : > { %v2507_v31 = vpop.permute.xlu1 %2506 }
 0x3f8   : > { %v2634_v56 = vpop.permute.xlu0 %2633  ;;  %2592 = vst.msk [vmem:[%s5517_s15 + $0x2b0] sm:$0xff] %vm2580_vm3, %v2507_v31  ;;  %v8698_v31 = vld [vmem:[#allocation76_spill] sm:$0xff] }
 0x3f9   : > { %2720 = vst.msk [vmem:[%s5517_s15 + $0x2a0] sm:$0xff] %vm2709_vm4, %v2634_v56  ;;  %2778 = vrot.lane.b32.xlu0 %v6395_v14, %s4876_s9  ;;  %2522 = vrot.lane.b32.xlu1 %v6414_v2, %s4874_s30  ;;  %v8699_v56 = vsel %vm5751_vm0, %v8697_v54, %v8698_v31 }
 0x3fb   : > { %v2636_v46 = vpop.permute.xlu1 %2635 }
 0x3fc   : > { %v2763_v49 = vpop.permute.xlu0 %2762  ;;  %2721 = vst.msk [vmem:[%s5517_s15 + $0x2b0] sm:$0xff] %vm2709_vm4, %v2636_v46  ;;  %v3304_v46 = vadd.f32 %v8699_v56, %v8696_v1  ;;  %v8725_v1 = vld [vmem:[#allocation26_spill] sm:$0xff] }
 0x3fd   : > { %2848 = vst.msk [vmem:[%s5517_s15 + $0x2a8] sm:$0xff] %vm2290_vm1, %v2763_v49  ;;  %2906 = vrot.lane.b32.xlu0 %v6395_v14, %s4877_s7  ;;  %2651 = vrot.lane.b32.xlu1 %v6414_v2, %s4875_s27  ;;  %v8727_v56 = vld [vmem:[#allocation62_spill] sm:$0xff] }
 0x3fe   : > { %v7259_v63 = vmax.f32 %v3304_v46, 0.0  ;;  %v8728_v46 = vld [vmem:[#allocation37_spill] sm:$0xff] }
 0x3ff   : > { %v2765_v57 = vpop.permute.xlu1 %2764 }
 0x400   : > { %v2891_v23 = vpop.permute.xlu0 %2890  ;;  %2849 = vst.msk [vmem:[%s5517_s15 + $0x2b8] sm:$0xff] %vm2290_vm1, %v2765_v57 }
 0x401   : > { %2976 = vst.msk [vmem:[%s5517_s15 + $0x2a8] sm:$0xff] %vm2451_vm2, %v2891_v23  ;;  %3034 = vrot.lane.b32.xlu0 %v6395_v14, %s4878_s10  ;;  %2780 = vrot.lane.b32.xlu1 %v6414_v2, %s4876_s9  ;;  %v7257_v23 = vmax.f32 %v3303_v15, 0.0  ;;  %v8724_v15 = vld [vmem:[#allocation34_spill] sm:$0xff] }
 0x402   : > { %v8726_v54 = vsel %vm5751_vm0, %v8724_v15, %v8725_v1 }
 0x403   : > { %v2893_v58 = vpop.permute.xlu1 %2892  ;;  %v3311_v31 = vadd.f32 %v8726_v54, %v8723_v8  ;;  %v8749_v8 = vld [vmem:[#allocation35_spill] sm:$0xff] }
 0x404   : > { %v3019_v4 = vpop.permute.xlu0 %3018  ;;  %2977 = vst.msk [vmem:[%s5517_s15 + $0x2b8] sm:$0xff] %vm2451_vm2, %v2893_v58  ;;  %v3305_v58 = vadd.f32 %v8702_v52, %v8674_v19 }
 0x405   : > { %3104 = vst.msk [vmem:[%s5517_s15 + $0x2a8] sm:$0xff] %vm2580_vm3, %v3019_v4  ;;  %3162 = vrot.lane.b32.xlu0 %v6395_v14, %s4879_s29  ;;  %2908 = vrot.lane.b32.xlu1 %v6414_v2, %s4877_s7  ;;  %v7139_v14 = vmax.f32 %v3294_v29, 0.0  ;;  %v8703_v4 = vld [vmem:[#allocation54_spill] sm:$0xff] }
 0x406   : > { %v8705_v29 = vld [vmem:[#allocation78_spill] sm:$0xff]  ;;  %v7281_v19 = vmax.f32 %v3305_v58, 0.0  ;;  %v7353_v58 = vmax.f32 %v3311_v31, 0.0 }
 0x407   : > { %v3021_v13 = vpop.permute.xlu1 %3020 }
 0x408   : > { %v3147_v16 = vpop.permute.xlu0 %3146  ;;  %3105 = vst.msk [vmem:[%s5517_s15 + $0x2b8] sm:$0xff] %vm2580_vm3, %v3021_v13  ;;  %v8706_v13 = vsel %vm5751_vm0, %v8704_v6, %v8705_v29  ;;  %v8731_v6 = vld [vmem:[#allocation64_spill] sm:$0xff] }
 0x409   : > { %3232 = vst.msk [vmem:[%s5517_s15 + $0x2a8] sm:$0xff] %vm2709_vm4, %v3147_v16  ;;  %3394 = vrot.lane.b32.xlu0 %v7123_v53, %s4873_s12  ;;  %3036 = vrot.lane.b32.xlu1 %v6414_v2, %s4878_s10  ;;  %v3306_v16 = vadd.f32 %v8706_v13, %v8703_v4  ;;  %v8732_v29 = vld [vmem:[#allocation40_spill] sm:$0xff]  ;;  %v8733_v13 = vld [vmem:[#allocation29_spill] sm:$0xff] }
 0x40b   : > { %v3149_v27 = vpop.permute.xlu1 %3148  ;;  %v7283_v11 = vmax.f32 %v3306_v16, 0.0  ;;  %v8734_v16 = vsel %vm5751_vm0, %v8732_v29, %v8733_v13  ;;  %v8754_v13 = vld [vmem:[#allocation73_spill] sm:$0xff] }
 0x40c   : > { %3233 = vst.msk [vmem:[%s5517_s15 + $0x2b8] sm:$0xff] %vm2709_vm4, %v3149_v27  ;;  %v2380_v22 = vpop.permute.xlu0 %2379  ;;  %v8708_v27 = vld [vmem:[#allocation22_spill] sm:$0xff] }
 0x40d   : > { %2464 = vst.msk [vmem:[%s5517_s15 + $0x2c0] sm:$0xff] %vm2451_vm2, %v2380_v22  ;;  %3398 = vrot.lane.b32.xlu0 %v7139_v14, %s4873_s12  ;;  %3164 = vrot.lane.b32.xlu1 %v6414_v2, %s4879_s29  ;;  %v8709_v22 = vld [vmem:[#allocation20_spill] sm:$0xff] }
 0x40e   : > { %v8710_v60 = vsel %vm5751_vm0, %v8708_v27, %v8709_v22  ;;  %v8737_v27 = vld [vmem:[#allocation27_spill] sm:$0xff] }
 0x40f   : > { %v2382_v2 = vpop.permute.xlu1 %2381  ;;  %v3307_v37 = vadd.f32 %v8710_v60, %v8707_v62  ;;  %v8736_v62 = vld [vmem:[#allocation43_spill] sm:$0xff] }
 0x410   : > { %v2509_v30 = vpop.permute.xlu0 %2508  ;;  %2465 = vst.msk [vmem:[%s5517_s15 + $0x2d0] sm:$0xff] %vm2451_vm2, %v2382_v2  ;;  %v8713_v2 = vld [vmem:[#allocation18_spill] sm:$0xff]  ;;  %v8738_v22 = vsel %vm5751_vm0, %v8736_v62, %v8737_v27  ;;  %v8756_v62 = vld [vmem:[#allocation75_spill] sm:$0xff] }
 0x411   : > { %2593 = vst.msk [vmem:[%s5517_s15 + $0x2c0] sm:$0xff] %vm2580_vm3, %v2509_v30  ;;  %3402 = vrot.lane.b32.xlu0 %v7163_v35, %s4873_s12  ;;  %3400 = vrot.lane.b32.xlu1 %v7161_v44, %s4873_s12  ;;  %v8714_v30 = vsel %vm5751_vm0, %v8712_v33, %v8713_v2  ;;  %v7305_v20 = vmax.f32 %v3307_v37, 0.0 }
 0x412   : > { %v3308_v26 = vadd.f32 %v8714_v30, %v8711_v38  ;;  %v8739_v30 = vld [vmem:[#allocation66_spill] sm:$0xff] }
 0x413   : > { %v2511_v17 = vpop.permute.xlu1 %2510 }
 0x414   : > { %v2638_v18 = vpop.permute.xlu0 %2637  ;;  %2594 = vst.msk [vmem:[%s5517_s15 + $0x2d0] sm:$0xff] %vm2580_vm3, %v2511_v17  ;;  %v7307_v17 = vmax.f32 %v3308_v26, 0.0  ;;  %v8740_v26 = vld [vmem:[#allocation46_spill] sm:$0xff] }
 0x415   : > { %2722 = vst.msk [vmem:[%s5517_s15 + $0x2c0] sm:$0xff] %vm2709_vm4, %v2638_v18  ;;  %3406 = vrot.lane.b32.xlu0 %v7187_v45, %s4873_s12  ;;  %3404 = vrot.lane.b32.xlu1 %v7185_v12, %s4873_s12  ;;  %v8715_v18 = vld [vmem:[#allocation59_spill] sm:$0xff] }
 0x416   : > { %v3309_v40 = vadd.f32 %v8718_v34, %v8715_v18  ;;  %v8745_v34 = vld [vmem:[#allocation30_spill] sm:$0xff] }
 0x417   : > { %v2640_v48 = vpop.permute.xlu1 %2639 }
 0x418   : > { %v2767_v36 = vpop.permute.xlu0 %2766  ;;  %2723 = vst.msk [vmem:[%s5517_s15 + $0x2d0] sm:$0xff] %vm2709_vm4, %v2640_v48  ;;  %v3310_v48 = vadd.f32 %v8722_v24, %v8719_v21  ;;  %v7329_v51 = vmax.f32 %v3309_v40, 0.0  ;;  %v8746_v40 = vsel %vm5751_vm0, %v8744_v39, %v8745_v34 }
 0x419   : > { %2850 = vst.msk [vmem:[%s5517_s15 + $0x2c8] sm:$0xff] %vm2290_vm1, %v2767_v36  ;;  %3410 = vrot.lane.b32.xlu0 %v7211_v3, %s4873_s12  ;;  %3408 = vrot.lane.b32.xlu1 %v7209_v32, %s4873_s12  ;;  %v3316_v21 = vadd.f32 %v8746_v40, %v8743_v41 }
 0x41a   : > { %v7331_v59 = vmax.f32 %v3310_v48, 0.0 }
 0x41b   : > { %v2769_v49 = vpop.permute.xlu1 %2768  ;;  %v7403_v48 = vmax.f32 %v3316_v21, 0.0 }
 0x41c   : > { %v2895_v57 = vpop.permute.xlu0 %2894  ;;  %2851 = vst.msk [vmem:[%s5517_s15 + $0x2d8] sm:$0xff] %vm2290_vm1, %v2769_v49  ;;  %v8729_v49 = vld [vmem:[#allocation24_spill] sm:$0xff] }
 0x41d   : > { %2978 = vst.msk [vmem:[%s5517_s15 + $0x2c8] sm:$0xff] %vm2451_vm2, %v2895_v57  ;;  %3414 = vrot.lane.b32.xlu0 %v7235_v7, %s4873_s12  ;;  %3412 = vrot.lane.b32.xlu1 %v7233_v47, %s4873_s12  ;;  %v8730_v57 = vsel %vm5751_vm0, %v8728_v46, %v8729_v49  ;;  %v8751_v49 = vld [vmem:[#allocation56_spill] sm:$0xff] }
 0x41e   : > { %v3312_v61 = vadd.f32 %v8730_v57, %v8727_v56 }
 0x41f   : > { %v2897_v28 = vpop.permute.xlu1 %2896 }
 0x420   : > { %v3023_v0 = vpop.permute.xlu0 %3022  ;;  %2979 = vst.msk [vmem:[%s5517_s15 + $0x2d8] sm:$0xff] %vm2451_vm2, %v2897_v28  ;;  %v7355_v4 = vmax.f32 %v3312_v61, 0.0  ;;  %v3313_v28 = vadd.f32 %v8734_v16, %v8731_v6  ;;  %v8755_v16 = vld [vmem:[#allocation69_spill] sm:$0xff] }
 0x421   : > { %3106 = vst.msk [vmem:[%s5517_s15 + $0x2c8] sm:$0xff] %vm2580_vm3, %v3023_v0  ;;  %3418 = vrot.lane.b32.xlu0 %v7259_v63, %s4873_s12  ;;  %3416 = vrot.lane.b32.xlu1 %v7257_v23, %s4873_s12  ;;  %v8735_v0 = vld [vmem:[#allocation65_spill] sm:$0xff] }
 0x422   : > { %v3314_v60 = vadd.f32 %v8738_v22, %v8735_v0  ;;  %v7377_v33 = vmax.f32 %v3313_v28, 0.0 }
 0x423   : > { %v3025_v10 = vpop.permute.xlu1 %3024 }
 0x424   : > { %v3151_v25 = vpop.permute.xlu0 %3150  ;;  %3107 = vst.msk [vmem:[%s5517_s15 + $0x2d8] sm:$0xff] %vm2580_vm3, %v3025_v10  ;;  %v7379_v2 = vmax.f32 %v3314_v60, 0.0  ;;  %v8741_v10 = vld [vmem:[#allocation32_spill] sm:$0xff] }
 0x425   : > { %3234 = vst.msk [vmem:[%s5517_s15 + $0x2c8] sm:$0xff] %vm2709_vm4, %v3151_v25  ;;  %3422 = vrot.lane.b32.xlu0 %v7283_v11, %s4873_s12  ;;  %3420 = vrot.lane.b32.xlu1 %v7281_v19, %s4873_s12  ;;  %v8742_v25 = vsel %vm5751_vm0, %v8740_v26, %v8741_v10 }
 0x426   : > { %v3315_v18 = vadd.f32 %v8742_v25, %v8739_v30 }
 0x427   : > { %v3153_v36 = vpop.permute.xlu1 %3152 }
 0x428   : > { %3235 = vst.msk [vmem:[%s5517_s15 + $0x2d8] sm:$0xff] %vm2709_vm4, %v3153_v36  ;;  %v2384_v5 = vpop.permute.xlu0 %2383  ;;  %v7401_v24 = vmax.f32 %v3315_v18, 0.0  ;;  %v8747_v36 = vld [vmem:[#allocation70_spill] sm:$0xff] }
 0x429   : > { %2466 = vst.msk [vmem:[%s5517_s15 + $0x2e0] sm:$0xff] %vm2451_vm2, %v2384_v5  ;;  %3426 = vrot.lane.b32.xlu0 %v7307_v17, %s4873_s12  ;;  %3424 = vrot.lane.b32.xlu1 %v7305_v20, %s4873_s12  ;;  %v8748_v5 = vld [vmem:[#allocation52_spill] sm:$0xff] }
 0x42a   : > { %v8750_v15 = vsel %vm5751_vm0, %v8748_v5, %v8749_v8 }
 0x42b   : > { %v2386_v9 = vpop.permute.xlu1 %2385  ;;  %v3317_v1 = vadd.f32 %v8750_v15, %v8747_v36 }
 0x42c   : > { %v2513_v52 = vpop.permute.xlu0 %2512  ;;  %2467 = vst.msk [vmem:[%s5517_s15 + $0x2f0] sm:$0xff] %vm2451_vm2, %v2386_v9  ;;  %v8752_v9 = vld [vmem:[#allocation67_spill] sm:$0xff] }
 0x42d   : > { %2595 = vst.msk [vmem:[%s5517_s15 + $0x2e0] sm:$0xff] %vm2580_vm3, %v2513_v52  ;;  %3430 = vrot.lane.b32.xlu0 %v7331_v59, %s4873_s12  ;;  %3428 = vrot.lane.b32.xlu1 %v7329_v51, %s4873_s12  ;;  %v7419_v43 = vmax.f32 %v3317_v1, 0.0  ;;  %v8753_v52 = vld [vmem:[#allocation58_spill] sm:$0xff] }
 0x42f   : > { %v2515_v37 = vpop.permute.xlu1 %2514 }
 0x430   : > { %v2642_v38 = vpop.permute.xlu0 %2641  ;;  %2596 = vst.msk [vmem:[%s5517_s15 + $0x2f0] sm:$0xff] %vm2580_vm3, %v2515_v37 }
 0x431   : > { %2724 = vst.msk [vmem:[%s5517_s15 + $0x2e0] sm:$0xff] %vm2709_vm4, %v2642_v38  ;;  %3434 = vrot.lane.b32.xlu0 %v7355_v4, %s4873_s12  ;;  %3432 = vrot.lane.b32.xlu1 %v7353_v58, %s4873_s12 }
 0x433   : > { %v2644_v50 = vpop.permute.xlu1 %2643 }
 0x434   : > { %v2771_v55 = vpop.permute.xlu0 %2770  ;;  %2725 = vst.msk [vmem:[%s5517_s15 + $0x2f0] sm:$0xff] %vm2709_vm4, %v2644_v50 }
 0x435   : > { %2852 = vst.msk [vmem:[%s5517_s15 + $0x2e8] sm:$0xff] %vm2290_vm1, %v2771_v55  ;;  %3438 = vrot.lane.b32.xlu0 %v7379_v2, %s4873_s12  ;;  %3436 = vrot.lane.b32.xlu1 %v7377_v33, %s4873_s12 }
 0x437   : > { %v2773_v54 = vpop.permute.xlu1 %2772 }
 0x438   : > { %v2899_v31 = vpop.permute.xlu0 %2898  ;;  %2853 = vst.msk [vmem:[%s5517_s15 + $0x2f8] sm:$0xff] %vm2290_vm1, %v2773_v54 }
 0x439   : > { %2980 = vst.msk [vmem:[%s5517_s15 + $0x2e8] sm:$0xff] %vm2451_vm2, %v2899_v31  ;;  %3442 = vrot.lane.b32.xlu0 %v7403_v48, %s4873_s12  ;;  %3440 = vrot.lane.b32.xlu1 %v7401_v24, %s4873_s12 }
 0x43b   : > { %v2901_v56 = vpop.permute.xlu1 %2900 }
 0x43c   : > { %v3027_v46 = vpop.permute.xlu0 %3026  ;;  %2981 = vst.msk [vmem:[%s5517_s15 + $0x2f8] sm:$0xff] %vm2451_vm2, %v2901_v56 }
 0x43d   : > { %3108 = vst.msk [vmem:[%s5517_s15 + $0x2e8] sm:$0xff] %vm2580_vm3, %v3027_v46  ;;  %3511 = vrot.lane.b32.xlu0 %v8751_v49, %s4874_s30  ;;  %3444 = vrot.lane.b32.xlu1 %v7419_v43, %s4873_s12 }
 0x43f   : > { %v3029_v57 = vpop.permute.xlu1 %3028 }
 0x440   : > { %v3155_v61 = vpop.permute.xlu0 %3154  ;;  %3109 = vst.msk [vmem:[%s5517_s15 + $0x2f8] sm:$0xff] %vm2580_vm3, %v3029_v57 }
 0x441   : > { %3236 = vst.msk [vmem:[%s5517_s15 + $0x2e8] sm:$0xff] %vm2709_vm4, %v3155_v61  ;;  %3515 = vrot.lane.b32.xlu0 %v8752_v9, %s4874_s30  ;;  %3513 = vrot.lane.b32.xlu1 %v8753_v52, %s4874_s30 }
 0x443   : > { %v3157_v6 = vpop.permute.xlu1 %3156 }
 0x444   : > { %3237 = vst.msk [vmem:[%s5517_s15 + $0x2f8] sm:$0xff] %vm2709_vm4, %v3157_v6  ;;  %v2388_v29 = vpop.permute.xlu0 %2387 }
 0x445   : > { %2468 = vst.msk [vmem:[%s5517_s15 + $0x300] sm:$0xff] %vm2451_vm2, %v2388_v29  ;;  %3519 = vrot.lane.b32.xlu0 %v8754_v13, %s4874_s30  ;;  %3517 = vrot.lane.b32.xlu1 %v8755_v16, %s4874_s30 }
 0x447   : > { %v2390_v28 = vpop.permute.xlu1 %2389 }
 0x448   : > { %v2517_v0 = vpop.permute.xlu0 %2516  ;;  %2469 = vst.msk [vmem:[%s5517_s15 + $0x310] sm:$0xff] %vm2451_vm2, %v2390_v28 }
 0x449   : > { %2597 = vst.msk [vmem:[%s5517_s15 + $0x300] sm:$0xff] %vm2580_vm3, %v2517_v0  ;;  %3523 = vrot.lane.b32.xlu0 %v7123_v53, %s4874_s30  ;;  %3521 = vrot.lane.b32.xlu1 %v8756_v62, %s4874_s30 }
 0x44b   : > { %v2519_v27 = vpop.permute.xlu1 %2518 }
 0x44c   : > { %v2646_v22 = vpop.permute.xlu0 %2645  ;;  %2598 = vst.msk [vmem:[%s5517_s15 + $0x310] sm:$0xff] %vm2580_vm3, %v2519_v27 }
 0x44d   : > { %2726 = vst.msk [vmem:[%s5517_s15 + $0x300] sm:$0xff] %vm2709_vm4, %v2646_v22  ;;  %3527 = vrot.lane.b32.xlu0 %v7139_v14, %s4874_s30  ;;  %3525 = vrot.lane.b32.xlu1 %v7067_v42, %s4874_s30 }
 0x44f   : > { %v2648_v60 = vpop.permute.xlu1 %2647 }
 0x450   : > { %v2775_v37 = vpop.permute.xlu0 %2774  ;;  %2727 = vst.msk [vmem:[%s5517_s15 + $0x310] sm:$0xff] %vm2709_vm4, %v2648_v60 }
 0x451   : > { %2854 = vst.msk [vmem:[%s5517_s15 + $0x308] sm:$0xff] %vm2290_vm1, %v2775_v37  ;;  %3531 = vrot.lane.b32.xlu0 %v7163_v35, %s4874_s30  ;;  %3529 = vrot.lane.b32.xlu1 %v7161_v44, %s4874_s30 }
 0x453   : > { %v2777_v38 = vpop.permute.xlu1 %2776 }
 0x454   : > { %v2903_v30 = vpop.permute.xlu0 %2902  ;;  %2855 = vst.msk [vmem:[%s5517_s15 + $0x318] sm:$0xff] %vm2290_vm1, %v2777_v38 }
 0x455   : > { %2982 = vst.msk [vmem:[%s5517_s15 + $0x308] sm:$0xff] %vm2451_vm2, %v2903_v30  ;;  %3535 = vrot.lane.b32.xlu0 %v7187_v45, %s4874_s30  ;;  %3533 = vrot.lane.b32.xlu1 %v7185_v12, %s4874_s30 }
 0x457   : > { %v2905_v26 = vpop.permute.xlu1 %2904 }
 0x458   : > { %v3031_v10 = vpop.permute.xlu0 %3030  ;;  %2983 = vst.msk [vmem:[%s5517_s15 + $0x318] sm:$0xff] %vm2451_vm2, %v2905_v26 }
 0x459   : > { %3110 = vst.msk [vmem:[%s5517_s15 + $0x308] sm:$0xff] %vm2580_vm3, %v3031_v10  ;;  %3539 = vrot.lane.b32.xlu0 %v7211_v3, %s4874_s30  ;;  %3537 = vrot.lane.b32.xlu1 %v7209_v32, %s4874_s30 }
 0x45b   : > { %v3033_v25 = vpop.permute.xlu1 %3032 }
 0x45c   : > { %v3159_v18 = vpop.permute.xlu0 %3158  ;;  %3111 = vst.msk [vmem:[%s5517_s15 + $0x318] sm:$0xff] %vm2580_vm3, %v3033_v25 }
 0x45d   : > { %3238 = vst.msk [vmem:[%s5517_s15 + $0x308] sm:$0xff] %vm2709_vm4, %v3159_v18  ;;  %3543 = vrot.lane.b32.xlu0 %v7235_v7, %s4874_s30  ;;  %3541 = vrot.lane.b32.xlu1 %v7233_v47, %s4874_s30 }
 0x45f   : > { %v3161_v41 = vpop.permute.xlu1 %3160 }
 0x460   : > { %3239 = vst.msk [vmem:[%s5517_s15 + $0x318] sm:$0xff] %vm2709_vm4, %v3161_v41  ;;  %v2392_v39 = vpop.permute.xlu0 %2391 }
 0x461   : > { %2470 = vst.msk [vmem:[%s5517_s15 + $0x320] sm:$0xff] %vm2451_vm2, %v2392_v39  ;;  %3547 = vrot.lane.b32.xlu0 %v7259_v63, %s4874_s30  ;;  %3545 = vrot.lane.b32.xlu1 %v7257_v23, %s4874_s30 }
 0x463   : > { %v3397_v34 = vpop.permute.xlu1 %3396 }
 0x464   : > { %3486 = vst.msk [vmem:[%s5517_s15 + $0x270] sm:$0xff] %vm3478_vm5, %v3397_v34  ;;  %v2521_v40 = vpop.permute.xlu0 %2520 }
 0x465   : > { %2599 = vst.msk [vmem:[%s5517_s15 + $0x320] sm:$0xff] %vm2580_vm3, %v2521_v40  ;;  %3551 = vrot.lane.b32.xlu0 %v7283_v11, %s4874_s30  ;;  %3549 = vrot.lane.b32.xlu1 %v7281_v19, %s4874_s30 }
 0x467   : > { %v2394_v21 = vpop.permute.xlu1 %2393 }
 0x468   : > { %v2650_v50 = vpop.permute.xlu0 %2649  ;;  %2471 = vst.msk [vmem:[%s5517_s15 + $0x330] sm:$0xff] %vm2451_vm2, %v2394_v21 }
 0x469   : > { %2728 = vst.msk [vmem:[%s5517_s15 + $0x320] sm:$0xff] %vm2709_vm4, %v2650_v50  ;;  %3555 = vrot.lane.b32.xlu0 %v7307_v17, %s4874_s30  ;;  %3553 = vrot.lane.b32.xlu1 %v7305_v20, %s4874_s30 }
 0x46b   : > { %v2523_v55 = vpop.permute.xlu1 %2522 }
 0x46c   : > { %v2779_v36 = vpop.permute.xlu0 %2778  ;;  %2600 = vst.msk [vmem:[%s5517_s15 + $0x330] sm:$0xff] %vm2580_vm3, %v2523_v55 }
 0x46d   : > { %2856 = vst.msk [vmem:[%s5517_s15 + $0x328] sm:$0xff] %vm2290_vm1, %v2779_v36  ;;  %3559 = vrot.lane.b32.xlu0 %v7331_v59, %s4874_s30  ;;  %3557 = vrot.lane.b32.xlu1 %v7329_v51, %s4874_s30 }
 0x46f   : > { %v2652_v5 = vpop.permute.xlu1 %2651 }
 0x470   : > { %v2907_v8 = vpop.permute.xlu0 %2906  ;;  %2729 = vst.msk [vmem:[%s5517_s15 + $0x330] sm:$0xff] %vm2709_vm4, %v2652_v5 }
 0x471   : > { %2984 = vst.msk [vmem:[%s5517_s15 + $0x328] sm:$0xff] %vm2451_vm2, %v2907_v8  ;;  %3563 = vrot.lane.b32.xlu0 %v7355_v4, %s4874_s30  ;;  %3561 = vrot.lane.b32.xlu1 %v7353_v58, %s4874_s30 }
 0x473   : > { %v2781_v15 = vpop.permute.xlu1 %2780 }
 0x474   : > { %v3035_v1 = vpop.permute.xlu0 %3034  ;;  %2857 = vst.msk [vmem:[%s5517_s15 + $0x338] sm:$0xff] %vm2290_vm1, %v2781_v15 }
 0x475   : > { %3112 = vst.msk [vmem:[%s5517_s15 + $0x328] sm:$0xff] %vm2580_vm3, %v3035_v1  ;;  %3567 = vrot.lane.b32.xlu0 %v7379_v2, %s4874_s30  ;;  %3565 = vrot.lane.b32.xlu1 %v7377_v33, %s4874_s30 }
 0x477   : > { %v2909_v54 = vpop.permute.xlu1 %2908 }
 0x478   : > { %v3163_v31 = vpop.permute.xlu0 %3162  ;;  %2985 = vst.msk [vmem:[%s5517_s15 + $0x338] sm:$0xff] %vm2451_vm2, %v2909_v54 }
 0x479   : > { %3240 = vst.msk [vmem:[%s5517_s15 + $0x328] sm:$0xff] %vm2709_vm4, %v3163_v31  ;;  %3571 = vrot.lane.b32.xlu0 %v7403_v48, %s4874_s30  ;;  %3569 = vrot.lane.b32.xlu1 %v7401_v24, %s4874_s30 }
 0x47b   : > { %v3037_v56 = vpop.permute.xlu1 %3036 }
 0x47c   : > { %v3395_v46 = vpop.permute.xlu0 %3394  ;;  %3113 = vst.msk [vmem:[%s5517_s15 + $0x338] sm:$0xff] %vm2580_vm3, %v3037_v56 }
 0x47d   : > { %3485 = vst.msk [vmem:[%s5517_s15 + $0x260] sm:$0xff] %vm3478_vm5, %v3395_v46  ;;  %3640 = vrot.lane.b32.xlu0 %v8751_v49, %s4875_s27  ;;  %3573 = vrot.lane.b32.xlu1 %v7419_v43, %s4874_s30  ;;  %s4880_s30 = smov [#allocation8]  }
 0x47f   : > { %v3165_v57 = vpop.permute.xlu1 %3164 }
 0x480   : > { %v3399_v61 = vpop.permute.xlu0 %3398  ;;  %3241 = vst.msk [vmem:[%s5517_s15 + $0x338] sm:$0xff] %vm2709_vm4, %v3165_v57 }
 0x481   : > { %3487 = vst.msk [vmem:[%s5517_s15 + $0x280] sm:$0xff] %vm3478_vm5, %v3399_v61  ;;  %3644 = vrot.lane.b32.xlu0 %v8752_v9, %s4875_s27  ;;  %3642 = vrot.lane.b32.xlu1 %v8753_v52, %s4875_s27 }
 0x483   : > { %v3401_v6 = vpop.permute.xlu1 %3400 }
 0x484   : > { %v3403_v29 = vpop.permute.xlu0 %3402  ;;  %3488 = vst.msk [vmem:[%s5517_s15 + $0x290] sm:$0xff] %vm3478_vm5, %v3401_v6 }
 0x485   : > { %3489 = vst.msk [vmem:[%s5517_s15 + $0x2a0] sm:$0xff] %vm3478_vm5, %v3403_v29  ;;  %3648 = vrot.lane.b32.xlu0 %v8754_v13, %s4875_s27  ;;  %3646 = vrot.lane.b32.xlu1 %v8755_v16, %s4875_s27 }
 0x487   : > { %v3405_v28 = vpop.permute.xlu1 %3404 }
 0x488   : > { %v3407_v0 = vpop.permute.xlu0 %3406  ;;  %3490 = vst.msk [vmem:[%s5517_s15 + $0x2b0] sm:$0xff] %vm3478_vm5, %v3405_v28 }
 0x489   : > { %3491 = vst.msk [vmem:[%s5517_s15 + $0x2c0] sm:$0xff] %vm3478_vm5, %v3407_v0  ;;  %3652 = vrot.lane.b32.xlu0 %v7123_v53, %s4875_s27  ;;  %3650 = vrot.lane.b32.xlu1 %v8756_v62, %s4875_s27 }
 0x48b   : > { %v3409_v27 = vpop.permute.xlu1 %3408 }
 0x48c   : > { %v3411_v22 = vpop.permute.xlu0 %3410  ;;  %3492 = vst.msk [vmem:[%s5517_s15 + $0x2d0] sm:$0xff] %vm3478_vm5, %v3409_v27 }
 0x48d   : > { %3493 = vst.msk [vmem:[%s5517_s15 + $0x2e0] sm:$0xff] %vm3478_vm5, %v3411_v22  ;;  %3656 = vrot.lane.b32.xlu0 %v7139_v14, %s4875_s27  ;;  %3654 = vrot.lane.b32.xlu1 %v7067_v42, %s4875_s27 }
 0x48f   : > { %v3413_v60 = vpop.permute.xlu1 %3412 }
 0x490   : > { %v3415_v37 = vpop.permute.xlu0 %3414  ;;  %3494 = vst.msk [vmem:[%s5517_s15 + $0x2f0] sm:$0xff] %vm3478_vm5, %v3413_v60 }
 0x491   : > { %3495 = vst.msk [vmem:[%s5517_s15 + $0x300] sm:$0xff] %vm3478_vm5, %v3415_v37  ;;  %3660 = vrot.lane.b32.xlu0 %v7163_v35, %s4875_s27  ;;  %3658 = vrot.lane.b32.xlu1 %v7161_v44, %s4875_s27 }
 0x493   : > { %v3417_v38 = vpop.permute.xlu1 %3416 }
 0x494   : > { %v3419_v30 = vpop.permute.xlu0 %3418  ;;  %3496 = vst.msk [vmem:[%s5517_s15 + $0x310] sm:$0xff] %vm3478_vm5, %v3417_v38 }
 0x495   : > { %3497 = vst.msk [vmem:[%s5517_s15 + $0x320] sm:$0xff] %vm3478_vm5, %v3419_v30  ;;  %3664 = vrot.lane.b32.xlu0 %v7187_v45, %s4875_s27  ;;  %3662 = vrot.lane.b32.xlu1 %v7185_v12, %s4875_s27 }
 0x497   : > { %v3421_v26 = vpop.permute.xlu1 %3420 }
 0x498   : > { %v3423_v10 = vpop.permute.xlu0 %3422  ;;  %3498 = vst.msk [vmem:[%s5517_s15 + $0x330] sm:$0xff] %vm3478_vm5, %v3421_v26 }
 0x499   : > { %3499 = vst.msk [vmem:[%s5517_s15 + $0x340] sm:$0xff] %vm3478_vm5, %v3423_v10  ;;  %3668 = vrot.lane.b32.xlu0 %v7211_v3, %s4875_s27  ;;  %3666 = vrot.lane.b32.xlu1 %v7209_v32, %s4875_s27 }
 0x49b   : > { %v3425_v25 = vpop.permute.xlu1 %3424 }
 0x49c   : > { %v3427_v18 = vpop.permute.xlu0 %3426  ;;  %3500 = vst.msk [vmem:[%s5517_s15 + $0x350] sm:$0xff] %vm3478_vm5, %v3425_v25 }
 0x49d   : > { %3501 = vst.msk [vmem:[%s5517_s15 + $0x360] sm:$0xff] %vm3478_vm5, %v3427_v18  ;;  %3672 = vrot.lane.b32.xlu0 %v7235_v7, %s4875_s27  ;;  %3670 = vrot.lane.b32.xlu1 %v7233_v47, %s4875_s27 }
 0x49f   : > { %v3429_v41 = vpop.permute.xlu1 %3428 }
 0x4a0   : > { %v3431_v39 = vpop.permute.xlu0 %3430  ;;  %3502 = vst.msk [vmem:[%s5517_s15 + $0x370] sm:$0xff] %vm3478_vm5, %v3429_v41 }
 0x4a1   : > { %3503 = vst.msk [vmem:[%s5517_s15 + $0x380] sm:$0xff] %vm3478_vm5, %v3431_v39  ;;  %3676 = vrot.lane.b32.xlu0 %v7259_v63, %s4875_s27  ;;  %3674 = vrot.lane.b32.xlu1 %v7257_v23, %s4875_s27 }
 0x4a3   : > { %v3433_v34 = vpop.permute.xlu1 %3432 }
 0x4a4   : > { %v3435_v40 = vpop.permute.xlu0 %3434  ;;  %3504 = vst.msk [vmem:[%s5517_s15 + $0x390] sm:$0xff] %vm3478_vm5, %v3433_v34 }
 0x4a5   : > { %3505 = vst.msk [vmem:[%s5517_s15 + $0x3a0] sm:$0xff] %vm3478_vm5, %v3435_v40  ;;  %3680 = vrot.lane.b32.xlu0 %v7283_v11, %s4875_s27  ;;  %3678 = vrot.lane.b32.xlu1 %v7281_v19, %s4875_s27 }
 0x4a7   : > { %v3437_v21 = vpop.permute.xlu1 %3436 }
 0x4a8   : > { %v3439_v50 = vpop.permute.xlu0 %3438  ;;  %3506 = vst.msk [vmem:[%s5517_s15 + $0x3b0] sm:$0xff] %vm3478_vm5, %v3437_v21 }
 0x4a9   : > { %3507 = vst.msk [vmem:[%s5517_s15 + $0x3c0] sm:$0xff] %vm3478_vm5, %v3439_v50  ;;  %3684 = vrot.lane.b32.xlu0 %v7307_v17, %s4875_s27  ;;  %3682 = vrot.lane.b32.xlu1 %v7305_v20, %s4875_s27 }
 0x4ab   : > { %v3441_v55 = vpop.permute.xlu1 %3440 }
 0x4ac   : > { %v3443_v36 = vpop.permute.xlu0 %3442  ;;  %3508 = vst.msk [vmem:[%s5517_s15 + $0x3d0] sm:$0xff] %vm3478_vm5, %v3441_v55 }
 0x4ad   : > { %3509 = vst.msk [vmem:[%s5517_s15 + $0x3e0] sm:$0xff] %vm3478_vm5, %v3443_v36  ;;  %3688 = vrot.lane.b32.xlu0 %v7331_v59, %s4875_s27  ;;  %3686 = vrot.lane.b32.xlu1 %v7329_v51, %s4875_s27 }
 0x4af   : > { %v3445_v5 = vpop.permute.xlu1 %3444 }
 0x4b0   : > { %v3512_v8 = vpop.permute.xlu0 %3511  ;;  %3510 = vst.msk [vmem:[%s5517_s15 + $0x3f0] sm:$0xff] %vm3478_vm5, %v3445_v5 }
 0x4b1   : > { %3608 = vst.msk [vmem:[%s5517_s15 + $0x200] sm:$0xff] %vm3607_vm6, %v3512_v8  ;;  %3692 = vrot.lane.b32.xlu0 %v7355_v4, %s4875_s27  ;;  %3690 = vrot.lane.b32.xlu1 %v7353_v58, %s4875_s27 }
 0x4b3   : > { %v3514_v15 = vpop.permute.xlu1 %3513 }
 0x4b4   : > { %v3516_v1 = vpop.permute.xlu0 %3515  ;;  %3609 = vst.msk [vmem:[%s5517_s15 + $0x210] sm:$0xff] %vm3607_vm6, %v3514_v15 }
 0x4b5   : > { %3610 = vst.msk [vmem:[%s5517_s15 + $0x220] sm:$0xff] %vm3607_vm6, %v3516_v1  ;;  %3696 = vrot.lane.b32.xlu0 %v7379_v2, %s4875_s27  ;;  %3694 = vrot.lane.b32.xlu1 %v7377_v33, %s4875_s27 }
 0x4b7   : > { %v3518_v54 = vpop.permute.xlu1 %3517 }
 0x4b8   : > { %v3520_v31 = vpop.permute.xlu0 %3519  ;;  %3611 = vst.msk [vmem:[%s5517_s15 + $0x230] sm:$0xff] %vm3607_vm6, %v3518_v54 }
 0x4b9   : > { %3612 = vst.msk [vmem:[%s5517_s15 + $0x240] sm:$0xff] %vm3607_vm6, %v3520_v31  ;;  %3700 = vrot.lane.b32.xlu0 %v7403_v48, %s4875_s27  ;;  %3698 = vrot.lane.b32.xlu1 %v7401_v24, %s4875_s27 }
 0x4bb   : > { %v3522_v56 = vpop.permute.xlu1 %3521 }
 0x4bc   : > { %v3524_v46 = vpop.permute.xlu0 %3523  ;;  %3613 = vst.msk [vmem:[%s5517_s15 + $0x250] sm:$0xff] %vm3607_vm6, %v3522_v56 }
 0x4bd   : > { %3614 = vst.msk [vmem:[%s5517_s15 + $0x260] sm:$0xff] %vm3607_vm6, %v3524_v46  ;;  %3769 = vrot.lane.b32.xlu0 %v8751_v49, %s4876_s9  ;;  %3702 = vrot.lane.b32.xlu1 %v7419_v43, %s4875_s27  ;;  %s4779_s27 = sshll.u32 %s4880_s30, 4  ;;  %s4780_s27 = int_to_ptr.vmem [resolvable:$false] %s4779_s27 }
 0x4be   : > { %p4782_p5 = scmp.lt.s32.totalorder %s8407_s16, %s4780_s27 }
 0x4bf   : > { %v3526_v57 = vpop.permute.xlu1 %3525 }
 0x4c0   : > { %v3528_v61 = vpop.permute.xlu0 %3527  ;;  %3615 = vst.msk [vmem:[%s5517_s15 + $0x270] sm:$0xff] %vm3607_vm6, %v3526_v57 }
 0x4c1   : > { %3616 = vst.msk [vmem:[%s5517_s15 + $0x280] sm:$0xff] %vm3607_vm6, %v3528_v61  ;;  %3773 = vrot.lane.b32.xlu0 %v8752_v9, %s4876_s9  ;;  %3771 = vrot.lane.b32.xlu1 %v8753_v52, %s4876_s9 }
 0x4c3   : > { %v3530_v6 = vpop.permute.xlu1 %3529 }
 0x4c4   : > { %v3532_v29 = vpop.permute.xlu0 %3531  ;;  %3617 = vst.msk [vmem:[%s5517_s15 + $0x290] sm:$0xff] %vm3607_vm6, %v3530_v6 }
 0x4c5   : > { %3618 = vst.msk [vmem:[%s5517_s15 + $0x2a0] sm:$0xff] %vm3607_vm6, %v3532_v29  ;;  %3777 = vrot.lane.b32.xlu0 %v8754_v13, %s4876_s9  ;;  %3775 = vrot.lane.b32.xlu1 %v8755_v16, %s4876_s9 }
 0x4c7   : > { %v3534_v28 = vpop.permute.xlu1 %3533 }
 0x4c8   : > { %v3536_v0 = vpop.permute.xlu0 %3535  ;;  %3619 = vst.msk [vmem:[%s5517_s15 + $0x2b0] sm:$0xff] %vm3607_vm6, %v3534_v28 }
 0x4c9   : > { %3620 = vst.msk [vmem:[%s5517_s15 + $0x2c0] sm:$0xff] %vm3607_vm6, %v3536_v0  ;;  %3781 = vrot.lane.b32.xlu0 %v7123_v53, %s4876_s9  ;;  %3779 = vrot.lane.b32.xlu1 %v8756_v62, %s4876_s9 }
 0x4cb   : > { %v3538_v27 = vpop.permute.xlu1 %3537 }
 0x4cc   : > { %v3540_v22 = vpop.permute.xlu0 %3539  ;;  %3621 = vst.msk [vmem:[%s5517_s15 + $0x2d0] sm:$0xff] %vm3607_vm6, %v3538_v27 }
 0x4cd   : > { %3622 = vst.msk [vmem:[%s5517_s15 + $0x2e0] sm:$0xff] %vm3607_vm6, %v3540_v22  ;;  %3785 = vrot.lane.b32.xlu0 %v7139_v14, %s4876_s9  ;;  %3783 = vrot.lane.b32.xlu1 %v7067_v42, %s4876_s9 }
 0x4cf   : > { %v3542_v60 = vpop.permute.xlu1 %3541 }
 0x4d0   : > { %v3544_v37 = vpop.permute.xlu0 %3543  ;;  %3623 = vst.msk [vmem:[%s5517_s15 + $0x2f0] sm:$0xff] %vm3607_vm6, %v3542_v60 }
 0x4d1   : > { %3624 = vst.msk [vmem:[%s5517_s15 + $0x300] sm:$0xff] %vm3607_vm6, %v3544_v37  ;;  %3789 = vrot.lane.b32.xlu0 %v7163_v35, %s4876_s9  ;;  %3787 = vrot.lane.b32.xlu1 %v7161_v44, %s4876_s9 }
 0x4d3   : > { %v3546_v38 = vpop.permute.xlu1 %3545 }
 0x4d4   : > { %v3548_v30 = vpop.permute.xlu0 %3547  ;;  %3625 = vst.msk [vmem:[%s5517_s15 + $0x310] sm:$0xff] %vm3607_vm6, %v3546_v38 }
 0x4d5   : > { %3626 = vst.msk [vmem:[%s5517_s15 + $0x320] sm:$0xff] %vm3607_vm6, %v3548_v30  ;;  %3793 = vrot.lane.b32.xlu0 %v7187_v45, %s4876_s9  ;;  %3791 = vrot.lane.b32.xlu1 %v7185_v12, %s4876_s9 }
 0x4d7   : > { %v3550_v26 = vpop.permute.xlu1 %3549 }
 0x4d8   : > { %v3552_v10 = vpop.permute.xlu0 %3551  ;;  %3627 = vst.msk [vmem:[%s5517_s15 + $0x330] sm:$0xff] %vm3607_vm6, %v3550_v26 }
 0x4d9   : > { %3628 = vst.msk [vmem:[%s5517_s15 + $0x340] sm:$0xff] %vm3607_vm6, %v3552_v10  ;;  %3797 = vrot.lane.b32.xlu0 %v7211_v3, %s4876_s9  ;;  %3795 = vrot.lane.b32.xlu1 %v7209_v32, %s4876_s9 }
 0x4db   : > { %v3554_v25 = vpop.permute.xlu1 %3553 }
 0x4dc   : > { %v3556_v18 = vpop.permute.xlu0 %3555  ;;  %3629 = vst.msk [vmem:[%s5517_s15 + $0x350] sm:$0xff] %vm3607_vm6, %v3554_v25 }
 0x4dd   : > { %3630 = vst.msk [vmem:[%s5517_s15 + $0x360] sm:$0xff] %vm3607_vm6, %v3556_v18  ;;  %3801 = vrot.lane.b32.xlu0 %v7235_v7, %s4876_s9  ;;  %3799 = vrot.lane.b32.xlu1 %v7233_v47, %s4876_s9 }
 0x4df   : > { %v3558_v41 = vpop.permute.xlu1 %3557 }
 0x4e0   : > { %v3560_v39 = vpop.permute.xlu0 %3559  ;;  %3631 = vst.msk [vmem:[%s5517_s15 + $0x370] sm:$0xff] %vm3607_vm6, %v3558_v41 }
 0x4e1   : > { %3632 = vst.msk [vmem:[%s5517_s15 + $0x380] sm:$0xff] %vm3607_vm6, %v3560_v39  ;;  %3805 = vrot.lane.b32.xlu0 %v7259_v63, %s4876_s9  ;;  %3803 = vrot.lane.b32.xlu1 %v7257_v23, %s4876_s9 }
 0x4e3   : > { %v3562_v34 = vpop.permute.xlu1 %3561 }
 0x4e4   : > { %v3564_v40 = vpop.permute.xlu0 %3563  ;;  %3633 = vst.msk [vmem:[%s5517_s15 + $0x390] sm:$0xff] %vm3607_vm6, %v3562_v34 }
 0x4e5   : > { %3634 = vst.msk [vmem:[%s5517_s15 + $0x3a0] sm:$0xff] %vm3607_vm6, %v3564_v40  ;;  %3809 = vrot.lane.b32.xlu0 %v7283_v11, %s4876_s9  ;;  %3807 = vrot.lane.b32.xlu1 %v7281_v19, %s4876_s9 }
 0x4e7   : > { %v3566_v21 = vpop.permute.xlu1 %3565 }
 0x4e8   : > { %v3568_v50 = vpop.permute.xlu0 %3567  ;;  %3635 = vst.msk [vmem:[%s5517_s15 + $0x3b0] sm:$0xff] %vm3607_vm6, %v3566_v21 }
 0x4e9   : > { %3636 = vst.msk [vmem:[%s5517_s15 + $0x3c0] sm:$0xff] %vm3607_vm6, %v3568_v50  ;;  %3813 = vrot.lane.b32.xlu0 %v7307_v17, %s4876_s9  ;;  %3811 = vrot.lane.b32.xlu1 %v7305_v20, %s4876_s9 }
 0x4eb   : > { %v3570_v55 = vpop.permute.xlu1 %3569 }
 0x4ec   : > { %v3572_v36 = vpop.permute.xlu0 %3571  ;;  %3637 = vst.msk [vmem:[%s5517_s15 + $0x3d0] sm:$0xff] %vm3607_vm6, %v3570_v55 }
 0x4ed   : > { %3638 = vst.msk [vmem:[%s5517_s15 + $0x3e0] sm:$0xff] %vm3607_vm6, %v3572_v36  ;;  %3817 = vrot.lane.b32.xlu0 %v7331_v59, %s4876_s9  ;;  %3815 = vrot.lane.b32.xlu1 %v7329_v51, %s4876_s9 }
 0x4ef   : > { %v3574_v5 = vpop.permute.xlu1 %3573 }
 0x4f0   : > { %v3641_v8 = vpop.permute.xlu0 %3640  ;;  %3639 = vst.msk [vmem:[%s5517_s15 + $0x3f0] sm:$0xff] %vm3607_vm6, %v3574_v5 }
 0x4f1   : > { %3737 = vst.msk [vmem:[%s5517_s15 + $0x200] sm:$0xff] %vm3736_vm7, %v3641_v8  ;;  %3821 = vrot.lane.b32.xlu0 %v7355_v4, %s4876_s9  ;;  %3819 = vrot.lane.b32.xlu1 %v7353_v58, %s4876_s9 }
 0x4f3   : > { %v3643_v15 = vpop.permute.xlu1 %3642 }
 0x4f4   : > { %v3645_v1 = vpop.permute.xlu0 %3644  ;;  %3738 = vst.msk [vmem:[%s5517_s15 + $0x210] sm:$0xff] %vm3736_vm7, %v3643_v15 }
 0x4f5   : > { %3739 = vst.msk [vmem:[%s5517_s15 + $0x220] sm:$0xff] %vm3736_vm7, %v3645_v1  ;;  %3825 = vrot.lane.b32.xlu0 %v7379_v2, %s4876_s9  ;;  %3823 = vrot.lane.b32.xlu1 %v7377_v33, %s4876_s9 }
 0x4f7   : > { %v3647_v54 = vpop.permute.xlu1 %3646 }
 0x4f8   : > { %v3649_v31 = vpop.permute.xlu0 %3648  ;;  %3740 = vst.msk [vmem:[%s5517_s15 + $0x230] sm:$0xff] %vm3736_vm7, %v3647_v54 }
 0x4f9   : > { %3741 = vst.msk [vmem:[%s5517_s15 + $0x240] sm:$0xff] %vm3736_vm7, %v3649_v31  ;;  %3829 = vrot.lane.b32.xlu0 %v7403_v48, %s4876_s9  ;;  %3827 = vrot.lane.b32.xlu1 %v7401_v24, %s4876_s9 }
 0x4fb   : > { %v3651_v56 = vpop.permute.xlu1 %3650 }
 0x4fc   : > { %v3653_v46 = vpop.permute.xlu0 %3652  ;;  %3742 = vst.msk [vmem:[%s5517_s15 + $0x250] sm:$0xff] %vm3736_vm7, %v3651_v56 }
 0x4fd   : > { %3743 = vst.msk [vmem:[%s5517_s15 + $0x260] sm:$0xff] %vm3736_vm7, %v3653_v46  ;;  %3898 = vrot.lane.b32.xlu0 %v8751_v49, %s4877_s7  ;;  %3831 = vrot.lane.b32.xlu1 %v7419_v43, %s4876_s9  ;;  %s4781_s9 = scalar_lea.vmem %s4780_s27, 32768 }
 0x4fe   : > { %p4783_p9 = scmp.lt.s32.totalorder %s4781_s9, %s4775_s28 }
 0x4ff   : > { %v3655_v57 = vpop.permute.xlu1 %3654 }
 0x500   : > { %v3657_v61 = vpop.permute.xlu0 %3656  ;;  %3744 = vst.msk [vmem:[%s5517_s15 + $0x270] sm:$0xff] %vm3736_vm7, %v3655_v57  ;;  %p4784_p11 = por %p4783_p9, %p4782_p5 }
 0x501   : > { %3745 = vst.msk [vmem:[%s5517_s15 + $0x280] sm:$0xff] %vm3736_vm7, %v3657_v61  ;;  %3902 = vrot.lane.b32.xlu0 %v8752_v9, %s4877_s7  ;;  %3900 = vrot.lane.b32.xlu1 %v8753_v52, %s4877_s7 }
 0x502   : > { %p4785_p0 = pnand %p4784_p11, %p4778_p3 }
 0x503   : > { %v3659_v6 = vpop.permute.xlu1 %3658 }
 0x504   : > { %v3661_v29 = vpop.permute.xlu0 %3660  ;;  %3746 = vst.msk [vmem:[%s5517_s15 + $0x290] sm:$0xff] %vm3736_vm7, %v3659_v6 }
 0x505   : > { %3747 = vst.msk [vmem:[%s5517_s15 + $0x2a0] sm:$0xff] %vm3736_vm7, %v3661_v29  ;;  %3906 = vrot.lane.b32.xlu0 %v8754_v13, %s4877_s7  ;;  %3904 = vrot.lane.b32.xlu1 %v8755_v16, %s4877_s7 }
 0x507   : > { %v3663_v28 = vpop.permute.xlu1 %3662 }
 0x508   : > { %v3665_v0 = vpop.permute.xlu0 %3664  ;;  %3748 = vst.msk [vmem:[%s5517_s15 + $0x2b0] sm:$0xff] %vm3736_vm7, %v3663_v28 }
 0x509   : > { %3749 = vst.msk [vmem:[%s5517_s15 + $0x2c0] sm:$0xff] %vm3736_vm7, %v3665_v0  ;;  %3910 = vrot.lane.b32.xlu0 %v7123_v53, %s4877_s7  ;;  %3908 = vrot.lane.b32.xlu1 %v8756_v62, %s4877_s7 }
 0x50b   : > { %v3667_v27 = vpop.permute.xlu1 %3666 }
 0x50c   : > { %v3669_v22 = vpop.permute.xlu0 %3668  ;;  %3750 = vst.msk [vmem:[%s5517_s15 + $0x2d0] sm:$0xff] %vm3736_vm7, %v3667_v27 }
 0x50d   : > { %3751 = vst.msk [vmem:[%s5517_s15 + $0x2e0] sm:$0xff] %vm3736_vm7, %v3669_v22  ;;  %3914 = vrot.lane.b32.xlu0 %v7139_v14, %s4877_s7  ;;  %3912 = vrot.lane.b32.xlu1 %v7067_v42, %s4877_s7 }
 0x50f   : > { %v3671_v60 = vpop.permute.xlu1 %3670 }
 0x510   : > { %v3673_v37 = vpop.permute.xlu0 %3672  ;;  %3752 = vst.msk [vmem:[%s5517_s15 + $0x2f0] sm:$0xff] %vm3736_vm7, %v3671_v60 }
 0x511   : > { %3753 = vst.msk [vmem:[%s5517_s15 + $0x300] sm:$0xff] %vm3736_vm7, %v3673_v37  ;;  %3918 = vrot.lane.b32.xlu0 %v7163_v35, %s4877_s7  ;;  %3916 = vrot.lane.b32.xlu1 %v7161_v44, %s4877_s7 }
 0x513   : > { %v3675_v38 = vpop.permute.xlu1 %3674 }
 0x514   : > { %v3677_v30 = vpop.permute.xlu0 %3676  ;;  %3754 = vst.msk [vmem:[%s5517_s15 + $0x310] sm:$0xff] %vm3736_vm7, %v3675_v38 }
 0x515   : > { %3755 = vst.msk [vmem:[%s5517_s15 + $0x320] sm:$0xff] %vm3736_vm7, %v3677_v30  ;;  %3922 = vrot.lane.b32.xlu0 %v7187_v45, %s4877_s7  ;;  %3920 = vrot.lane.b32.xlu1 %v7185_v12, %s4877_s7 }
 0x517   : > { %v3679_v26 = vpop.permute.xlu1 %3678 }
 0x518   : > { %v3681_v10 = vpop.permute.xlu0 %3680  ;;  %3756 = vst.msk [vmem:[%s5517_s15 + $0x330] sm:$0xff] %vm3736_vm7, %v3679_v26 }
 0x519   : > { %3757 = vst.msk [vmem:[%s5517_s15 + $0x340] sm:$0xff] %vm3736_vm7, %v3681_v10  ;;  %3926 = vrot.lane.b32.xlu0 %v7211_v3, %s4877_s7  ;;  %3924 = vrot.lane.b32.xlu1 %v7209_v32, %s4877_s7 }
 0x51b   : > { %v3683_v25 = vpop.permute.xlu1 %3682 }
 0x51c   : > { %v3685_v18 = vpop.permute.xlu0 %3684  ;;  %3758 = vst.msk [vmem:[%s5517_s15 + $0x350] sm:$0xff] %vm3736_vm7, %v3683_v25 }
 0x51d   : > { %3759 = vst.msk [vmem:[%s5517_s15 + $0x360] sm:$0xff] %vm3736_vm7, %v3685_v18  ;;  %3930 = vrot.lane.b32.xlu0 %v7235_v7, %s4877_s7  ;;  %3928 = vrot.lane.b32.xlu1 %v7233_v47, %s4877_s7 }
 0x51f   : > { %v3687_v41 = vpop.permute.xlu1 %3686 }
 0x520   : > { %v3689_v39 = vpop.permute.xlu0 %3688  ;;  %3760 = vst.msk [vmem:[%s5517_s15 + $0x370] sm:$0xff] %vm3736_vm7, %v3687_v41 }
 0x521   : > { %3761 = vst.msk [vmem:[%s5517_s15 + $0x380] sm:$0xff] %vm3736_vm7, %v3689_v39  ;;  %3934 = vrot.lane.b32.xlu0 %v7259_v63, %s4877_s7  ;;  %3932 = vrot.lane.b32.xlu1 %v7257_v23, %s4877_s7 }
 0x523   : > { %v3691_v34 = vpop.permute.xlu1 %3690 }
 0x524   : > { %v3693_v40 = vpop.permute.xlu0 %3692  ;;  %3762 = vst.msk [vmem:[%s5517_s15 + $0x390] sm:$0xff] %vm3736_vm7, %v3691_v34 }
 0x525   : > { %3763 = vst.msk [vmem:[%s5517_s15 + $0x3a0] sm:$0xff] %vm3736_vm7, %v3693_v40  ;;  %3938 = vrot.lane.b32.xlu0 %v7283_v11, %s4877_s7  ;;  %3936 = vrot.lane.b32.xlu1 %v7281_v19, %s4877_s7 }
 0x527   : > { %v3695_v21 = vpop.permute.xlu1 %3694 }
 0x528   : > { %v3697_v50 = vpop.permute.xlu0 %3696  ;;  %3764 = vst.msk [vmem:[%s5517_s15 + $0x3b0] sm:$0xff] %vm3736_vm7, %v3695_v21 }
 0x529   : > { %3765 = vst.msk [vmem:[%s5517_s15 + $0x3c0] sm:$0xff] %vm3736_vm7, %v3697_v50  ;;  %3942 = vrot.lane.b32.xlu0 %v7307_v17, %s4877_s7  ;;  %3940 = vrot.lane.b32.xlu1 %v7305_v20, %s4877_s7 }
 0x52b   : > { %v3699_v55 = vpop.permute.xlu1 %3698 }
 0x52c   : > { %v3701_v36 = vpop.permute.xlu0 %3700  ;;  %3766 = vst.msk [vmem:[%s5517_s15 + $0x3d0] sm:$0xff] %vm3736_vm7, %v3699_v55 }
 0x52d   : > { %3767 = vst.msk [vmem:[%s5517_s15 + $0x3e0] sm:$0xff] %vm3736_vm7, %v3701_v36  ;;  %3946 = vrot.lane.b32.xlu0 %v7331_v59, %s4877_s7  ;;  %3944 = vrot.lane.b32.xlu1 %v7329_v51, %s4877_s7 }
 0x52f   : > { %v3703_v5 = vpop.permute.xlu1 %3702 }
 0x530   : > { %v3770_v8 = vpop.permute.xlu0 %3769  ;;  %3768 = vst.msk [vmem:[%s5517_s15 + $0x3f0] sm:$0xff] %vm3736_vm7, %v3703_v5 }
 0x531   : > { %3866 = vst.msk [vmem:[%s5517_s15 + $0x200] sm:$0xff] %vm3865_vm8, %v3770_v8  ;;  %3950 = vrot.lane.b32.xlu0 %v7355_v4, %s4877_s7  ;;  %3948 = vrot.lane.b32.xlu1 %v7353_v58, %s4877_s7 }
 0x533   : > { %v3772_v15 = vpop.permute.xlu1 %3771 }
 0x534   : > { %v3774_v1 = vpop.permute.xlu0 %3773  ;;  %3867 = vst.msk [vmem:[%s5517_s15 + $0x210] sm:$0xff] %vm3865_vm8, %v3772_v15 }
 0x535   : > { %3868 = vst.msk [vmem:[%s5517_s15 + $0x220] sm:$0xff] %vm3865_vm8, %v3774_v1  ;;  %3954 = vrot.lane.b32.xlu0 %v7379_v2, %s4877_s7  ;;  %3952 = vrot.lane.b32.xlu1 %v7377_v33, %s4877_s7 }
 0x537   : > { %v3776_v54 = vpop.permute.xlu1 %3775 }
 0x538   : > { %v3778_v31 = vpop.permute.xlu0 %3777  ;;  %3869 = vst.msk [vmem:[%s5517_s15 + $0x230] sm:$0xff] %vm3865_vm8, %v3776_v54 }
 0x539   : > { %3870 = vst.msk [vmem:[%s5517_s15 + $0x240] sm:$0xff] %vm3865_vm8, %v3778_v31  ;;  %3958 = vrot.lane.b32.xlu0 %v7403_v48, %s4877_s7  ;;  %3956 = vrot.lane.b32.xlu1 %v7401_v24, %s4877_s7 }
 0x53b   : > { %v3780_v56 = vpop.permute.xlu1 %3779 }
 0x53c   : > { %v3782_v46 = vpop.permute.xlu0 %3781  ;;  %3871 = vst.msk [vmem:[%s5517_s15 + $0x250] sm:$0xff] %vm3865_vm8, %v3780_v56 }
 0x53d   : > { %3872 = vst.msk [vmem:[%s5517_s15 + $0x260] sm:$0xff] %vm3865_vm8, %v3782_v46  ;;  %4026 = vrot.lane.b32.xlu0 %v8751_v49, %s4878_s10  ;;  %3960 = vrot.lane.b32.xlu1 %v7419_v43, %s4877_s7 }
 0x53f   : > { %v3784_v57 = vpop.permute.xlu1 %3783 }
 0x540   : > { %v3786_v61 = vpop.permute.xlu0 %3785  ;;  %3873 = vst.msk [vmem:[%s5517_s15 + $0x270] sm:$0xff] %vm3865_vm8, %v3784_v57 }
 0x541   : > { %3874 = vst.msk [vmem:[%s5517_s15 + $0x280] sm:$0xff] %vm3865_vm8, %v3786_v61  ;;  %4030 = vrot.lane.b32.xlu0 %v8752_v9, %s4878_s10  ;;  %4028 = vrot.lane.b32.xlu1 %v8753_v52, %s4878_s10 }
 0x543   : > { %v3788_v6 = vpop.permute.xlu1 %3787 }
 0x544   : > { %v3790_v29 = vpop.permute.xlu0 %3789  ;;  %3875 = vst.msk [vmem:[%s5517_s15 + $0x290] sm:$0xff] %vm3865_vm8, %v3788_v6 }
 0x545   : > { %3876 = vst.msk [vmem:[%s5517_s15 + $0x2a0] sm:$0xff] %vm3865_vm8, %v3790_v29  ;;  %4034 = vrot.lane.b32.xlu0 %v8754_v13, %s4878_s10  ;;  %4032 = vrot.lane.b32.xlu1 %v8755_v16, %s4878_s10 }
 0x547   : > { %v3792_v28 = vpop.permute.xlu1 %3791 }
 0x548   : > { %v3794_v0 = vpop.permute.xlu0 %3793  ;;  %3877 = vst.msk [vmem:[%s5517_s15 + $0x2b0] sm:$0xff] %vm3865_vm8, %v3792_v28 }
 0x549   : > { %3878 = vst.msk [vmem:[%s5517_s15 + $0x2c0] sm:$0xff] %vm3865_vm8, %v3794_v0  ;;  %4038 = vrot.lane.b32.xlu0 %v7123_v53, %s4878_s10  ;;  %4036 = vrot.lane.b32.xlu1 %v8756_v62, %s4878_s10 }
 0x54b   : > { %v3796_v27 = vpop.permute.xlu1 %3795 }
 0x54c   : > { %v3798_v22 = vpop.permute.xlu0 %3797  ;;  %3879 = vst.msk [vmem:[%s5517_s15 + $0x2d0] sm:$0xff] %vm3865_vm8, %v3796_v27 }
 0x54d   : > { %3880 = vst.msk [vmem:[%s5517_s15 + $0x2e0] sm:$0xff] %vm3865_vm8, %v3798_v22  ;;  %4042 = vrot.lane.b32.xlu0 %v7139_v14, %s4878_s10  ;;  %4040 = vrot.lane.b32.xlu1 %v7067_v42, %s4878_s10 }
 0x54f   : > { %v3800_v60 = vpop.permute.xlu1 %3799 }
 0x550   : > { %v3802_v37 = vpop.permute.xlu0 %3801  ;;  %3881 = vst.msk [vmem:[%s5517_s15 + $0x2f0] sm:$0xff] %vm3865_vm8, %v3800_v60 }
 0x551   : > { %3882 = vst.msk [vmem:[%s5517_s15 + $0x300] sm:$0xff] %vm3865_vm8, %v3802_v37  ;;  %4046 = vrot.lane.b32.xlu0 %v7163_v35, %s4878_s10  ;;  %4044 = vrot.lane.b32.xlu1 %v7161_v44, %s4878_s10 }
 0x553   : > { %v3804_v38 = vpop.permute.xlu1 %3803 }
 0x554   : > { %v3806_v30 = vpop.permute.xlu0 %3805  ;;  %3883 = vst.msk [vmem:[%s5517_s15 + $0x310] sm:$0xff] %vm3865_vm8, %v3804_v38 }
 0x555   : > { %3884 = vst.msk [vmem:[%s5517_s15 + $0x320] sm:$0xff] %vm3865_vm8, %v3806_v30  ;;  %4050 = vrot.lane.b32.xlu0 %v7187_v45, %s4878_s10  ;;  %4048 = vrot.lane.b32.xlu1 %v7185_v12, %s4878_s10 }
 0x557   : > { %v3808_v26 = vpop.permute.xlu1 %3807 }
 0x558   : > { %v3810_v10 = vpop.permute.xlu0 %3809  ;;  %3885 = vst.msk [vmem:[%s5517_s15 + $0x330] sm:$0xff] %vm3865_vm8, %v3808_v26 }
 0x559   : > { %3886 = vst.msk [vmem:[%s5517_s15 + $0x340] sm:$0xff] %vm3865_vm8, %v3810_v10  ;;  %4054 = vrot.lane.b32.xlu0 %v7211_v3, %s4878_s10  ;;  %4052 = vrot.lane.b32.xlu1 %v7209_v32, %s4878_s10 }
 0x55b   : > { %v3812_v25 = vpop.permute.xlu1 %3811 }
 0x55c   : > { %v3814_v18 = vpop.permute.xlu0 %3813  ;;  %3887 = vst.msk [vmem:[%s5517_s15 + $0x350] sm:$0xff] %vm3865_vm8, %v3812_v25 }
 0x55d   : > { %3888 = vst.msk [vmem:[%s5517_s15 + $0x360] sm:$0xff] %vm3865_vm8, %v3814_v18  ;;  %4058 = vrot.lane.b32.xlu0 %v7235_v7, %s4878_s10  ;;  %4056 = vrot.lane.b32.xlu1 %v7233_v47, %s4878_s10 }
 0x55f   : > { %v3816_v41 = vpop.permute.xlu1 %3815 }
 0x560   : > { %v3818_v39 = vpop.permute.xlu0 %3817  ;;  %3889 = vst.msk [vmem:[%s5517_s15 + $0x370] sm:$0xff] %vm3865_vm8, %v3816_v41 }
 0x561   : > { %3890 = vst.msk [vmem:[%s5517_s15 + $0x380] sm:$0xff] %vm3865_vm8, %v3818_v39  ;;  %4062 = vrot.lane.b32.xlu0 %v7259_v63, %s4878_s10  ;;  %4060 = vrot.lane.b32.xlu1 %v7257_v23, %s4878_s10 }
 0x563   : > { %v3820_v34 = vpop.permute.xlu1 %3819 }
 0x564   : > { %v3822_v40 = vpop.permute.xlu0 %3821  ;;  %3891 = vst.msk [vmem:[%s5517_s15 + $0x390] sm:$0xff] %vm3865_vm8, %v3820_v34 }
 0x565   : > { %3892 = vst.msk [vmem:[%s5517_s15 + $0x3a0] sm:$0xff] %vm3865_vm8, %v3822_v40  ;;  %4066 = vrot.lane.b32.xlu0 %v7283_v11, %s4878_s10  ;;  %4064 = vrot.lane.b32.xlu1 %v7281_v19, %s4878_s10 }
 0x567   : > { %v3824_v21 = vpop.permute.xlu1 %3823 }
 0x568   : > { %v3826_v50 = vpop.permute.xlu0 %3825  ;;  %3893 = vst.msk [vmem:[%s5517_s15 + $0x3b0] sm:$0xff] %vm3865_vm8, %v3824_v21 }
 0x569   : > { %3894 = vst.msk [vmem:[%s5517_s15 + $0x3c0] sm:$0xff] %vm3865_vm8, %v3826_v50  ;;  %4070 = vrot.lane.b32.xlu0 %v7307_v17, %s4878_s10  ;;  %4068 = vrot.lane.b32.xlu1 %v7305_v20, %s4878_s10 }
 0x56b   : > { %v3828_v55 = vpop.permute.xlu1 %3827 }
 0x56c   : > { %v3830_v36 = vpop.permute.xlu0 %3829  ;;  %3895 = vst.msk [vmem:[%s5517_s15 + $0x3d0] sm:$0xff] %vm3865_vm8, %v3828_v55 }
 0x56d   : > { %3896 = vst.msk [vmem:[%s5517_s15 + $0x3e0] sm:$0xff] %vm3865_vm8, %v3830_v36  ;;  %4074 = vrot.lane.b32.xlu0 %v7331_v59, %s4878_s10  ;;  %4072 = vrot.lane.b32.xlu1 %v7329_v51, %s4878_s10 }
 0x56f   : > { %v3832_v5 = vpop.permute.xlu1 %3831 }
 0x570   : > { %v3899_v8 = vpop.permute.xlu0 %3898  ;;  %3897 = vst.msk [vmem:[%s5517_s15 + $0x3f0] sm:$0xff] %vm3865_vm8, %v3832_v5 }
 0x571   : > { %3994 = vst.msk [vmem:[%s5517_s15 + $0x208] sm:$0xff] %vm3478_vm5, %v3899_v8  ;;  %4078 = vrot.lane.b32.xlu0 %v7355_v4, %s4878_s10  ;;  %4076 = vrot.lane.b32.xlu1 %v7353_v58, %s4878_s10 }
 0x573   : > { %v3901_v15 = vpop.permute.xlu1 %3900 }
 0x574   : > { %v3903_v1 = vpop.permute.xlu0 %3902  ;;  %3995 = vst.msk [vmem:[%s5517_s15 + $0x218] sm:$0xff] %vm3478_vm5, %v3901_v15 }
 0x575   : > { %3996 = vst.msk [vmem:[%s5517_s15 + $0x228] sm:$0xff] %vm3478_vm5, %v3903_v1  ;;  %4082 = vrot.lane.b32.xlu0 %v7379_v2, %s4878_s10  ;;  %4080 = vrot.lane.b32.xlu1 %v7377_v33, %s4878_s10 }
 0x577   : > { %v3905_v54 = vpop.permute.xlu1 %3904 }
 0x578   : > { %v3907_v31 = vpop.permute.xlu0 %3906  ;;  %3997 = vst.msk [vmem:[%s5517_s15 + $0x238] sm:$0xff] %vm3478_vm5, %v3905_v54 }
 0x579   : > { %3998 = vst.msk [vmem:[%s5517_s15 + $0x248] sm:$0xff] %vm3478_vm5, %v3907_v31  ;;  %4086 = vrot.lane.b32.xlu0 %v7403_v48, %s4878_s10  ;;  %4084 = vrot.lane.b32.xlu1 %v7401_v24, %s4878_s10 }
 0x57b   : > { %v3909_v56 = vpop.permute.xlu1 %3908 }
 0x57c   : > { %v3911_v46 = vpop.permute.xlu0 %3910  ;;  %3999 = vst.msk [vmem:[%s5517_s15 + $0x258] sm:$0xff] %vm3478_vm5, %v3909_v56 }
 0x57d   : > { %4000 = vst.msk [vmem:[%s5517_s15 + $0x268] sm:$0xff] %vm3478_vm5, %v3911_v46  ;;  %4154 = vrot.lane.b32.xlu0 %v8751_v49, %s4879_s29  ;;  %4088 = vrot.lane.b32.xlu1 %v7419_v43, %s4878_s10 }
 0x57f   : > { %v3913_v57 = vpop.permute.xlu1 %3912 }
 0x580   : > { %v3915_v61 = vpop.permute.xlu0 %3914  ;;  %4001 = vst.msk [vmem:[%s5517_s15 + $0x278] sm:$0xff] %vm3478_vm5, %v3913_v57 }
 0x581   : > { %4002 = vst.msk [vmem:[%s5517_s15 + $0x288] sm:$0xff] %vm3478_vm5, %v3915_v61  ;;  %4158 = vrot.lane.b32.xlu0 %v8752_v9, %s4879_s29  ;;  %4156 = vrot.lane.b32.xlu1 %v8753_v52, %s4879_s29 }
 0x583   : > { %v3917_v6 = vpop.permute.xlu1 %3916 }
 0x584   : > { %v3919_v29 = vpop.permute.xlu0 %3918  ;;  %4003 = vst.msk [vmem:[%s5517_s15 + $0x298] sm:$0xff] %vm3478_vm5, %v3917_v6 }
 0x585   : > { %4004 = vst.msk [vmem:[%s5517_s15 + $0x2a8] sm:$0xff] %vm3478_vm5, %v3919_v29  ;;  %4162 = vrot.lane.b32.xlu0 %v8754_v13, %s4879_s29  ;;  %4160 = vrot.lane.b32.xlu1 %v8755_v16, %s4879_s29 }
 0x587   : > { %v3921_v28 = vpop.permute.xlu1 %3920 }
 0x588   : > { %v3923_v0 = vpop.permute.xlu0 %3922  ;;  %4005 = vst.msk [vmem:[%s5517_s15 + $0x2b8] sm:$0xff] %vm3478_vm5, %v3921_v28 }
 0x589   : > { %4006 = vst.msk [vmem:[%s5517_s15 + $0x2c8] sm:$0xff] %vm3478_vm5, %v3923_v0  ;;  %4166 = vrot.lane.b32.xlu0 %v7123_v53, %s4879_s29  ;;  %4164 = vrot.lane.b32.xlu1 %v8756_v62, %s4879_s29 }
 0x58b   : > { %v3925_v27 = vpop.permute.xlu1 %3924 }
 0x58c   : > { %v3927_v22 = vpop.permute.xlu0 %3926  ;;  %4007 = vst.msk [vmem:[%s5517_s15 + $0x2d8] sm:$0xff] %vm3478_vm5, %v3925_v27 }
 0x58d   : > { %4008 = vst.msk [vmem:[%s5517_s15 + $0x2e8] sm:$0xff] %vm3478_vm5, %v3927_v22  ;;  %4170 = vrot.lane.b32.xlu0 %v7139_v14, %s4879_s29  ;;  %4168 = vrot.lane.b32.xlu1 %v7067_v42, %s4879_s29 }
 0x58f   : > { %v3929_v60 = vpop.permute.xlu1 %3928 }
 0x590   : > { %v3931_v37 = vpop.permute.xlu0 %3930  ;;  %4009 = vst.msk [vmem:[%s5517_s15 + $0x2f8] sm:$0xff] %vm3478_vm5, %v3929_v60 }
 0x591   : > { %4010 = vst.msk [vmem:[%s5517_s15 + $0x308] sm:$0xff] %vm3478_vm5, %v3931_v37  ;;  %4174 = vrot.lane.b32.xlu0 %v7163_v35, %s4879_s29  ;;  %4172 = vrot.lane.b32.xlu1 %v7161_v44, %s4879_s29 }
 0x593   : > { %v3933_v38 = vpop.permute.xlu1 %3932 }
 0x594   : > { %v3935_v30 = vpop.permute.xlu0 %3934  ;;  %4011 = vst.msk [vmem:[%s5517_s15 + $0x318] sm:$0xff] %vm3478_vm5, %v3933_v38 }
 0x595   : > { %4012 = vst.msk [vmem:[%s5517_s15 + $0x328] sm:$0xff] %vm3478_vm5, %v3935_v30  ;;  %4178 = vrot.lane.b32.xlu0 %v7187_v45, %s4879_s29  ;;  %4176 = vrot.lane.b32.xlu1 %v7185_v12, %s4879_s29 }
 0x597   : > { %v3937_v26 = vpop.permute.xlu1 %3936 }
 0x598   : > { %v3939_v10 = vpop.permute.xlu0 %3938  ;;  %4013 = vst.msk [vmem:[%s5517_s15 + $0x338] sm:$0xff] %vm3478_vm5, %v3937_v26 }
 0x599   : > { %4014 = vst.msk [vmem:[%s5517_s15 + $0x348] sm:$0xff] %vm3478_vm5, %v3939_v10  ;;  %4182 = vrot.lane.b32.xlu0 %v7211_v3, %s4879_s29  ;;  %4180 = vrot.lane.b32.xlu1 %v7209_v32, %s4879_s29 }
 0x59b   : > { %v3941_v25 = vpop.permute.xlu1 %3940 }
 0x59c   : > { %v3943_v18 = vpop.permute.xlu0 %3942  ;;  %4015 = vst.msk [vmem:[%s5517_s15 + $0x358] sm:$0xff] %vm3478_vm5, %v3941_v25 }
 0x59d   : > { %4016 = vst.msk [vmem:[%s5517_s15 + $0x368] sm:$0xff] %vm3478_vm5, %v3943_v18  ;;  %4186 = vrot.lane.b32.xlu0 %v7235_v7, %s4879_s29  ;;  %4184 = vrot.lane.b32.xlu1 %v7233_v47, %s4879_s29 }
 0x59f   : > { %v3945_v41 = vpop.permute.xlu1 %3944 }
 0x5a0   : > { %v3947_v39 = vpop.permute.xlu0 %3946  ;;  %4017 = vst.msk [vmem:[%s5517_s15 + $0x378] sm:$0xff] %vm3478_vm5, %v3945_v41 }
 0x5a1   : > { %4018 = vst.msk [vmem:[%s5517_s15 + $0x388] sm:$0xff] %vm3478_vm5, %v3947_v39  ;;  %4190 = vrot.lane.b32.xlu0 %v7259_v63, %s4879_s29  ;;  %4188 = vrot.lane.b32.xlu1 %v7257_v23, %s4879_s29 }
 0x5a3   : > { %v3949_v34 = vpop.permute.xlu1 %3948 }
 0x5a4   : > { %v3951_v40 = vpop.permute.xlu0 %3950  ;;  %4019 = vst.msk [vmem:[%s5517_s15 + $0x398] sm:$0xff] %vm3478_vm5, %v3949_v34 }
 0x5a5   : > { %4020 = vst.msk [vmem:[%s5517_s15 + $0x3a8] sm:$0xff] %vm3478_vm5, %v3951_v40  ;;  %4194 = vrot.lane.b32.xlu0 %v7283_v11, %s4879_s29  ;;  %4192 = vrot.lane.b32.xlu1 %v7281_v19, %s4879_s29 }
 0x5a7   : > { %v3953_v21 = vpop.permute.xlu1 %3952 }
 0x5a8   : > { %v3955_v50 = vpop.permute.xlu0 %3954  ;;  %4021 = vst.msk [vmem:[%s5517_s15 + $0x3b8] sm:$0xff] %vm3478_vm5, %v3953_v21 }
 0x5a9   : > { %4022 = vst.msk [vmem:[%s5517_s15 + $0x3c8] sm:$0xff] %vm3478_vm5, %v3955_v50  ;;  %4198 = vrot.lane.b32.xlu0 %v7307_v17, %s4879_s29  ;;  %4196 = vrot.lane.b32.xlu1 %v7305_v20, %s4879_s29 }
 0x5ab   : > { %v3957_v55 = vpop.permute.xlu1 %3956 }
 0x5ac   : > { %v3959_v36 = vpop.permute.xlu0 %3958  ;;  %4023 = vst.msk [vmem:[%s5517_s15 + $0x3d8] sm:$0xff] %vm3478_vm5, %v3957_v55 }
 0x5ad   : > { %4024 = vst.msk [vmem:[%s5517_s15 + $0x3e8] sm:$0xff] %vm3478_vm5, %v3959_v36  ;;  %4202 = vrot.lane.b32.xlu0 %v7331_v59, %s4879_s29  ;;  %4200 = vrot.lane.b32.xlu1 %v7329_v51, %s4879_s29 }
 0x5af   : > { %v3961_v5 = vpop.permute.xlu1 %3960 }
 0x5b0   : > { %v4027_v8 = vpop.permute.xlu0 %4026  ;;  %4025 = vst.msk [vmem:[%s5517_s15 + $0x3f8] sm:$0xff] %vm3478_vm5, %v3961_v5 }
 0x5b1   : > { %4122 = vst.msk [vmem:[%s5517_s15 + $0x208] sm:$0xff] %vm3607_vm6, %v4027_v8  ;;  %4206 = vrot.lane.b32.xlu0 %v7355_v4, %s4879_s29  ;;  %4204 = vrot.lane.b32.xlu1 %v7353_v58, %s4879_s29 }
 0x5b3   : > { %v4029_v15 = vpop.permute.xlu1 %4028 }
 0x5b4   : > { %v4031_v1 = vpop.permute.xlu0 %4030  ;;  %4123 = vst.msk [vmem:[%s5517_s15 + $0x218] sm:$0xff] %vm3607_vm6, %v4029_v15 }
 0x5b5   : > { %4124 = vst.msk [vmem:[%s5517_s15 + $0x228] sm:$0xff] %vm3607_vm6, %v4031_v1  ;;  %4210 = vrot.lane.b32.xlu0 %v7379_v2, %s4879_s29  ;;  %4208 = vrot.lane.b32.xlu1 %v7377_v33, %s4879_s29 }
 0x5b7   : > { %v4033_v54 = vpop.permute.xlu1 %4032 }
 0x5b8   : > { %v4035_v31 = vpop.permute.xlu0 %4034  ;;  %4125 = vst.msk [vmem:[%s5517_s15 + $0x238] sm:$0xff] %vm3607_vm6, %v4033_v54 }
 0x5b9   : > { %4126 = vst.msk [vmem:[%s5517_s15 + $0x248] sm:$0xff] %vm3607_vm6, %v4035_v31  ;;  %4214 = vrot.lane.b32.xlu0 %v7403_v48, %s4879_s29  ;;  %4212 = vrot.lane.b32.xlu1 %v7401_v24, %s4879_s29 }
 0x5bb   : > { %v4037_v56 = vpop.permute.xlu1 %4036 }
 0x5bc   : > { %v4039_v46 = vpop.permute.xlu0 %4038  ;;  %4127 = vst.msk [vmem:[%s5517_s15 + $0x258] sm:$0xff] %vm3607_vm6, %v4037_v56 }
 0x5bd   : > { %4128 = vst.msk [vmem:[%s5517_s15 + $0x268] sm:$0xff] %vm3607_vm6, %v4039_v46  ;;  %4216 = vrot.lane.b32.xlu1 %v7419_v43, %s4879_s29 }
 0x5bf   : > { %v4041_v57 = vpop.permute.xlu1 %4040 }
 0x5c0   : > { %v4043_v61 = vpop.permute.xlu0 %4042  ;;  %4129 = vst.msk [vmem:[%s5517_s15 + $0x278] sm:$0xff] %vm3607_vm6, %v4041_v57 }
 0x5c1   : > { %4130 = vst.msk [vmem:[%s5517_s15 + $0x288] sm:$0xff] %vm3607_vm6, %v4043_v61 }
 0x5c3   : > { %v4045_v6 = vpop.permute.xlu1 %4044 }
 0x5c4   : > { %v4047_v29 = vpop.permute.xlu0 %4046  ;;  %4131 = vst.msk [vmem:[%s5517_s15 + $0x298] sm:$0xff] %vm3607_vm6, %v4045_v6 }
 0x5c5   : > { %4132 = vst.msk [vmem:[%s5517_s15 + $0x2a8] sm:$0xff] %vm3607_vm6, %v4047_v29 }
 0x5c7   : > { %v4049_v28 = vpop.permute.xlu1 %4048 }
 0x5c8   : > { %v4051_v0 = vpop.permute.xlu0 %4050  ;;  %4133 = vst.msk [vmem:[%s5517_s15 + $0x2b8] sm:$0xff] %vm3607_vm6, %v4049_v28 }
 0x5c9   : > { %4134 = vst.msk [vmem:[%s5517_s15 + $0x2c8] sm:$0xff] %vm3607_vm6, %v4051_v0 }
 0x5cb   : > { %v4053_v27 = vpop.permute.xlu1 %4052 }
 0x5cc   : > { %v4055_v22 = vpop.permute.xlu0 %4054  ;;  %4135 = vst.msk [vmem:[%s5517_s15 + $0x2d8] sm:$0xff] %vm3607_vm6, %v4053_v27 }
 0x5cd   : > { %4136 = vst.msk [vmem:[%s5517_s15 + $0x2e8] sm:$0xff] %vm3607_vm6, %v4055_v22 }
 0x5cf   : > { %v4057_v60 = vpop.permute.xlu1 %4056 }
 0x5d0   : > { %v4059_v37 = vpop.permute.xlu0 %4058  ;;  %4137 = vst.msk [vmem:[%s5517_s15 + $0x2f8] sm:$0xff] %vm3607_vm6, %v4057_v60 }
 0x5d1   : > { %4138 = vst.msk [vmem:[%s5517_s15 + $0x308] sm:$0xff] %vm3607_vm6, %v4059_v37 }
 0x5d3   : > { %v4061_v38 = vpop.permute.xlu1 %4060 }
 0x5d4   : > { %v4063_v30 = vpop.permute.xlu0 %4062  ;;  %4139 = vst.msk [vmem:[%s5517_s15 + $0x318] sm:$0xff] %vm3607_vm6, %v4061_v38 }
 0x5d5   : > { %4140 = vst.msk [vmem:[%s5517_s15 + $0x328] sm:$0xff] %vm3607_vm6, %v4063_v30 }
 0x5d7   : > { %v4065_v26 = vpop.permute.xlu1 %4064 }
 0x5d8   : > { %v4067_v10 = vpop.permute.xlu0 %4066  ;;  %4141 = vst.msk [vmem:[%s5517_s15 + $0x338] sm:$0xff] %vm3607_vm6, %v4065_v26 }
 0x5d9   : > { %4142 = vst.msk [vmem:[%s5517_s15 + $0x348] sm:$0xff] %vm3607_vm6, %v4067_v10 }
 0x5db   : > { %v4069_v25 = vpop.permute.xlu1 %4068 }
 0x5dc   : > { %v4071_v18 = vpop.permute.xlu0 %4070  ;;  %4143 = vst.msk [vmem:[%s5517_s15 + $0x358] sm:$0xff] %vm3607_vm6, %v4069_v25 }
 0x5dd   : > { %4144 = vst.msk [vmem:[%s5517_s15 + $0x368] sm:$0xff] %vm3607_vm6, %v4071_v18 }
 0x5df   : > { %v4073_v41 = vpop.permute.xlu1 %4072 }
 0x5e0   : > { %v4075_v39 = vpop.permute.xlu0 %4074  ;;  %4145 = vst.msk [vmem:[%s5517_s15 + $0x378] sm:$0xff] %vm3607_vm6, %v4073_v41 }
 0x5e1   : > { %4146 = vst.msk [vmem:[%s5517_s15 + $0x388] sm:$0xff] %vm3607_vm6, %v4075_v39 }
 0x5e3   : > { %v4077_v34 = vpop.permute.xlu1 %4076 }
 0x5e4   : > { %v4079_v40 = vpop.permute.xlu0 %4078  ;;  %4147 = vst.msk [vmem:[%s5517_s15 + $0x398] sm:$0xff] %vm3607_vm6, %v4077_v34 }
 0x5e5   : > { %4148 = vst.msk [vmem:[%s5517_s15 + $0x3a8] sm:$0xff] %vm3607_vm6, %v4079_v40 }
 0x5e7   : > { %v4081_v21 = vpop.permute.xlu1 %4080 }
 0x5e8   : > { %v4083_v50 = vpop.permute.xlu0 %4082  ;;  %4149 = vst.msk [vmem:[%s5517_s15 + $0x3b8] sm:$0xff] %vm3607_vm6, %v4081_v21 }
 0x5e9   : > { %4150 = vst.msk [vmem:[%s5517_s15 + $0x3c8] sm:$0xff] %vm3607_vm6, %v4083_v50 }
 0x5eb   : > { %v4085_v55 = vpop.permute.xlu1 %4084 }
 0x5ec   : > { %v4087_v36 = vpop.permute.xlu0 %4086  ;;  %4151 = vst.msk [vmem:[%s5517_s15 + $0x3d8] sm:$0xff] %vm3607_vm6, %v4085_v55 }
 0x5ed   : > { %4152 = vst.msk [vmem:[%s5517_s15 + $0x3e8] sm:$0xff] %vm3607_vm6, %v4087_v36 }
 0x5ef   : > { %v4089_v5 = vpop.permute.xlu1 %4088 }
 0x5f0   : > { %v4155_v8 = vpop.permute.xlu0 %4154  ;;  %4153 = vst.msk [vmem:[%s5517_s15 + $0x3f8] sm:$0xff] %vm3607_vm6, %v4089_v5 }
 0x5f1   : > { %4250 = vst.msk [vmem:[%s5517_s15 + $0x208] sm:$0xff] %vm3736_vm7, %v4155_v8 }
 0x5f2   : > { %4282 = vst.msk [vmem:[%s5517_s15 + $0x208] sm:$0xff] %vm3865_vm8, %v8751_v49 }
 0x5f3   : > { %v4157_v15 = vpop.permute.xlu1 %4156 }
 0x5f4   : > { %v4159_v1 = vpop.permute.xlu0 %4158  ;;  %4251 = vst.msk [vmem:[%s5517_s15 + $0x218] sm:$0xff] %vm3736_vm7, %v4157_v15 }
 0x5f5   : > { %4252 = vst.msk [vmem:[%s5517_s15 + $0x228] sm:$0xff] %vm3736_vm7, %v4159_v1 }
 0x5f6   : > { %4283 = vst.msk [vmem:[%s5517_s15 + $0x218] sm:$0xff] %vm3865_vm8, %v8753_v52  ;;  %4284 = vst.msk [vmem:[%s5517_s15 + $0x228] sm:$0xff] %vm3865_vm8, %v8752_v9 }
 0x5f7   : > { %v4161_v54 = vpop.permute.xlu1 %4160 }
 0x5f8   : > { %v4163_v49 = vpop.permute.xlu0 %4162  ;;  %4253 = vst.msk [vmem:[%s5517_s15 + $0x238] sm:$0xff] %vm3736_vm7, %v4161_v54 }
 0x5f9   : > { %4254 = vst.msk [vmem:[%s5517_s15 + $0x248] sm:$0xff] %vm3736_vm7, %v4163_v49 }
 0x5fa   : > { %4285 = vst.msk [vmem:[%s5517_s15 + $0x238] sm:$0xff] %vm3865_vm8, %v8755_v16  ;;  %4286 = vst.msk [vmem:[%s5517_s15 + $0x248] sm:$0xff] %vm3865_vm8, %v8754_v13 }
 0x5fb   : > { %v4165_v52 = vpop.permute.xlu1 %4164 }
 0x5fc   : > { %v4167_v9 = vpop.permute.xlu0 %4166  ;;  %4255 = vst.msk [vmem:[%s5517_s15 + $0x258] sm:$0xff] %vm3736_vm7, %v4165_v52 }
 0x5fd   : > { %4256 = vst.msk [vmem:[%s5517_s15 + $0x268] sm:$0xff] %vm3736_vm7, %v4167_v9 }
 0x5fe   : > { %4287 = vst.msk [vmem:[%s5517_s15 + $0x258] sm:$0xff] %vm3865_vm8, %v8756_v62  ;;  %4288 = vst.msk [vmem:[%s5517_s15 + $0x268] sm:$0xff] %vm3865_vm8, %v7123_v53 }
 0x5ff   : > { %v4169_v16 = vpop.permute.xlu1 %4168 }
 0x600   : > { %v4171_v13 = vpop.permute.xlu0 %4170  ;;  %4257 = vst.msk [vmem:[%s5517_s15 + $0x278] sm:$0xff] %vm3736_vm7, %v4169_v16 }
 0x601   : > { %4258 = vst.msk [vmem:[%s5517_s15 + $0x288] sm:$0xff] %vm3736_vm7, %v4171_v13 }
 0x602   : > { %4289 = vst.msk [vmem:[%s5517_s15 + $0x278] sm:$0xff] %vm3865_vm8, %v7067_v42  ;;  %4290 = vst.msk [vmem:[%s5517_s15 + $0x288] sm:$0xff] %vm3865_vm8, %v7139_v14 }
 0x603   : > { %v4173_v62 = vpop.permute.xlu1 %4172 }
 0x604   : > { %v4175_v53 = vpop.permute.xlu0 %4174  ;;  %4259 = vst.msk [vmem:[%s5517_s15 + $0x298] sm:$0xff] %vm3736_vm7, %v4173_v62 }
 0x605   : > { %4260 = vst.msk [vmem:[%s5517_s15 + $0x2a8] sm:$0xff] %vm3736_vm7, %v4175_v53 }
 0x606   : > { %4291 = vst.msk [vmem:[%s5517_s15 + $0x298] sm:$0xff] %vm3865_vm8, %v7161_v44  ;;  %4292 = vst.msk [vmem:[%s5517_s15 + $0x2a8] sm:$0xff] %vm3865_vm8, %v7163_v35 }
 0x607   : > { %v4177_v42 = vpop.permute.xlu1 %4176 }
 0x608   : > { %v4179_v14 = vpop.permute.xlu0 %4178  ;;  %4261 = vst.msk [vmem:[%s5517_s15 + $0x2b8] sm:$0xff] %vm3736_vm7, %v4177_v42 }
 0x609   : > { %4262 = vst.msk [vmem:[%s5517_s15 + $0x2c8] sm:$0xff] %vm3736_vm7, %v4179_v14 }
 0x60a   : > { %4293 = vst.msk [vmem:[%s5517_s15 + $0x2b8] sm:$0xff] %vm3865_vm8, %v7185_v12  ;;  %4294 = vst.msk [vmem:[%s5517_s15 + $0x2c8] sm:$0xff] %vm3865_vm8, %v7187_v45 }
 0x60b   : > { %v4181_v44 = vpop.permute.xlu1 %4180 }
 0x60c   : > { %v4183_v35 = vpop.permute.xlu0 %4182  ;;  %4263 = vst.msk [vmem:[%s5517_s15 + $0x2d8] sm:$0xff] %vm3736_vm7, %v4181_v44 }
 0x60d   : > { %4264 = vst.msk [vmem:[%s5517_s15 + $0x2e8] sm:$0xff] %vm3736_vm7, %v4183_v35 }
 0x60e   : > { %4295 = vst.msk [vmem:[%s5517_s15 + $0x2d8] sm:$0xff] %vm3865_vm8, %v7209_v32  ;;  %4296 = vst.msk [vmem:[%s5517_s15 + $0x2e8] sm:$0xff] %vm3865_vm8, %v7211_v3 }
 0x60f   : > { %v4185_v12 = vpop.permute.xlu1 %4184 }
 0x610   : > { %v4187_v45 = vpop.permute.xlu0 %4186  ;;  %4265 = vst.msk [vmem:[%s5517_s15 + $0x2f8] sm:$0xff] %vm3736_vm7, %v4185_v12 }
 0x611   : > { %4266 = vst.msk [vmem:[%s5517_s15 + $0x308] sm:$0xff] %vm3736_vm7, %v4187_v45 }
 0x612   : > { %4297 = vst.msk [vmem:[%s5517_s15 + $0x2f8] sm:$0xff] %vm3865_vm8, %v7233_v47  ;;  %4298 = vst.msk [vmem:[%s5517_s15 + $0x308] sm:$0xff] %vm3865_vm8, %v7235_v7 }
 0x613   : > { %v4189_v32 = vpop.permute.xlu1 %4188 }
 0x614   : > { %v4191_v3 = vpop.permute.xlu0 %4190  ;;  %4267 = vst.msk [vmem:[%s5517_s15 + $0x318] sm:$0xff] %vm3736_vm7, %v4189_v32 }
 0x615   : > { %4268 = vst.msk [vmem:[%s5517_s15 + $0x328] sm:$0xff] %vm3736_vm7, %v4191_v3 }
 0x616   : > { %4299 = vst.msk [vmem:[%s5517_s15 + $0x318] sm:$0xff] %vm3865_vm8, %v7257_v23  ;;  %4300 = vst.msk [vmem:[%s5517_s15 + $0x328] sm:$0xff] %vm3865_vm8, %v7259_v63 }
 0x617   : > { %v4193_v47 = vpop.permute.xlu1 %4192 }
 0x618   : > { %v4195_v7 = vpop.permute.xlu0 %4194  ;;  %4269 = vst.msk [vmem:[%s5517_s15 + $0x338] sm:$0xff] %vm3736_vm7, %v4193_v47 }
 0x619   : > { %4270 = vst.msk [vmem:[%s5517_s15 + $0x348] sm:$0xff] %vm3736_vm7, %v4195_v7 }
 0x61a   : > { %4301 = vst.msk [vmem:[%s5517_s15 + $0x338] sm:$0xff] %vm3865_vm8, %v7281_v19  ;;  %4302 = vst.msk [vmem:[%s5517_s15 + $0x348] sm:$0xff] %vm3865_vm8, %v7283_v11 }
 0x61b   : > { %v4197_v23 = vpop.permute.xlu1 %4196 }
 0x61c   : > { %v4199_v63 = vpop.permute.xlu0 %4198  ;;  %4271 = vst.msk [vmem:[%s5517_s15 + $0x358] sm:$0xff] %vm3736_vm7, %v4197_v23 }
 0x61d   : > { %4272 = vst.msk [vmem:[%s5517_s15 + $0x368] sm:$0xff] %vm3736_vm7, %v4199_v63 }
 0x61e   : > { %4303 = vst.msk [vmem:[%s5517_s15 + $0x358] sm:$0xff] %vm3865_vm8, %v7305_v20  ;;  %4304 = vst.msk [vmem:[%s5517_s15 + $0x368] sm:$0xff] %vm3865_vm8, %v7307_v17 }
 0x61f   : > { %v4201_v19 = vpop.permute.xlu1 %4200 }
 0x620   : > { %v4203_v11 = vpop.permute.xlu0 %4202  ;;  %4273 = vst.msk [vmem:[%s5517_s15 + $0x378] sm:$0xff] %vm3736_vm7, %v4201_v19 }
 0x621   : > { %4274 = vst.msk [vmem:[%s5517_s15 + $0x388] sm:$0xff] %vm3736_vm7, %v4203_v11 }
 0x622   : > { %4305 = vst.msk [vmem:[%s5517_s15 + $0x378] sm:$0xff] %vm3865_vm8, %v7329_v51  ;;  %4306 = vst.msk [vmem:[%s5517_s15 + $0x388] sm:$0xff] %vm3865_vm8, %v7331_v59 }
 0x623   : > { %v4205_v20 = vpop.permute.xlu1 %4204 }
 0x624   : > { %v4207_v17 = vpop.permute.xlu0 %4206  ;;  %4275 = vst.msk [vmem:[%s5517_s15 + $0x398] sm:$0xff] %vm3736_vm7, %v4205_v20 }
 0x625   : > { %4276 = vst.msk [vmem:[%s5517_s15 + $0x3a8] sm:$0xff] %vm3736_vm7, %v4207_v17 }
 0x626   : > { %4307 = vst.msk [vmem:[%s5517_s15 + $0x398] sm:$0xff] %vm3865_vm8, %v7353_v58  ;;  %4308 = vst.msk [vmem:[%s5517_s15 + $0x3a8] sm:$0xff] %vm3865_vm8, %v7355_v4 }
 0x627   : > { %v4209_v51 = vpop.permute.xlu1 %4208 }
 0x628   : > { %v4211_v31 = vpop.permute.xlu0 %4210  ;;  %4277 = vst.msk [vmem:[%s5517_s15 + $0x3b8] sm:$0xff] %vm3736_vm7, %v4209_v51 }
 0x629   : > { %4278 = vst.msk [vmem:[%s5517_s15 + $0x3c8] sm:$0xff] %vm3736_vm7, %v4211_v31 }
 0x62a   : > { %4309 = vst.msk [vmem:[%s5517_s15 + $0x3b8] sm:$0xff] %vm3865_vm8, %v7377_v33  ;;  %4310 = vst.msk [vmem:[%s5517_s15 + $0x3c8] sm:$0xff] %vm3865_vm8, %v7379_v2 }
 0x62b   : > { %v4213_v59 = vpop.permute.xlu1 %4212 }
 0x62c   : > { %v4215_v58 = vpop.permute.xlu0 %4214  ;;  %4279 = vst.msk [vmem:[%s5517_s15 + $0x3d8] sm:$0xff] %vm3736_vm7, %v4213_v59 }
 0x62d   : > { %4280 = vst.msk [vmem:[%s5517_s15 + $0x3e8] sm:$0xff] %vm3736_vm7, %v4215_v58 }
 0x62e   : > { %4311 = vst.msk [vmem:[%s5517_s15 + $0x3d8] sm:$0xff] %vm3865_vm8, %v7401_v24  ;;  %4312 = vst.msk [vmem:[%s5517_s15 + $0x3e8] sm:$0xff] %vm3865_vm8, %v7403_v48 }
 0x62f   : > { %v4217_v4 = vpop.permute.xlu1 %4216 }
 0x630   : > { %4281 = vst.msk [vmem:[%s5517_s15 + $0x3f8] sm:$0xff] %vm3736_vm7, %v4217_v4 }
 0x631   : > { %4313 = vst.msk [vmem:[%s5517_s15 + $0x3f8] sm:$0xff] %vm3865_vm8, %v7419_v43 }
 0x632   : > { %4788 = shalt.err (!%p4785_p0)
}
 0x633   : > { %s4789_s15 = scalar_lea.hbm %s8405_s14, 16384  ;;  %s4793_s29 = scalar_lea.hbm %s8468_s6, 32768 }
 0x634   : > { %p4790_p4 = scmp.ne.s32.totalorder %s8405_s14, %s4789_s15  ;;  %p4794_p7 = scmp.lt.u32.totalorder %s8405_s14, %s8468_s6 }
 0x635   : > { %p4795_p2 = scmp.lt.u32.totalorder %s4793_s29, %s4789_s15  ;;  %p4797_p12 = scmp.lt.u32.totalorder %s4789_s15, %s8405_s14 }
 0x636   : > { %p4791_p13 = pnand %p4790_p4, %p8757_p1 }
 0x637   : > { %p4796_p8 = por %p4795_p2, %p4794_p7 }
 0x638   : > { %p4792_p6 = pneg %p4791_p13 }
 0x639   : > { %p4798_p10 = por %p4797_p12, %p4796_p8 }
 0x63b   : > { %p4799_p3 = pnand %p4798_p10, %p4792_p6 }
 0x63d   : > { %4802 = shalt.err (!%p4799_p3)
}
 0x63e   : > { %s4881_s19 = smov 256  }
 0x63f   : > { %4599 = dma.vmem_to_hbm [thread:$0]  (%p8757_p1), %s8407_s16, 16384, %s8405_s14, %s4315_s24, %s4881_s19, %s4881_s19, %s4873_s12  }
 0x640 PF: > { %s8758_s28 = sld [smem:[#allocation12_spill]]  ;;  %s4345_s30 = sand.u32 1, %s4841_s21  }
 0x641   : > { %p8760_p9 = scmp.ge.s32.totalorder %s4861_s26, 2  ;;  %s4346_s27 = scalar_lea.sflag [#allocation4], %s4345_s30 }
 0x646   : > { %p8759_p5 = scmp.ne.s32.totalorder %s8758_s28, 0 }
 0x648   : > { %p4613_p11 = pnand %p8760_p9, %p8759_p5 }
 0x64a   : > { %4836 = dma.done.wait (!%p4613_p11), %s4346_s27, 16384  }
 0x64b   : > { %4838 = vsyncadd (!%p4613_p11), %s4346_s27, 4294950912  ;;  %s23_s26 = sadd.s32 1, %s4861_s26   ;;  %s8761_s21 = smov %s4845_s22 }
 0x64c   : > { %p20_p0 = scmp.ge.s32.totalorder %s23_s26, 4   ;;  %s8762_s22 = smov %s4849_s23 }
 0x64d   : > { %s8763_s23 = smov %s5062_s11  ;;  %s8764_s24 = smov %s4857_s25 }
 0x64e   : > { %s8765_s25 = smov %s8767_s18  ;;  %22 = sbr.rel (!%p20_p0) target bundleno = 7 (0x7), region = 100 }
 0x655   :  { %4351 = vsyncpa [#allocation3], 1 }
 0x656   :  { %4353 = vsyncpa [#allocation3 + $0x1], 1 }
 0x657   :  { %4354 = vsyncpa [#allocation6], 1 }
 0x658   :  { %4355 = vsyncpa [#allocation4], 1 }
 0x659   :  { %4357 = vsyncpa [#allocation4 + $0x1], 1 }

</bundles_post_ra>
